<compile_context>
chip_gen: v7x
topology: tpu7x:2x2x1
jax: 0.10.0
libtpu: 0.0.40
codegen_flags: <defaults>
</compile_context>

<pallas_src>
import numpy as np

import jax
import jax.numpy as jnp
from jax.experimental import pallas as pl
from jax.experimental.pallas import tpu as pltpu


_TAPS = [(dh, dw) for dh in (-1, 0, 1) for dw in (-1, 0, 1)]  # t = (dh+1)*3+(dw+1)


# --------------------------- Pallas kernel ---------------------------------
def _make_context_res_kernel(C, H, W, eps=1e-5):
    P = H * W
    inv_p = 1.0 / P

    def kernel(x_ref, masks_ref, wsum2_ref, cw1_ref, cw2_ref,
               wa1_ref, ba1_ref, g_ref, be_ref, wa2_ref, ba2_ref, o_ref):
        # Depthwise 3x3 over the flattened lane axis via 8 XLU rolls + masks
        # (+ the unshifted center tap).  w: (C, >=9), tap weights in cols 0..8.
        def dwconv_taps(inp, w):
            acc = w[:, 4:5] * inp                          # center tap: mask == 1
            for t, (dh, dw) in enumerate(_TAPS):
                if t == 4:
                    continue
                s = dh * W + dw                            # read neighbour at p + s
                shifted = pltpu.roll(inp, shift=(-s) % P, axis=1)
                # masks_ref[t] zeros both image-boundary and roll-wrapped lanes.
                acc = acc + w[:, t:t + 1] * (shifted * masks_ref[t])
            return acc

        # conv1 -> ReLU            (x_ref read here; re-read later, not kept live)
        cw1 = cw1_ref[...]                                  # (C, 10): taps | bias
        x2 = jnp.maximum(dwconv_taps(x_ref[0], cw1) + cw1[:, 9:10], 0.0)

        # ContextBlock('avg', channel_add): avg pool + 1x1 -> LN -> ReLU -> 1x1.
        # Tiny (planes<=C) column-vector MLP, channels on sublanes.
        ctx = jnp.sum(x2, axis=1, keepdims=True) * inv_p     # (C, 1)
        t_ = jnp.dot(wa1_ref[...], ctx,
                     preferred_element_type=jnp.float32) + ba1_ref[...]   # (planes,1)
        mu = jnp.mean(t_, axis=0, keepdims=True)
        var = jnp.mean((t_ - mu) ** 2, axis=0, keepdims=True)
        t_ = (t_ - mu) * jax.lax.rsqrt(var + eps) * g_ref[...] + be_ref[...]
        t_ = jnp.maximum(t_, 0.0)
        add = jnp.dot(wa2_ref[...], t_,
                      preferred_element_type=jnp.float32) + ba2_ref[...]  # (C, 1)

        # x3 = 2*x2 + add (broadcast over H*W), and by linearity of the conv:
        #   conv2(x3) = 2*conv2_taps(x2) + add*wsum2 + b2
        # (x3 is never materialized; conv2_taps does not wait on the MLP.)
        cw2 = cw2_ref[...]                                   # (C, 10)
        y = dwconv_taps(x2, cw2)
        o_ref[0] = (2.0 * y + add * wsum2_ref[...] + cw2[:, 9:10]
                    + x_ref[0]).astype(o_ref.dtype)

    return kernel


def _boundary_masks(H, W):
    """(9, H*W) f32: mask_t[p] == 1 iff pixel (h+dh, w+dw) is inside the image."""
    P = H * W
    pos = np.arange(P)
    hh, ww = pos // W, pos % W
    m = np.stack([((hh + dh >= 0) & (hh + dh < H) &
                   (ww + dw >= 0) & (ww + dw < W)).astype(np.float32)
                  for dh, dw in _TAPS])
    return m


def context_res_forward(params, x):
    """x: (B, n_feats, H, W) float32 -> (B, n_feats, H, W)."""
    B, C, H, W = x.shape
    P = H * W

    # Host-side precomputes (hoisted out of the kernel, shared by every image).
    masks = jnp.asarray(_boundary_masks(H, W))               # (9, P)
    w1 = params['conv1_w'].reshape(C, 9)
    w2 = params['conv2_w'].reshape(C, 9)
    cw1 = jnp.concatenate([w1, params['conv1_b'][:, None]], axis=1)   # (C, 10)
    cw2 = jnp.concatenate([w2, params['conv2_b'][:, None]], axis=1)   # (C, 10)
    wsum2 = w2 @ masks                                        # (C, P) valid-tap weight sums

    col = lambda v: v[:, None]                                # (N,) -> (N, 1)
    args = (
        x.reshape(B, C, P),                                   # native NCHW flattening
        masks.reshape(9, 1, P), wsum2,
        cw1, cw2,
        params['ctx_w1'], col(params['ctx_b1']),
        col(params['ctx_gamma']), col(params['ctx_beta']),
        params['ctx_w2'], col(params['ctx_b2']),
    )

    def full_spec(a):                                         # whole (small) array, resident
        nd = a.ndim
        return pl.BlockSpec(a.shape, lambda b, _nd=nd: (0,) * _nd)

    img_spec = pl.BlockSpec((1, C, P), lambda b: (b, 0, 0))
    in_specs = [img_spec] + [full_spec(a) for a in args[1:]]

    # NOTE(v7x): grid=(B,) "parallel" feeds both TensorCores when B >= 2.  For
    # much larger H*W (whole plane no longer fits the 32 MiB scoped VMEM on
    # v7x) tile along H with a 1-row halo instead of whole-plane blocks.
    out = pl.pallas_call(
        _make_context_res_kernel(C, H, W),
        out_shape=jax.ShapeDtypeStruct((B, C, P), jnp.float32),
        grid_spec=pltpu.PrefetchScalarGridSpec(
            num_scalar_prefetch=0,
            grid=(B,),
            in_specs=in_specs,
            out_specs=pl.BlockSpec((1, C, P), lambda b: (b, 0, 0)),
        ),
        compiler_params=pltpu.CompilerParams(
            dimension_semantics=("parallel",),
            vmem_limit_bytes=32 * 1024 * 1024),
    )(*args)
    return out.reshape(B, C, H, W)


# --------------------------- Pure-JAX reference ------------------------------
def _dwconv3x3_ref(x, w, b):                      # x: (B,C,H,W), w: (C,3,3)
    C = x.shape[1]
    y = jax.lax.conv_general_dilated(
        x, w[:, None, :, :], window_strides=(1, 1),
        padding=((1, 1), (1, 1)),
        dimension_numbers=('NCHW', 'OIHW', 'NCHW'),
        feature_group_count=C)
    return y + b[None, :, None, None]


def reference_forward(params, x):
    x1 = _dwconv3x3_ref(x, params['conv1_w'], params['conv1_b'])
    x2 = jnp.maximum(x1, 0.0)
    ctx = x2.mean(axis=(2, 3))                                   # AdaptiveAvgPool2d(1)
    t = ctx @ params['ctx_w1'].T + params['ctx_b1']              # 1x1 conv C->planes
    mu = t.mean(axis=1, keepdims=True)
    var = ((t - mu) ** 2).mean(axis=1, keepdims=True)
    t = (t - mu) / jnp.sqrt(var + 1e-5) * params['ctx_gamma'] + params['ctx_beta']
    t = jnp.maximum(t, 0.0)
    add = t @ params['ctx_w2'].T + params['ctx_b2']              # 1x1 conv planes->C
    x3 = (x2 + add[:, :, None, None]) + x2                       # ContextBlock(x2) + x2
    x4 = _dwconv3x3_ref(x3, params['conv2_w'], params['conv2_b'])
    return x4 + x


# --------------------------- Parameters --------------------------------------
def init_params(key, n_feats):
    planes = int(n_feats * 0.2)                   # ContextBlock ratio = 0.2
    ks = iter(jax.random.split(key, 16))
    nrm = lambda shape, s=0.1: s * jax.random.normal(next(ks), shape, dtype=jnp.float32)
    return {
        'conv1_w': nrm((n_feats, 3, 3)), 'conv1_b': nrm((n_feats,)),
        'conv2_w': nrm((n_feats, 3, 3)), 'conv2_b': nrm((n_feats,)),
        'ctx_w1': nrm((planes, n_feats)), 'ctx_b1': nrm((planes,)),
        'ctx_gamma': jnp.ones((planes,), jnp.float32),           # LayerNorm defaults
        'ctx_beta': jnp.zeros((planes,), jnp.float32),
        'ctx_w2': nrm((n_feats, planes)), 'ctx_b2': nrm((planes * 0 + n_feats,)),
    }


# --------------------------- Main ---------------------------------------------
if __name__ == "__main__":
    key = jax.random.PRNGKey(0)
    kp, kx = jax.random.split(key)

    N_FEATS, B, H, W = 64, 2, 16, 16
    params = init_params(kp, N_FEATS)
    x = jax.random.normal(kx, (B, N_FEATS, H, W), dtype=jnp.float32)

    out = jax.block_until_ready(context_res_forward(params, x))
    assert out.shape == (B, N_FEATS, H, W)

    ref = reference_forward(params, x)
    max_err = float(jnp.max(jnp.abs(out - ref)))
    if max_err < 1e-3:
        print("KERNEL_OK")
    else:
        print(f"MISMATCH max_err={max_err}")
</pallas_src>

<mosaic_0001>
module attributes {stable_mosaic.version = 11 : i64} {
  func.func @kernel(%arg0: i32, %arg1: memref<1x64x256xf32, #tpu.memory_space<vmem>>, %arg2: memref<9x1x256xf32, #tpu.memory_space<vmem>>, %arg3: memref<64x256xf32, #tpu.memory_space<vmem>>, %arg4: memref<64x10xf32, #tpu.memory_space<vmem>>, %arg5: memref<64x10xf32, #tpu.memory_space<vmem>>, %arg6: memref<12x64xf32, #tpu.memory_space<vmem>>, %arg7: memref<12x1xf32, #tpu.memory_space<vmem>>, %arg8: memref<12x1xf32, #tpu.memory_space<vmem>>, %arg9: memref<12x1xf32, #tpu.memory_space<vmem>>, %arg10: memref<64x12xf32, #tpu.memory_space<vmem>>, %arg11: memref<64x1xf32, #tpu.memory_space<vmem>>, %arg12: memref<1x64x256xf32, #tpu.memory_space<vmem>>) attributes {dimension_semantics = [#tpu.dimension_semantics<parallel>], iteration_bounds = array<i64: 2>, scalar_prefetch = 0 : i64, scratch_operands = 0 : i64, tpu.core_type = #tpu.core_type<tc>, window_params = [{transform_indices = @transform_0, window_bounds = array<i64: 1, 64, 256>}, {pipeline_mode = #tpu.pipeline_mode<synchronous>, transform_indices = @transform_1, window_bounds = array<i64: 9, 1, 256>}, {pipeline_mode = #tpu.pipeline_mode<synchronous>, transform_indices = @transform_2, window_bounds = array<i64: 64, 256>}, {pipeline_mode = #tpu.pipeline_mode<synchronous>, transform_indices = @transform_3, window_bounds = array<i64: 64, 10>}, {pipeline_mode = #tpu.pipeline_mode<synchronous>, transform_indices = @transform_4, window_bounds = array<i64: 64, 10>}, {pipeline_mode = #tpu.pipeline_mode<synchronous>, transform_indices = @transform_5, window_bounds = array<i64: 12, 64>}, {pipeline_mode = #tpu.pipeline_mode<synchronous>, transform_indices = @transform_6, window_bounds = array<i64: 12, 1>}, {pipeline_mode = #tpu.pipeline_mode<synchronous>, transform_indices = @transform_7, window_bounds = array<i64: 12, 1>}, {pipeline_mode = #tpu.pipeline_mode<synchronous>, transform_indices = @transform_8, window_bounds = array<i64: 12, 1>}, {pipeline_mode = #tpu.pipeline_mode<synchronous>, transform_indices = @transform_9, window_bounds = array<i64: 64, 12>}, {pipeline_mode = #tpu.pipeline_mode<synchronous>, transform_indices = @transform_10, window_bounds = array<i64: 64, 1>}, {transform_indices = @transform_11, window_bounds = array<i64: 1, 64, 256>}]} {
    %c0 = arith.constant 0 : index
    %c0_0 = arith.constant 0 : index
    %0 = vector.load %arg4[%c0, %c0_0] : memref<64x10xf32, #tpu.memory_space<vmem>>, vector<64x10xf32>
    %c0_1 = arith.constant 0 : index
    %c0_2 = arith.constant 0 : index
    %c0_3 = arith.constant 0 : index
    %1 = vector.load %arg1[%c0_1, %c0_2, %c0_3] : memref<1x64x256xf32, #tpu.memory_space<vmem>>, vector<1x64x256xf32>
    %2 = vector.shape_cast %1 : vector<1x64x256xf32> to vector<64x256xf32>
    %3 = vector.extract_strided_slice %0 {offsets = [0, 4], sizes = [64, 1], strides = [1, 1]} : vector<64x10xf32> to vector<64x1xf32>
    %4 = vector.broadcast %3 : vector<64x1xf32> to vector<64x256xf32>
    %5 = arith.mulf %4, %2 : vector<64x256xf32>
    %c17_i32 = arith.constant 17 : i32
    %6 = tpu.dynamic_rotate %2 by %c17_i32 dim 1 : vector<64x256xf32>, i32 -> vector<64x256xf32>
    %7 = vector.extract_strided_slice %0 {offsets = [0, 0], sizes = [64, 1], strides = [1, 1]} : vector<64x10xf32> to vector<64x1xf32>
    %c0_4 = arith.constant 0 : index
    %c0_5 = arith.constant 0 : index
    %c0_6 = arith.constant 0 : index
    %8 = vector.load %arg2[%c0_4, %c0_5, %c0_6] : memref<9x1x256xf32, #tpu.memory_space<vmem>>, vector<1x1x256xf32>
    %9 = vector.shape_cast %8 : vector<1x1x256xf32> to vector<1x256xf32>
    %10 = vector.broadcast %9 : vector<1x256xf32> to vector<64x256xf32>
    %11 = arith.mulf %6, %10 : vector<64x256xf32>
    %12 = vector.broadcast %7 : vector<64x1xf32> to vector<64x256xf32>
    %13 = arith.mulf %12, %11 : vector<64x256xf32>
    %14 = arith.addf %5, %13 : vector<64x256xf32>
    %c16_i32 = arith.constant 16 : i32
    %15 = tpu.dynamic_rotate %2 by %c16_i32 dim 1 : vector<64x256xf32>, i32 -> vector<64x256xf32>
    %16 = vector.extract_strided_slice %0 {offsets = [0, 1], sizes = [64, 1], strides = [1, 1]} : vector<64x10xf32> to vector<64x1xf32>
    %c1 = arith.constant 1 : index
    %c0_7 = arith.constant 0 : index
    %c0_8 = arith.constant 0 : index
    %17 = vector.load %arg2[%c1, %c0_7, %c0_8] : memref<9x1x256xf32, #tpu.memory_space<vmem>>, vector<1x1x256xf32>
    %18 = vector.shape_cast %17 : vector<1x1x256xf32> to vector<1x256xf32>
    %19 = vector.broadcast %18 : vector<1x256xf32> to vector<64x256xf32>
    %20 = arith.mulf %15, %19 : vector<64x256xf32>
    %21 = vector.broadcast %16 : vector<64x1xf32> to vector<64x256xf32>
    %22 = arith.mulf %21, %20 : vector<64x256xf32>
    %23 = arith.addf %14, %22 : vector<64x256xf32>
    %c15_i32 = arith.constant 15 : i32
    %24 = tpu.dynamic_rotate %2 by %c15_i32 dim 1 : vector<64x256xf32>, i32 -> vector<64x256xf32>
    %25 = vector.extract_strided_slice %0 {offsets = [0, 2], sizes = [64, 1], strides = [1, 1]} : vector<64x10xf32> to vector<64x1xf32>
    %c2 = arith.constant 2 : index
    %c0_9 = arith.constant 0 : index
    %c0_10 = arith.constant 0 : index
    %26 = vector.load %arg2[%c2, %c0_9, %c0_10] : memref<9x1x256xf32, #tpu.memory_space<vmem>>, vector<1x1x256xf32>
    %27 = vector.shape_cast %26 : vector<1x1x256xf32> to vector<1x256xf32>
    %28 = vector.broadcast %27 : vector<1x256xf32> to vector<64x256xf32>
    %29 = arith.mulf %24, %28 : vector<64x256xf32>
    %30 = vector.broadcast %25 : vector<64x1xf32> to vector<64x256xf32>
    %31 = arith.mulf %30, %29 : vector<64x256xf32>
    %32 = arith.addf %23, %31 : vector<64x256xf32>
    %c1_i32 = arith.constant 1 : i32
    %33 = tpu.dynamic_rotate %2 by %c1_i32 dim 1 : vector<64x256xf32>, i32 -> vector<64x256xf32>
    %34 = vector.extract_strided_slice %0 {offsets = [0, 3], sizes = [64, 1], strides = [1, 1]} : vector<64x10xf32> to vector<64x1xf32>
    %c3 = arith.constant 3 : index
    %c0_11 = arith.constant 0 : index
    %c0_12 = arith.constant 0 : index
    %35 = vector.load %arg2[%c3, %c0_11, %c0_12] : memref<9x1x256xf32, #tpu.memory_space<vmem>>, vector<1x1x256xf32>
    %36 = vector.shape_cast %35 : vector<1x1x256xf32> to vector<1x256xf32>
    %37 = vector.broadcast %36 : vector<1x256xf32> to vector<64x256xf32>
    %38 = arith.mulf %33, %37 : vector<64x256xf32>
    %39 = vector.broadcast %34 : vector<64x1xf32> to vector<64x256xf32>
    %40 = arith.mulf %39, %38 : vector<64x256xf32>
    %41 = arith.addf %32, %40 : vector<64x256xf32>
    %c255_i32 = arith.constant 255 : i32
    %42 = tpu.dynamic_rotate %2 by %c255_i32 dim 1 : vector<64x256xf32>, i32 -> vector<64x256xf32>
    %43 = vector.extract_strided_slice %0 {offsets = [0, 5], sizes = [64, 1], strides = [1, 1]} : vector<64x10xf32> to vector<64x1xf32>
    %c5 = arith.constant 5 : index
    %c0_13 = arith.constant 0 : index
    %c0_14 = arith.constant 0 : index
    %44 = vector.load %arg2[%c5, %c0_13, %c0_14] : memref<9x1x256xf32, #tpu.memory_space<vmem>>, vector<1x1x256xf32>
    %45 = vector.shape_cast %44 : vector<1x1x256xf32> to vector<1x256xf32>
    %46 = vector.broadcast %45 : vector<1x256xf32> to vector<64x256xf32>
    %47 = arith.mulf %42, %46 : vector<64x256xf32>
    %48 = vector.broadcast %43 : vector<64x1xf32> to vector<64x256xf32>
    %49 = arith.mulf %48, %47 : vector<64x256xf32>
    %50 = arith.addf %41, %49 : vector<64x256xf32>
    %c241_i32 = arith.constant 241 : i32
    %51 = tpu.dynamic_rotate %2 by %c241_i32 dim 1 : vector<64x256xf32>, i32 -> vector<64x256xf32>
    %52 = vector.extract_strided_slice %0 {offsets = [0, 6], sizes = [64, 1], strides = [1, 1]} : vector<64x10xf32> to vector<64x1xf32>
    %c6 = arith.constant 6 : index
    %c0_15 = arith.constant 0 : index
    %c0_16 = arith.constant 0 : index
    %53 = vector.load %arg2[%c6, %c0_15, %c0_16] : memref<9x1x256xf32, #tpu.memory_space<vmem>>, vector<1x1x256xf32>
    %54 = vector.shape_cast %53 : vector<1x1x256xf32> to vector<1x256xf32>
    %55 = vector.broadcast %54 : vector<1x256xf32> to vector<64x256xf32>
    %56 = arith.mulf %51, %55 : vector<64x256xf32>
    %57 = vector.broadcast %52 : vector<64x1xf32> to vector<64x256xf32>
    %58 = arith.mulf %57, %56 : vector<64x256xf32>
    %59 = arith.addf %50, %58 : vector<64x256xf32>
    %c240_i32 = arith.constant 240 : i32
    %60 = tpu.dynamic_rotate %2 by %c240_i32 dim 1 : vector<64x256xf32>, i32 -> vector<64x256xf32>
    %61 = vector.extract_strided_slice %0 {offsets = [0, 7], sizes = [64, 1], strides = [1, 1]} : vector<64x10xf32> to vector<64x1xf32>
    %c7 = arith.constant 7 : index
    %c0_17 = arith.constant 0 : index
    %c0_18 = arith.constant 0 : index
    %62 = vector.load %arg2[%c7, %c0_17, %c0_18] : memref<9x1x256xf32, #tpu.memory_space<vmem>>, vector<1x1x256xf32>
    %63 = vector.shape_cast %62 : vector<1x1x256xf32> to vector<1x256xf32>
    %64 = vector.broadcast %63 : vector<1x256xf32> to vector<64x256xf32>
    %65 = arith.mulf %60, %64 : vector<64x256xf32>
    %66 = vector.broadcast %61 : vector<64x1xf32> to vector<64x256xf32>
    %67 = arith.mulf %66, %65 : vector<64x256xf32>
    %68 = arith.addf %59, %67 : vector<64x256xf32>
    %c239_i32 = arith.constant 239 : i32
    %69 = tpu.dynamic_rotate %2 by %c239_i32 dim 1 : vector<64x256xf32>, i32 -> vector<64x256xf32>
    %70 = vector.extract_strided_slice %0 {offsets = [0, 8], sizes = [64, 1], strides = [1, 1]} : vector<64x10xf32> to vector<64x1xf32>
    %c8 = arith.constant 8 : index
    %c0_19 = arith.constant 0 : index
    %c0_20 = arith.constant 0 : index
    %71 = vector.load %arg2[%c8, %c0_19, %c0_20] : memref<9x1x256xf32, #tpu.memory_space<vmem>>, vector<1x1x256xf32>
    %72 = vector.shape_cast %71 : vector<1x1x256xf32> to vector<1x256xf32>
    %73 = vector.broadcast %72 : vector<1x256xf32> to vector<64x256xf32>
    %74 = arith.mulf %69, %73 : vector<64x256xf32>
    %75 = vector.broadcast %70 : vector<64x1xf32> to vector<64x256xf32>
    %76 = arith.mulf %75, %74 : vector<64x256xf32>
    %77 = arith.addf %68, %76 : vector<64x256xf32>
    %78 = vector.extract_strided_slice %0 {offsets = [0, 9], sizes = [64, 1], strides = [1, 1]} : vector<64x10xf32> to vector<64x1xf32>
    %79 = vector.broadcast %78 : vector<64x1xf32> to vector<64x256xf32>
    %80 = arith.addf %77, %79 : vector<64x256xf32>
    %cst = arith.constant 0.000000e+00 : f32
    %81 = vector.broadcast %cst : f32 to vector<64x256xf32>
    %82 = arith.maximumf %80, %81 : vector<64x256xf32>
    %cst_21 = arith.constant dense<0.000000e+00> : vector<64xf32>
    %83 = vector.multi_reduction <add>, %82, %cst_21 [1] : vector<64x256xf32> to vector<64xf32>
    %84 = vector.shape_cast %83 : vector<64xf32> to vector<64x1xf32>
    %cst_22 = arith.constant 3.906250e-03 : f32
    %85 = vector.broadcast %cst_22 : f32 to vector<64x1xf32>
    %86 = arith.mulf %84, %85 : vector<64x1xf32>
    %c0_23 = arith.constant 0 : index
    %c0_24 = arith.constant 0 : index
    %87 = vector.load %arg6[%c0_23, %c0_24] : memref<12x64xf32, #tpu.memory_space<vmem>>, vector<12x64xf32>
    %cst_25 = arith.constant dense<0.000000e+00> : vector<12x1xf32>
    %88 = tpu.matmul %87, %86, %cst_25 {dimension_numbers = #tpu.dot_dimension_numbers<[1], [0], [0], [1], [0, 0, 1, 1], [], []>} : vector<12x64xf32>, vector<64x1xf32>, vector<12x1xf32> -> vector<12x1xf32>
    %c0_26 = arith.constant 0 : index
    %c0_27 = arith.constant 0 : index
    %89 = vector.load %arg7[%c0_26, %c0_27] : memref<12x1xf32, #tpu.memory_space<vmem>>, vector<12x1xf32>
    %90 = arith.addf %88, %89 : vector<12x1xf32>
    %cst_28 = arith.constant dense<0.000000e+00> : vector<1xf32>
    %91 = vector.multi_reduction <add>, %90, %cst_28 [0] : vector<12x1xf32> to vector<1xf32>
    %92 = vector.shape_cast %91 : vector<1xf32> to vector<1x1xf32>
    %cst_29 = arith.constant 1.200000e+01 : f32
    %93 = vector.broadcast %cst_29 : f32 to vector<1x1xf32>
    %94 = arith.divf %92, %93 : vector<1x1xf32>
    %95 = vector.broadcast %94 : vector<1x1xf32> to vector<12x1xf32>
    %96 = arith.subf %90, %95 : vector<12x1xf32>
    %97 = arith.mulf %96, %96 : vector<12x1xf32>
    %cst_30 = arith.constant dense<0.000000e+00> : vector<1xf32>
    %98 = vector.multi_reduction <add>, %97, %cst_30 [0] : vector<12x1xf32> to vector<1xf32>
    %99 = vector.shape_cast %98 : vector<1xf32> to vector<1x1xf32>
    %cst_31 = arith.constant 1.200000e+01 : f32
    %100 = vector.broadcast %cst_31 : f32 to vector<1x1xf32>
    %101 = arith.divf %99, %100 : vector<1x1xf32>
    %102 = vector.broadcast %94 : vector<1x1xf32> to vector<12x1xf32>
    %103 = arith.subf %90, %102 : vector<12x1xf32>
    %cst_32 = arith.constant 9.99999974E-6 : f32
    %104 = vector.broadcast %cst_32 : f32 to vector<1x1xf32>
    %105 = arith.addf %101, %104 : vector<1x1xf32>
    %106 = math.rsqrt %105 : vector<1x1xf32>
    %107 = vector.broadcast %106 : vector<1x1xf32> to vector<12x1xf32>
    %108 = arith.mulf %103, %107 : vector<12x1xf32>
    %c0_33 = arith.constant 0 : index
    %c0_34 = arith.constant 0 : index
    %109 = vector.load %arg8[%c0_33, %c0_34] : memref<12x1xf32, #tpu.memory_space<vmem>>, vector<12x1xf32>
    %110 = arith.mulf %108, %109 : vector<12x1xf32>
    %c0_35 = arith.constant 0 : index
    %c0_36 = arith.constant 0 : index
    %111 = vector.load %arg9[%c0_35, %c0_36] : memref<12x1xf32, #tpu.memory_space<vmem>>, vector<12x1xf32>
    %112 = arith.addf %110, %111 : vector<12x1xf32>
    %cst_37 = arith.constant 0.000000e+00 : f32
    %113 = vector.broadcast %cst_37 : f32 to vector<12x1xf32>
    %114 = arith.maximumf %112, %113 : vector<12x1xf32>
    %c0_38 = arith.constant 0 : index
    %c0_39 = arith.constant 0 : index
    %115 = vector.load %arg10[%c0_38, %c0_39] : memref<64x12xf32, #tpu.memory_space<vmem>>, vector<64x12xf32>
    %cst_40 = arith.constant dense<0.000000e+00> : vector<64x1xf32>
    %116 = tpu.matmul %115, %114, %cst_40 {dimension_numbers = #tpu.dot_dimension_numbers<[1], [0], [0], [1], [0, 0, 1, 1], [], []>} : vector<64x12xf32>, vector<12x1xf32>, vector<64x1xf32> -> vector<64x1xf32>
    %c0_41 = arith.constant 0 : index
    %c0_42 = arith.constant 0 : index
    %117 = vector.load %arg11[%c0_41, %c0_42] : memref<64x1xf32, #tpu.memory_space<vmem>>, vector<64x1xf32>
    %118 = arith.addf %116, %117 : vector<64x1xf32>
    %c0_43 = arith.constant 0 : index
    %c0_44 = arith.constant 0 : index
    %119 = vector.load %arg5[%c0_43, %c0_44] : memref<64x10xf32, #tpu.memory_space<vmem>>, vector<64x10xf32>
    %120 = vector.extract_strided_slice %119 {offsets = [0, 4], sizes = [64, 1], strides = [1, 1]} : vector<64x10xf32> to vector<64x1xf32>
    %121 = vector.broadcast %120 : vector<64x1xf32> to vector<64x256xf32>
    %122 = arith.mulf %121, %82 : vector<64x256xf32>
    %c17_i32_45 = arith.constant 17 : i32
    %123 = tpu.dynamic_rotate %82 by %c17_i32_45 dim 1 : vector<64x256xf32>, i32 -> vector<64x256xf32>
    %124 = vector.extract_strided_slice %119 {offsets = [0, 0], sizes = [64, 1], strides = [1, 1]} : vector<64x10xf32> to vector<64x1xf32>
    %c0_46 = arith.constant 0 : index
    %c0_47 = arith.constant 0 : index
    %c0_48 = arith.constant 0 : index
    %125 = vector.load %arg2[%c0_46, %c0_47, %c0_48] : memref<9x1x256xf32, #tpu.memory_space<vmem>>, vector<1x1x256xf32>
    %126 = vector.shape_cast %125 : vector<1x1x256xf32> to vector<1x256xf32>
    %127 = vector.broadcast %126 : vector<1x256xf32> to vector<64x256xf32>
    %128 = arith.mulf %123, %127 : vector<64x256xf32>
    %129 = vector.broadcast %124 : vector<64x1xf32> to vector<64x256xf32>
    %130 = arith.mulf %129, %128 : vector<64x256xf32>
    %131 = arith.addf %122, %130 : vector<64x256xf32>
    %c16_i32_49 = arith.constant 16 : i32
    %132 = tpu.dynamic_rotate %82 by %c16_i32_49 dim 1 : vector<64x256xf32>, i32 -> vector<64x256xf32>
    %133 = vector.extract_strided_slice %119 {offsets = [0, 1], sizes = [64, 1], strides = [1, 1]} : vector<64x10xf32> to vector<64x1xf32>
    %c1_50 = arith.constant 1 : index
    %c0_51 = arith.constant 0 : index
    %c0_52 = arith.constant 0 : index
    %134 = vector.load %arg2[%c1_50, %c0_51, %c0_52] : memref<9x1x256xf32, #tpu.memory_space<vmem>>, vector<1x1x256xf32>
    %135 = vector.shape_cast %134 : vector<1x1x256xf32> to vector<1x256xf32>
    %136 = vector.broadcast %135 : vector<1x256xf32> to vector<64x256xf32>
    %137 = arith.mulf %132, %136 : vector<64x256xf32>
    %138 = vector.broadcast %133 : vector<64x1xf32> to vector<64x256xf32>
    %139 = arith.mulf %138, %137 : vector<64x256xf32>
    %140 = arith.addf %131, %139 : vector<64x256xf32>
    %c15_i32_53 = arith.constant 15 : i32
    %141 = tpu.dynamic_rotate %82 by %c15_i32_53 dim 1 : vector<64x256xf32>, i32 -> vector<64x256xf32>
    %142 = vector.extract_strided_slice %119 {offsets = [0, 2], sizes = [64, 1], strides = [1, 1]} : vector<64x10xf32> to vector<64x1xf32>
    %c2_54 = arith.constant 2 : index
    %c0_55 = arith.constant 0 : index
    %c0_56 = arith.constant 0 : index
    %143 = vector.load %arg2[%c2_54, %c0_55, %c0_56] : memref<9x1x256xf32, #tpu.memory_space<vmem>>, vector<1x1x256xf32>
    %144 = vector.shape_cast %143 : vector<1x1x256xf32> to vector<1x256xf32>
    %145 = vector.broadcast %144 : vector<1x256xf32> to vector<64x256xf32>
    %146 = arith.mulf %141, %145 : vector<64x256xf32>
    %147 = vector.broadcast %142 : vector<64x1xf32> to vector<64x256xf32>
    %148 = arith.mulf %147, %146 : vector<64x256xf32>
    %149 = arith.addf %140, %148 : vector<64x256xf32>
    %c1_i32_57 = arith.constant 1 : i32
    %150 = tpu.dynamic_rotate %82 by %c1_i32_57 dim 1 : vector<64x256xf32>, i32 -> vector<64x256xf32>
    %151 = vector.extract_strided_slice %119 {offsets = [0, 3], sizes = [64, 1], strides = [1, 1]} : vector<64x10xf32> to vector<64x1xf32>
    %c3_58 = arith.constant 3 : index
    %c0_59 = arith.constant 0 : index
    %c0_60 = arith.constant 0 : index
    %152 = vector.load %arg2[%c3_58, %c0_59, %c0_60] : memref<9x1x256xf32, #tpu.memory_space<vmem>>, vector<1x1x256xf32>
    %153 = vector.shape_cast %152 : vector<1x1x256xf32> to vector<1x256xf32>
    %154 = vector.broadcast %153 : vector<1x256xf32> to vector<64x256xf32>
    %155 = arith.mulf %150, %154 : vector<64x256xf32>
    %156 = vector.broadcast %151 : vector<64x1xf32> to vector<64x256xf32>
    %157 = arith.mulf %156, %155 : vector<64x256xf32>
    %158 = arith.addf %149, %157 : vector<64x256xf32>
    %c255_i32_61 = arith.constant 255 : i32
    %159 = tpu.dynamic_rotate %82 by %c255_i32_61 dim 1 : vector<64x256xf32>, i32 -> vector<64x256xf32>
    %160 = vector.extract_strided_slice %119 {offsets = [0, 5], sizes = [64, 1], strides = [1, 1]} : vector<64x10xf32> to vector<64x1xf32>
    %c5_62 = arith.constant 5 : index
    %c0_63 = arith.constant 0 : index
    %c0_64 = arith.constant 0 : index
    %161 = vector.load %arg2[%c5_62, %c0_63, %c0_64] : memref<9x1x256xf32, #tpu.memory_space<vmem>>, vector<1x1x256xf32>
    %162 = vector.shape_cast %161 : vector<1x1x256xf32> to vector<1x256xf32>
    %163 = vector.broadcast %162 : vector<1x256xf32> to vector<64x256xf32>
    %164 = arith.mulf %159, %163 : vector<64x256xf32>
    %165 = vector.broadcast %160 : vector<64x1xf32> to vector<64x256xf32>
    %166 = arith.mulf %165, %164 : vector<64x256xf32>
    %167 = arith.addf %158, %166 : vector<64x256xf32>
    %c241_i32_65 = arith.constant 241 : i32
    %168 = tpu.dynamic_rotate %82 by %c241_i32_65 dim 1 : vector<64x256xf32>, i32 -> vector<64x256xf32>
    %169 = vector.extract_strided_slice %119 {offsets = [0, 6], sizes = [64, 1], strides = [1, 1]} : vector<64x10xf32> to vector<64x1xf32>
    %c6_66 = arith.constant 6 : index
    %c0_67 = arith.constant 0 : index
    %c0_68 = arith.constant 0 : index
    %170 = vector.load %arg2[%c6_66, %c0_67, %c0_68] : memref<9x1x256xf32, #tpu.memory_space<vmem>>, vector<1x1x256xf32>
    %171 = vector.shape_cast %170 : vector<1x1x256xf32> to vector<1x256xf32>
    %172 = vector.broadcast %171 : vector<1x256xf32> to vector<64x256xf32>
    %173 = arith.mulf %168, %172 : vector<64x256xf32>
    %174 = vector.broadcast %169 : vector<64x1xf32> to vector<64x256xf32>
    %175 = arith.mulf %174, %173 : vector<64x256xf32>
    %176 = arith.addf %167, %175 : vector<64x256xf32>
    %c240_i32_69 = arith.constant 240 : i32
    %177 = tpu.dynamic_rotate %82 by %c240_i32_69 dim 1 : vector<64x256xf32>, i32 -> vector<64x256xf32>
    %178 = vector.extract_strided_slice %119 {offsets = [0, 7], sizes = [64, 1], strides = [1, 1]} : vector<64x10xf32> to vector<64x1xf32>
    %c7_70 = arith.constant 7 : index
    %c0_71 = arith.constant 0 : index
    %c0_72 = arith.constant 0 : index
    %179 = vector.load %arg2[%c7_70, %c0_71, %c0_72] : memref<9x1x256xf32, #tpu.memory_space<vmem>>, vector<1x1x256xf32>
    %180 = vector.shape_cast %179 : vector<1x1x256xf32> to vector<1x256xf32>
    %181 = vector.broadcast %180 : vector<1x256xf32> to vector<64x256xf32>
    %182 = arith.mulf %177, %181 : vector<64x256xf32>
    %183 = vector.broadcast %178 : vector<64x1xf32> to vector<64x256xf32>
    %184 = arith.mulf %183, %182 : vector<64x256xf32>
    %185 = arith.addf %176, %184 : vector<64x256xf32>
    %c239_i32_73 = arith.constant 239 : i32
    %186 = tpu.dynamic_rotate %82 by %c239_i32_73 dim 1 : vector<64x256xf32>, i32 -> vector<64x256xf32>
    %187 = vector.extract_strided_slice %119 {offsets = [0, 8], sizes = [64, 1], strides = [1, 1]} : vector<64x10xf32> to vector<64x1xf32>
    %c8_74 = arith.constant 8 : index
    %c0_75 = arith.constant 0 : index
    %c0_76 = arith.constant 0 : index
    %188 = vector.load %arg2[%c8_74, %c0_75, %c0_76] : memref<9x1x256xf32, #tpu.memory_space<vmem>>, vector<1x1x256xf32>
    %189 = vector.shape_cast %188 : vector<1x1x256xf32> to vector<1x256xf32>
    %190 = vector.broadcast %189 : vector<1x256xf32> to vector<64x256xf32>
    %191 = arith.mulf %186, %190 : vector<64x256xf32>
    %192 = vector.broadcast %187 : vector<64x1xf32> to vector<64x256xf32>
    %193 = arith.mulf %192, %191 : vector<64x256xf32>
    %194 = arith.addf %185, %193 : vector<64x256xf32>
    %cst_77 = arith.constant 2.000000e+00 : f32
    %195 = vector.broadcast %cst_77 : f32 to vector<64x256xf32>
    %196 = arith.mulf %195, %194 : vector<64x256xf32>
    %c0_78 = arith.constant 0 : index
    %c0_79 = arith.constant 0 : index
    %197 = vector.load %arg3[%c0_78, %c0_79] : memref<64x256xf32, #tpu.memory_space<vmem>>, vector<64x256xf32>
    %198 = vector.broadcast %118 : vector<64x1xf32> to vector<64x256xf32>
    %199 = arith.mulf %198, %197 : vector<64x256xf32>
    %200 = arith.addf %196, %199 : vector<64x256xf32>
    %201 = vector.extract_strided_slice %119 {offsets = [0, 9], sizes = [64, 1], strides = [1, 1]} : vector<64x10xf32> to vector<64x1xf32>
    %202 = vector.broadcast %201 : vector<64x1xf32> to vector<64x256xf32>
    %203 = arith.addf %200, %202 : vector<64x256xf32>
    %c0_80 = arith.constant 0 : index
    %c0_81 = arith.constant 0 : index
    %c0_82 = arith.constant 0 : index
    %204 = vector.load %arg1[%c0_80, %c0_81, %c0_82] : memref<1x64x256xf32, #tpu.memory_space<vmem>>, vector<1x64x256xf32>
    %205 = vector.shape_cast %204 : vector<1x64x256xf32> to vector<64x256xf32>
    %206 = arith.addf %203, %205 : vector<64x256xf32>
    %c0_83 = arith.constant 0 : index
    %c0_84 = arith.constant 0 : index
    %c0_85 = arith.constant 0 : index
    %207 = vector.load %arg12[%c0_83, %c0_84, %c0_85] : memref<1x64x256xf32, #tpu.memory_space<vmem>>, vector<1x64x256xf32>
    %208 = vector.shape_cast %207 : vector<1x64x256xf32> to vector<64x256xf32>
    %209 = vector.shape_cast %206 : vector<64x256xf32> to vector<1x64x256xf32>
    tpu.vector_store %arg12[%c0_83, %c0_84, %c0_85], %209 {strides = array<i32>} : memref<1x64x256xf32, #tpu.memory_space<vmem>>, vector<1x64x256xf32>,
    return
  }
  func.func @transform_0(%arg0: i32) -> (i32, i32, i32) {
    %c0_i32 = arith.constant 0 : i32
    %c0_i32_0 = arith.constant 0 : i32
    %c0_i32_1 = arith.constant 0 : i32
    return %arg0, %c0_i32, %c0_i32_0 : i32, i32, i32
  }
  func.func @transform_1(%arg0: i32) -> (i32, i32, i32) {
    %c0_i32 = arith.constant 0 : i32
    %c0_i32_0 = arith.constant 0 : i32
    %c0_i32_1 = arith.constant 0 : i32
    %c0_i32_2 = arith.constant 0 : i32
    return %c0_i32, %c0_i32_0, %c0_i32_1 : i32, i32, i32
  }
  func.func @transform_2(%arg0: i32) -> (i32, i32) {
    %c0_i32 = arith.constant 0 : i32
    %c0_i32_0 = arith.constant 0 : i32
    %c0_i32_1 = arith.constant 0 : i32
    return %c0_i32, %c0_i32_0 : i32, i32
  }
  func.func @transform_3(%arg0: i32) -> (i32, i32) {
    %c0_i32 = arith.constant 0 : i32
    %c0_i32_0 = arith.constant 0 : i32
    %c0_i32_1 = arith.constant 0 : i32
    return %c0_i32, %c0_i32_0 : i32, i32
  }
  func.func @transform_4(%arg0: i32) -> (i32, i32) {
    %c0_i32 = arith.constant 0 : i32
    %c0_i32_0 = arith.constant 0 : i32
    %c0_i32_1 = arith.constant 0 : i32
    return %c0_i32, %c0_i32_0 : i32, i32
  }
  func.func @transform_5(%arg0: i32) -> (i32, i32) {
    %c0_i32 = arith.constant 0 : i32
    %c0_i32_0 = arith.constant 0 : i32
    %c0_i32_1 = arith.constant 0 : i32
    return %c0_i32, %c0_i32_0 : i32, i32
  }
  func.func @transform_6(%arg0: i32) -> (i32, i32) {
    %c0_i32 = arith.constant 0 : i32
    %c0_i32_0 = arith.constant 0 : i32
    %c0_i32_1 = arith.constant 0 : i32
    return %c0_i32, %c0_i32_0 : i32, i32
  }
  func.func @transform_7(%arg0: i32) -> (i32, i32) {
    %c0_i32 = arith.constant 0 : i32
    %c0_i32_0 = arith.constant 0 : i32
    %c0_i32_1 = arith.constant 0 : i32
    return %c0_i32, %c0_i32_0 : i32, i32
  }
  func.func @transform_8(%arg0: i32) -> (i32, i32) {
    %c0_i32 = arith.constant 0 : i32
    %c0_i32_0 = arith.constant 0 : i32
    %c0_i32_1 = arith.constant 0 : i32
    return %c0_i32, %c0_i32_0 : i32, i32
  }
  func.func @transform_9(%arg0: i32) -> (i32, i32) {
    %c0_i32 = arith.constant 0 : i32
    %c0_i32_0 = arith.constant 0 : i32
    %c0_i32_1 = arith.constant 0 : i32
    return %c0_i32, %c0_i32_0 : i32, i32
  }
  func.func @transform_10(%arg0: i32) -> (i32, i32) {
    %c0_i32 = arith.constant 0 : i32
    %c0_i32_0 = arith.constant 0 : i32
    %c0_i32_1 = arith.constant 0 : i32
    return %c0_i32, %c0_i32_0 : i32, i32
  }
  func.func @transform_11(%arg0: i32) -> (i32, i32, i32) {
    %c0_i32 = arith.constant 0 : i32
    %c0_i32_0 = arith.constant 0 : i32
    %c0_i32_1 = arith.constant 0 : i32
    return %arg0, %c0_i32, %c0_i32_0 : i32, i32, i32
  }
}

</mosaic_0001>

<bundles_post_ra>
// kernel: tpu_custom_call.1
= control target key start
LH: loop header
LB: loop body
LE: loop exit
PB: predicated region body
PF: predicated region fallthrough
CT: control target
= control target key end

     0   :  { %16 = vsyncpa [#allocation3], 0  ;;  %s7707_s0 = inlined_call_operand.vmem [shape: f32[2,64,256], index: 0, kind: input, shape index: {}]   ;;  %s7708_s1 = inlined_call_operand.vmem [shape: f32[9,1,256], index: 1, kind: input, shape index: {}]   ;;  %s7709_s2 = inlined_call_operand.hbm [shape: f32[64,256], index: 2, kind: input, shape index: {}]   ;;  %s7710_s3 = inlined_call_operand.vmem [shape: f32[64,10], index: 3, kind: input, shape index: {}]   ;;  %s7711_s4 = inlined_call_operand.vmem [shape: f32[64,10], index: 4, kind: input, shape index: {}]   ;;  %s7712_s5 = inlined_call_operand.vmem [shape: f32[12,64], index: 5, kind: input, shape index: {}]   ;;  %s7713_s6 = inlined_call_operand.vmem [shape: f32[12,1], index: 6, kind: input, shape index: {}]   ;;  %s7714_s7 = inlined_call_operand.vmem [shape: f32[12,1], index: 7, kind: input, shape index: {}]   ;;  %s7715_s8 = inlined_call_operand.vmem [shape: f32[12,1], index: 8, kind: input, shape index: {}]   ;;  %s7716_s9 = inlined_call_operand.vmem [shape: f32[64,12], index: 9, kind: input, shape index: {}]   ;;  %s7717_s10 = inlined_call_operand.vmem [shape: f32[64,1], index: 10, kind: input, shape index: {}]   ;;  %s7718_s11 = inlined_call_operand.hbm [shape: f32[2,64,256], index: 11, kind: output, shape index: {}]  }
   0x1   :  { %17 = vsyncpa [#allocation4], 0 }
   0x2   :  { %19 = vsyncpa [#allocation4 + $0x1], 0  ;;  %s3788_s17 = smov 0   ;;  %s3790_s18 = smov 0  }
   0x3   :  { %s3792_s19 = smov 0   ;;  %s3794_s20 = smov 0  }
   0x4 LB: > { %s3809_s21 = sadd.s32 4294967295, %s3702_s20   ;;  %s3350_s22 = sadd.s32 4294967294, %s3702_s20   ;;  %s3702_s20 = sphi %s3794_s20, %s8590_s20   ;;  %s3698_s19 = sphi %s3792_s19, %s8589_s19   ;;  %s3694_s18 = sphi %s3790_s18, %s8588_s18   ;;  %s3690_s17 = sphi %s3788_s17, %s8587_s17  }
   0x5   : > { %s3813_s23 = sadd.s32 1, %s3702_s20   ;;  %s268_s24 = sadd.s32 1, %s3698_s19 }
   0x6   : > { %s265_s25 = ssub.s32 %s3702_s20, %s3813_s23  ;;  %p278_p0 = scmp.ne.s32.totalorder %s3698_s19, %s3694_s18 }
   0x7   : > { %p266_p1 = scmp.eq.s32.totalorder %s265_s25, 0  ;;  %p279_p2 = scmp.eq.s32.totalorder %s3809_s21, 1 }
   0x8   : > { %p284_p3 = scmp.ne.s32.totalorder %s3694_s18, %s3690_s17  ;;  %p285_p4 = scmp.eq.s32.totalorder %s3350_s22, 1 }
   0x9   : > { %s3824_s26 = scalar_select %p266_p1, %s3698_s19, %s268_s24  }
   0xa   : > { %p3826_p5 = por %p279_p2, %p278_p0  ;;  %p3830_p6 = por %p285_p4, %p284_p3 }
   0xb   : > { %8025 = sst [smem:[#allocation8_spill]] %s3824_s26  ;;  %p3351_p7 = scmp.ge.s32.totalorder %s3702_s20, 1 }
   0xc   : > { %s8026_s27 = scalar_select %p3826_p5, 1, 0 }
   0xd   : > { %s8027_s28 = scalar_select %p3830_p6, 1, 0 }
   0xe   : > { %p292_p8 = scmp.lt.s32.totalorder %s3702_s20, 3  ;;  %p7719_p9 = scmp.eq.s32.totalorder %s3809_s21, 0 }
   0xf   : > { %s3704_s30 = smov [#allocation2]   ;;  %s3608_s16 = scalar_lea.hbm %s7709_s2, 2048 }
  0x10   : > { %p3837_p10 = pnand %p3351_p7, %p292_p8  ;;  %s307_s12 = sshll.u32 %s3704_s30, 4  ;;  %s308_s12 = int_to_ptr.vmem [resolvable:$true] %s307_s12 }
  0x11   : > { %p3609_p13 = scmp.ne.s32.totalorder %s7709_s2, %s3608_s16  ;;  %p3615_p3 = scmp.lt.u32.totalorder %s3608_s16, %s7709_s2 }
  0x12   : > { %s8028_s29 = scalar_select %p3837_p10, 1, 0 }
  0x13   : > { %p3467_p11 = pneg %p3837_p10 }
  0x15   : > { %p3845_p12 = pnand %p7719_p9, %p3467_p11 }
  0x17   : > { %p3610_p0 = pneg %p3845_p12 }
  0x19   : > { %p3611_p1 = pnand %p3610_p0, %p3609_p13 }
  0x1b   : > { %p3612_p2 = pneg %p3611_p1 }
  0x1d   : > { %p3617_p4 = pnand %p3615_p3, %p3612_p2 }
  0x1f   : > { %3620 = shalt.err (!%p3617_p4)
}
  0x20   : > { %s3621_s26 = scalar_lea.vmem %s308_s12, 2048  ;;  %p3629_p9 = scmp.lt.s32.totalorder %s308_s12, %s308_s12 }
  0x21   : > { %p3622_p7 = scmp.ne.s32.totalorder %s308_s12, %s3621_s26  ;;  %p3630_p6 = scmp.lt.s32.totalorder %s3621_s26, %s3621_s26 }
  0x23   : > { %p3624_p8 = pnand %p3622_p7, %p3610_p0  ;;  %p3631_p5 = por %p3630_p6, %p3629_p9 }
  0x25   : > { %p3625_p11 = pneg %p3624_p8 }
  0x27   : > { %p3632_p10 = pnand %p3631_p5, %p3625_p11 }
  0x29   : > { %3635 = shalt.err (!%p3632_p10)
}
  0x2a   : > { %s3705_s14 = smov 256   ;;  %s3706_s15 = smov 16  }
  0x2b   : > { %3470 = dma.hbm_to_vmem [thread:$0]  (!%p3845_p12), %s7709_s2, 2048, %s308_s12, [#allocation3], %s3705_s14, %s3705_s14, %s3706_s15  }
  0x2c   : > { %p8030_p13 = scmp.ne.s32.totalorder %s8028_s29, 0 }
  0x2e   : > { %355 = sbr.rel (%p8030_p13) target bundleno = 1456 (0x5b0), region = 64 }
  0x35   : > { %p8031_p1 = scmp.eq.s32.totalorder %s3809_s21, 0 }
  0x37   : > { %3681 = dma.done.wait (%p8031_p1), [#allocation3], 2048   ;;  %p8032_p0 = pmov %p8031_p1 }
  0x38   : > { %v7730_v0 = vmov 4   ;;  %v3876_v1 = vld [vmem:[%s7710_s3 + $0x10] sm:$0xff]  ;;  %v3881_v2 = vld [vmem:[%s7710_s3] sm:$0xff]  ;;  %p395_p5 = scmp.lt.s32.totalorder %s3809_s21, 1  ;;  %v3889_v3 = vld [vmem:[%s7710_s3 + $0x18] sm:$0xff]  ;;  %v7726_v13 = vmov 0  }
  0x39   : > { %3683 = vsyncadd (%p8032_p0), [#allocation3], 4294965248  ;;  %3534 = vset.pattern.permute.xlu1 %v7730_v0  ;;  %3533 = vset.pattern.permute.xlu0 %v7730_v0  ;;  %v3894_v4 = vld [vmem:[%s7710_s3 + $0x8] sm:$0xff]  ;;  %v3907_v6 = vld [vmem:[%s7710_s3 + $0x20] sm:$0xff]  ;;  %s3710_s26 = smov 16   ;;  %v7728_v26 = vmov 1  }
  0x3a   : > { %436 = vperm.xlu1 %3534, %v3876_v1   ;;  %426 = vperm.xlu0 %3533, %v3881_v2   ;;  %s396_s15 = scalar_select %p395_p5, %s3809_s21, 1  ;;  %v3902_v5 = vld [vmem:[%s7710_s3 + $0x28] sm:$0xff]  ;;  %v3914_v7 = vld [vmem:[%s7710_s3 + $0x38] sm:$0xff]  ;;  %v3919_v8 = vld [vmem:[%s7710_s3 + $0x30] sm:$0xff]  ;;  %v7724_v27 = vmov 2   ;;  %v7722_v44 = vmov 3  }
  0x3b   : > { %8033 = vst [vmem:[#allocation9_spill] sm:$0xff] %v3919_v8  ;;  %s7910_s13 = smov 15   ;;  %s7855_s12 = smov 127   ;;  %vm1717_vm8 = vcmask 523264   ;;  %vm1856_vm9 = vcmask 97280   ;;  %vm1801_vm10 = vcmask 3072  }
  0x3c   : > { %s3382_s29 = sshll.u32 %s396_s15, 7  ;;  %s3708_s15 = smov 17   ;;  %vm1799_vm11 = vcmask 7168   ;;  %vm1881_vm12 = vcmask 1043456   ;;  %vm3725_vm13 = vmmov 1  }
  0x3d   : > { %s3924_s24 = scalar_lea.vmem %s7707_s0, %s3382_s29  ;;  %s7857_s29 = smov 1   ;;  %vm3456_vm14 = vmpackc.low %vm1881_vm12, %vm3725_vm13 }
  0x3e   : > { %441 = vperm.xlu1 %3534, %v3889_v3   ;;  %431 = vperm.xlu0 %3533, %v3894_v4   ;;  %v3929_v9 = vld [vmem:[%s3924_s24 + $0x10] sm:$0xff]  ;;  %v3932_v10 = vld [vmem:[%s3924_s24] sm:$0xff]  ;;  %v3971_v18 = vld [vmem:[%s3924_s24 + $0x18] sm:$0xff]  ;;  %s7852_s16 = smov 113   ;;  %s7850_s25 = smov 112  }
  0x3f   : > { %v3939_v11 = vld [vmem:[%s3924_s24 + $0x30] sm:$0xff]  ;;  %v3942_v12 = vld [vmem:[%s3924_s24 + $0x20] sm:$0xff]  ;;  %v3974_v19 = vld [vmem:[%s3924_s24 + $0x8] sm:$0xff]  ;;  %s7908_s30 = smov 111   ;;  %s8425_s14 = smov 112  }
  0x40   : > { %v3951_v14 = vld [vmem:[%s3924_s24 + $0x50] sm:$0xff]  ;;  %v3954_v15 = vld [vmem:[%s3924_s24 + $0x40] sm:$0xff]  ;;  %v3981_v20 = vld [vmem:[%s3924_s24 + $0x38] sm:$0xff]  ;;  %s3383_s22 = sshll.u32 %s3809_s21, 11  ;;  %p8584_p9 = scmp.ne.s32.totalorder %s8026_s27, 0 }
  0x41   : > { %v3961_v16 = vld [vmem:[%s3924_s24 + $0x70] sm:$0xff]  ;;  %v3964_v17 = vld [vmem:[%s3924_s24 + $0x60] sm:$0xff]  ;;  %v3984_v21 = vld [vmem:[%s3924_s24 + $0x28] sm:$0xff] }
  0x42   : > { %451 = vperm.xlu1 %3534, %v3902_v5   ;;  %446 = vperm.xlu0 %3533, %v3907_v6   ;;  %v3991_v22 = vld [vmem:[%s3924_s24 + $0x58] sm:$0xff]  ;;  %v3994_v23 = vld [vmem:[%s3924_s24 + $0x48] sm:$0xff] }
  0x43   : > { %v4001_v24 = vld [vmem:[%s3924_s24 + $0x78] sm:$0xff]  ;;  %v4004_v25 = vld [vmem:[%s3924_s24 + $0x68] sm:$0xff] }
  0x46   : > { %461 = vperm.xlu1 %3534, %v3914_v7   ;;  %456 = vperm.xlu0 %3533, %v3919_v8  }
  0x4a   : > { %482 = vrot.lane.b32.xlu1 %v3929_v9, %s3708_s15  ;;  %480 = vrot.lane.b32.xlu0 %v3932_v10, %s3708_s15 }
  0x4b   : > { %3536 = vset.pattern.permute.xlu1 %v7726_v13  ;;  %3535 = vset.pattern.permute.xlu0 %v7726_v13 }
  0x4e   : > { %486 = vrot.lane.b32.xlu1 %v3939_v11, %s3708_s15  ;;  %484 = vrot.lane.b32.xlu0 %v3942_v12, %s3708_s15 }
  0x52   : > { %490 = vrot.lane.b32.xlu1 %v3951_v14, %s3708_s15  ;;  %488 = vrot.lane.b32.xlu0 %v3954_v15, %s3708_s15 }
  0x56   : > { %494 = vrot.lane.b32.xlu1 %v3961_v16, %s3708_s15  ;;  %492 = vrot.lane.b32.xlu0 %v3964_v17, %s3708_s15 }
  0x5a   : > { %498 = vrot.lane.b32.xlu1 %v3971_v18, %s3708_s15  ;;  %496 = vrot.lane.b32.xlu0 %v3974_v19, %s3708_s15 }
  0x5e   : > { %502 = vrot.lane.b32.xlu1 %v3981_v20, %s3708_s15  ;;  %500 = vrot.lane.b32.xlu0 %v3984_v21, %s3708_s15 }
  0x62   : > { %506 = vrot.lane.b32.xlu1 %v3991_v22, %s3708_s15  ;;  %504 = vrot.lane.b32.xlu0 %v3994_v23, %s3708_s15 }
  0x66   : > { %510 = vrot.lane.b32.xlu1 %v4001_v24, %s3708_s15  ;;  %508 = vrot.lane.b32.xlu0 %v4004_v25, %s3708_s15 }
  0x6a   : > { %564 = vperm.xlu1 %3536, %v3894_v4   ;;  %560 = vperm.xlu0 %3535, %v3881_v2  }
  0x6e   : > { %568 = vperm.xlu1 %3536, %v3876_v1   ;;  %572 = vperm.xlu0 %3535, %v3889_v3  }
  0x72   : > { %576 = vperm.xlu1 %3536, %v3907_v6   ;;  %580 = vperm.xlu0 %3535, %v3902_v5  }
  0x76   : > { %584 = vperm.xlu1 %3536, %v3919_v8   ;;  %588 = vperm.xlu0 %3535, %v3914_v7  }
  0x7a   : > { %623 = vrot.lane.b32.xlu1 %v3932_v10, %s3710_s26  ;;  %625 = vrot.lane.b32.xlu0 %v3929_v9, %s3710_s26 }
  0x7b   : > { %3537 = vset.pattern.permute.xlu1 %v7728_v26  ;;  %3538 = vset.pattern.permute.xlu0 %v7728_v26  ;;  %v7736_v26 = vmov 5  }
  0x7e   : > { %627 = vrot.lane.b32.xlu1 %v3942_v12, %s3710_s26  ;;  %629 = vrot.lane.b32.xlu0 %v3939_v11, %s3710_s26 }
  0x82   : > { %631 = vrot.lane.b32.xlu1 %v3954_v15, %s3710_s26  ;;  %633 = vrot.lane.b32.xlu0 %v3951_v14, %s3710_s26 }
  0x86   : > { %635 = vrot.lane.b32.xlu1 %v3964_v17, %s3710_s26  ;;  %637 = vrot.lane.b32.xlu0 %v3961_v16, %s3710_s26 }
  0x8a   : > { %639 = vrot.lane.b32.xlu1 %v3974_v19, %s3710_s26  ;;  %641 = vrot.lane.b32.xlu0 %v3971_v18, %s3710_s26 }
  0x8e   : > { %643 = vrot.lane.b32.xlu1 %v3984_v21, %s3710_s26  ;;  %645 = vrot.lane.b32.xlu0 %v3981_v20, %s3710_s26 }
  0x92   : > { %647 = vrot.lane.b32.xlu1 %v3994_v23, %s3710_s26  ;;  %649 = vrot.lane.b32.xlu0 %v3991_v22, %s3710_s26 }
  0x96   : > { %651 = vrot.lane.b32.xlu1 %v4004_v25, %s3710_s26  ;;  %653 = vrot.lane.b32.xlu0 %v4001_v24, %s3710_s26 }
  0x9a   : > { %702 = vperm.xlu1 %3537, %v3881_v2   ;;  %706 = vperm.xlu0 %3538, %v3894_v4  }
  0x9e   : > { %710 = vperm.xlu1 %3537, %v3876_v1   ;;  %718 = vperm.xlu0 %3538, %v3907_v6  }
  0xa2   : > { %714 = vperm.xlu1 %3537, %v3889_v3   ;;  %726 = vperm.xlu0 %3538, %v3919_v8  }
  0xa6   : > { %722 = vperm.xlu1 %3537, %v3902_v5   ;;  %765 = vrot.lane.b32.xlu0 %v3932_v10, %s7910_s13 }
  0xa7   : > { %3539 = vset.pattern.permute.xlu0 %v7724_v27 }
  0xaa   : > { %730 = vperm.xlu1 %3537, %v3914_v7   ;;  %769 = vrot.lane.b32.xlu0 %v3942_v12, %s7910_s13 }
  0xae   : > { %767 = vrot.lane.b32.xlu1 %v3929_v9, %s7910_s13  ;;  %773 = vrot.lane.b32.xlu0 %v3954_v15, %s7910_s13 }
  0xaf   : > { %3540 = vset.pattern.permute.xlu1 %v7724_v27 }
  0xb2   : > { %771 = vrot.lane.b32.xlu1 %v3939_v11, %s7910_s13  ;;  %777 = vrot.lane.b32.xlu0 %v3964_v17, %s7910_s13 }
  0xb6   : > { %775 = vrot.lane.b32.xlu1 %v3951_v14, %s7910_s13  ;;  %781 = vrot.lane.b32.xlu0 %v3974_v19, %s7910_s13 }
  0xb9   : > { %v4078_v28 = vpop.permute.xlu1 %436  ;;  %v4080_v29 = vpop.permute.xlu0 %426 }
  0xba   : > { %779 = vrot.lane.b32.xlu1 %v3961_v16, %s7910_s13  ;;  %785 = vrot.lane.b32.xlu0 %v3984_v21, %s7910_s13 }
  0xbd   : > { %v4086_v30 = vpop.permute.xlu1 %441  ;;  %v4088_v31 = vpop.permute.xlu0 %431 }
  0xbe   : > { %783 = vrot.lane.b32.xlu1 %v3971_v18, %s7910_s13  ;;  %789 = vrot.lane.b32.xlu0 %v3994_v23, %s7910_s13 }
  0xc1   : > { %v4094_v32 = vpop.permute.xlu1 %451  ;;  %v4096_v33 = vpop.permute.xlu0 %446 }
  0xc2   : > { %787 = vrot.lane.b32.xlu1 %v3981_v20, %s7910_s13  ;;  %793 = vrot.lane.b32.xlu0 %v4004_v25, %s7910_s13 }
  0xc5   : > { %v4102_v34 = vpop.permute.xlu1 %461  ;;  %v4104_v35 = vpop.permute.xlu0 %456 }
  0xc6   : > { %791 = vrot.lane.b32.xlu1 %v3991_v22, %s7910_s13  ;;  %844 = vperm.xlu0 %3539, %v3881_v2  }
  0xc9   : > { %v4109_v36 = vpop.permute.xlu1 %482  ;;  %v4111_v37 = vpop.permute.xlu0 %480 }
  0xca   : > { %795 = vrot.lane.b32.xlu1 %v4001_v24, %s7910_s13  ;;  %856 = vperm.xlu0 %3539, %v3889_v3  }
  0xcd   : > { %v4116_v38 = vpop.permute.xlu1 %486  ;;  %v4118_v39 = vpop.permute.xlu0 %484 }
  0xce   : > { %848 = vperm.xlu1 %3540, %v3894_v4   ;;  %864 = vperm.xlu0 %3539, %v3902_v5  }
  0xd1   : > { %v4122_v40 = vpop.permute.xlu1 %490  ;;  %v4124_v41 = vpop.permute.xlu0 %488 }
  0xd2   : > { %852 = vperm.xlu1 %3540, %v3876_v1   ;;  %872 = vperm.xlu0 %3539, %v3914_v7  }
  0xd5   : > { %v4128_v42 = vpop.permute.xlu1 %494  ;;  %v4130_v43 = vpop.permute.xlu0 %492 }
  0xd6   : > { %860 = vperm.xlu1 %3540, %v3907_v6   ;;  %909 = vrot.lane.b32.xlu0 %v3929_v9, %s7857_s29 }
  0xd7   : > { %3542 = vset.pattern.permute.xlu0 %v7722_v44 }
  0xd9   : > { %v4136_v45 = vpop.permute.xlu1 %498  ;;  %v4138_v46 = vpop.permute.xlu0 %496 }
  0xda   : > { %868 = vperm.xlu1 %3540, %v3919_v8   ;;  %913 = vrot.lane.b32.xlu0 %v3939_v11, %s7857_s29 }
  0xdd   : > { %v4143_v47 = vpop.permute.xlu1 %502  ;;  %v4145_v48 = vpop.permute.xlu0 %500 }
  0xde   : > { %907 = vrot.lane.b32.xlu1 %v3932_v10, %s7857_s29  ;;  %917 = vrot.lane.b32.xlu0 %v3951_v14, %s7857_s29 }
  0xdf   : > { %3541 = vset.pattern.permute.xlu1 %v7722_v44 }
  0xe1   : > { %v4152_v49 = vpop.permute.xlu1 %506  ;;  %v4154_v50 = vpop.permute.xlu0 %504 }
  0xe2   : > { %911 = vrot.lane.b32.xlu1 %v3942_v12, %s7857_s29  ;;  %921 = vrot.lane.b32.xlu0 %v3961_v16, %s7857_s29 }
  0xe5   : > { %v4160_v51 = vpop.permute.xlu1 %510  ;;  %v4162_v52 = vpop.permute.xlu0 %508 }
  0xe6   : > { %915 = vrot.lane.b32.xlu1 %v3954_v15, %s7857_s29  ;;  %925 = vrot.lane.b32.xlu0 %v3971_v18, %s7857_s29 }
  0xe9   : > { %v4168_v53 = vpop.permute.xlu1 %564  ;;  %v4170_v54 = vpop.permute.xlu0 %560 }
  0xea   : > { %919 = vrot.lane.b32.xlu1 %v3964_v17, %s7857_s29  ;;  %929 = vrot.lane.b32.xlu0 %v3981_v20, %s7857_s29 }
  0xed   : > { %v4176_v55 = vpop.permute.xlu1 %568  ;;  %v4178_v56 = vpop.permute.xlu0 %572 }
  0xee   : > { %923 = vrot.lane.b32.xlu1 %v3974_v19, %s7857_s29  ;;  %933 = vrot.lane.b32.xlu0 %v3991_v22, %s7857_s29 }
  0xf1   : > { %v4184_v57 = vpop.permute.xlu1 %576  ;;  %v4186_v58 = vpop.permute.xlu0 %580 }
  0xf2   : > { %927 = vrot.lane.b32.xlu1 %v3984_v21, %s7857_s29  ;;  %937 = vrot.lane.b32.xlu0 %v4001_v24, %s7857_s29 }
  0xf5   : > { %v4192_v59 = vpop.permute.xlu1 %584  ;;  %v4194_v60 = vpop.permute.xlu0 %588 }
  0xf6   : > { %8034 = vst [vmem:[#allocation10_spill] sm:$0xff] %v4194_v60  ;;  %931 = vrot.lane.b32.xlu1 %v3994_v23, %s7857_s29  ;;  %990 = vperm.xlu0 %3542, %v3894_v4   ;;  %v4644_v60 = vmul.f32 %v4078_v28, %v3942_v12 }
  0xf9   : > { %v4199_v61 = vpop.permute.xlu1 %623  ;;  %v4201_v62 = vpop.permute.xlu0 %625 }
  0xfa   : > { %8035 = vst [vmem:[#allocation11_spill] sm:$0xff] %v4199_v61  ;;  %8036 = vst [vmem:[#allocation12_spill] sm:$0xff] %v4201_v62  ;;  %935 = vrot.lane.b32.xlu1 %v4004_v25, %s7857_s29  ;;  %1002 = vperm.xlu0 %3542, %v3907_v6   ;;  %v8049_v62 = vmov 5  }
  0xfd   : > { %v4206_v63 = vpop.permute.xlu1 %627  ;;  %v4208_v44 = vpop.permute.xlu0 %629 }
  0xfe   : > { %8037 = vst [vmem:[#allocation13_spill] sm:$0xff] %v4206_v63  ;;  %8038 = vst [vmem:[#allocation14_spill] sm:$0xff] %v4208_v44  ;;  %986 = vperm.xlu1 %3541, %v3881_v2   ;;  %1010 = vperm.xlu0 %3542, %v3919_v8  }
 0x101   : > { %v4212_v27 = vpop.permute.xlu1 %631  ;;  %v4214_v13 = vpop.permute.xlu0 %633 }
 0x102   : > { %8039 = vst [vmem:[#allocation15_spill] sm:$0xff] %v4212_v27  ;;  %8040 = vst [vmem:[#allocation16_spill] sm:$0xff] %v4214_v13  ;;  %994 = vperm.xlu1 %3541, %v3876_v1   ;;  %1049 = vrot.lane.b32.xlu0 %v3932_v10, %s7855_s12 }
 0x103   : > { %3543 = vset.pattern.permute.xlu0 %v7736_v26 }
 0x105   : > { %v4220_v0 = vpop.permute.xlu1 %635  ;;  %v4222_v44 = vpop.permute.xlu0 %637 }
 0x106   : > { %8041 = vst [vmem:[#allocation17_spill] sm:$0xff] %v4220_v0  ;;  %8042 = vst [vmem:[#allocation18_spill] sm:$0xff] %v4222_v44  ;;  %998 = vperm.xlu1 %3541, %v3889_v3   ;;  %1053 = vrot.lane.b32.xlu0 %v3942_v12, %s7855_s12 }
 0x109   : > { %v4227_v27 = vpop.permute.xlu1 %639  ;;  %v4229_v13 = vpop.permute.xlu0 %641 }
 0x10a   : > { %8043 = vst [vmem:[#allocation19_spill] sm:$0xff] %v4227_v27  ;;  %8044 = vst [vmem:[#allocation20_spill] sm:$0xff] %v4229_v13  ;;  %1006 = vperm.xlu1 %3541, %v3902_v5   ;;  %1057 = vrot.lane.b32.xlu0 %v3954_v15, %s7855_s12 }
 0x10d   : > { %v4234_v63 = vpop.permute.xlu1 %643  ;;  %v4236_v26 = vpop.permute.xlu0 %645 }
 0x10e   : > { %8045 = vst [vmem:[#allocation21_spill] sm:$0xff] %v4234_v63  ;;  %8046 = vst [vmem:[#allocation22_spill] sm:$0xff] %v4236_v26  ;;  %1014 = vperm.xlu1 %3541, %v3914_v7   ;;  %1061 = vrot.lane.b32.xlu0 %v3964_v17, %s7855_s12 }
 0x111   : > { %v4241_v44 = vpop.permute.xlu1 %647  ;;  %v4243_v0 = vpop.permute.xlu0 %649 }
 0x112   : > { %8047 = vst [vmem:[#allocation23_spill] sm:$0xff] %v4241_v44  ;;  %8048 = vst [vmem:[#allocation24_spill] sm:$0xff] %v4243_v0  ;;  %1051 = vrot.lane.b32.xlu1 %v3929_v9, %s7855_s12  ;;  %1065 = vrot.lane.b32.xlu0 %v3974_v19, %s7855_s12 }
 0x113   : > { %3544 = vset.pattern.permute.xlu1 %v8049_v62 }
 0x115   : > { %v4250_v63 = vpop.permute.xlu1 %651  ;;  %v4252_v26 = vpop.permute.xlu0 %653 }
 0x116   : > { %8050 = vst [vmem:[#allocation25_spill] sm:$0xff] %v4250_v63  ;;  %8051 = vst [vmem:[#allocation26_spill] sm:$0xff] %v4252_v26  ;;  %1055 = vrot.lane.b32.xlu1 %v3939_v11, %s7855_s12  ;;  %1069 = vrot.lane.b32.xlu0 %v3984_v21, %s7855_s12 }
 0x119   : > { %v4258_v44 = vpop.permute.xlu1 %702  ;;  %v4260_v0 = vpop.permute.xlu0 %706 }
 0x11a   : > { %8052 = vst [vmem:[#allocation27_spill] sm:$0xff] %v4258_v44  ;;  %8053 = vst [vmem:[#allocation28_spill] sm:$0xff] %v4260_v0  ;;  %1059 = vrot.lane.b32.xlu1 %v3951_v14, %s7855_s12  ;;  %1073 = vrot.lane.b32.xlu0 %v3994_v23, %s7855_s12 }
 0x11d   : > { %v4266_v62 = vpop.permute.xlu1 %710  ;;  %v4268_v63 = vpop.permute.xlu0 %718 }
 0x11e   : > { %8054 = vst [vmem:[#allocation29_spill] sm:$0xff] %v4266_v62  ;;  %8055 = vst [vmem:[#allocation30_spill] sm:$0xff] %v4268_v63  ;;  %1063 = vrot.lane.b32.xlu1 %v3961_v16, %s7855_s12  ;;  %1077 = vrot.lane.b32.xlu0 %v4004_v25, %s7855_s12 }
 0x121   : > { %v4274_v26 = vpop.permute.xlu1 %714  ;;  %v4276_v44 = vpop.permute.xlu0 %726 }
 0x122   : > { %8056 = vst [vmem:[#allocation31_spill] sm:$0xff] %v4274_v26  ;;  %8057 = vst [vmem:[#allocation32_spill] sm:$0xff] %v4276_v44  ;;  %1067 = vrot.lane.b32.xlu1 %v3971_v18, %s7855_s12  ;;  %1128 = vperm.xlu0 %3543, %v3881_v2  }
 0x125   : > { %v4281_v0 = vpop.permute.xlu1 %722  ;;  %v4283_v62 = vpop.permute.xlu0 %765 }
 0x126   : > { %8058 = vst [vmem:[#allocation33_spill] sm:$0xff] %v4281_v0  ;;  %8059 = vst [vmem:[#allocation34_spill] sm:$0xff] %v4283_v62  ;;  %1071 = vrot.lane.b32.xlu1 %v3981_v20, %s7855_s12  ;;  %1140 = vperm.xlu0 %3543, %v3889_v3  }
 0x129   : > { %v4288_v63 = vpop.permute.xlu1 %730  ;;  %v4290_v13 = vpop.permute.xlu0 %769 }
 0x12a   : > { %8060 = vst [vmem:[#allocation35_spill] sm:$0xff] %v4288_v63  ;;  %8061 = vst [vmem:[#allocation36_spill] sm:$0xff] %v4290_v13  ;;  %1075 = vrot.lane.b32.xlu1 %v3991_v22, %s7855_s12  ;;  %1148 = vperm.xlu0 %3543, %v3902_v5   ;;  %v7762_v13 = vmov 6  }
 0x12d   : > { %v4295_v44 = vpop.permute.xlu1 %767  ;;  %v4297_v26 = vpop.permute.xlu0 %773 }
 0x12e   : > { %8062 = vst [vmem:[#allocation37_spill] sm:$0xff] %v4295_v44  ;;  %8063 = vst [vmem:[#allocation38_spill] sm:$0xff] %v4297_v26  ;;  %1079 = vrot.lane.b32.xlu1 %v4001_v24, %s7855_s12  ;;  %1156 = vperm.xlu0 %3543, %v3914_v7  }
 0x131   : > { %v4302_v62 = vpop.permute.xlu1 %771  ;;  %v4304_v0 = vpop.permute.xlu0 %777 }
 0x132   : > { %8064 = vst [vmem:[#allocation39_spill] sm:$0xff] %v4302_v62  ;;  %8065 = vst [vmem:[#allocation40_spill] sm:$0xff] %v4304_v0  ;;  %1132 = vperm.xlu1 %3544, %v3894_v4   ;;  %1193 = vrot.lane.b32.xlu0 %v3929_v9, %s7852_s16 }
 0x133   : > { %3546 = vset.pattern.permute.xlu0 %v7762_v13 }
 0x135   : > { %v4310_v44 = vpop.permute.xlu1 %775  ;;  %v4312_v26 = vpop.permute.xlu0 %781 }
 0x136   : > { %8066 = vst [vmem:[#allocation41_spill] sm:$0xff] %v4310_v44  ;;  %8067 = vst [vmem:[#allocation42_spill] sm:$0xff] %v4312_v26  ;;  %1136 = vperm.xlu1 %3544, %v3876_v1   ;;  %1197 = vrot.lane.b32.xlu0 %v3939_v11, %s7852_s16 }
 0x139   : > { %v4317_v62 = vpop.permute.xlu1 %779  ;;  %v4319_v0 = vpop.permute.xlu0 %785 }
 0x13a   : > { %8068 = vst [vmem:[#allocation43_spill] sm:$0xff] %v4317_v62  ;;  %8069 = vst [vmem:[#allocation44_spill] sm:$0xff] %v4319_v0  ;;  %1144 = vperm.xlu1 %3544, %v3907_v6   ;;  %1201 = vrot.lane.b32.xlu0 %v3951_v14, %s7852_s16  ;;  %v8074_v62 = vmov 6  }
 0x13d   : > { %v4324_v63 = vpop.permute.xlu1 %783  ;;  %v4326_v13 = vpop.permute.xlu0 %789 }
 0x13e   : > { %8070 = vst [vmem:[#allocation45_spill] sm:$0xff] %v4324_v63  ;;  %8071 = vst [vmem:[#allocation46_spill] sm:$0xff] %v4326_v13  ;;  %1152 = vperm.xlu1 %3544, %v3919_v8   ;;  %1205 = vrot.lane.b32.xlu0 %v3961_v16, %s7852_s16 }
 0x141   : > { %v4331_v44 = vpop.permute.xlu1 %787  ;;  %v4333_v26 = vpop.permute.xlu0 %793 }
 0x142   : > { %8072 = vst [vmem:[#allocation47_spill] sm:$0xff] %v4331_v44  ;;  %8073 = vst [vmem:[#allocation48_spill] sm:$0xff] %v4333_v26  ;;  %1191 = vrot.lane.b32.xlu1 %v3932_v10, %s7852_s16  ;;  %1209 = vrot.lane.b32.xlu0 %v3971_v18, %s7852_s16 }
 0x143   : > { %3545 = vset.pattern.permute.xlu1 %v8074_v62 }
 0x145   : > { %v4340_v63 = vpop.permute.xlu1 %791  ;;  %v4342_v13 = vpop.permute.xlu0 %844 }
 0x146   : > { %8075 = vst [vmem:[#allocation49_spill] sm:$0xff] %v4340_v63  ;;  %8076 = vst [vmem:[#allocation50_spill] sm:$0xff] %v4342_v13  ;;  %1195 = vrot.lane.b32.xlu1 %v3942_v12, %s7852_s16  ;;  %1213 = vrot.lane.b32.xlu0 %v3981_v20, %s7852_s16 }
 0x149   : > { %v4348_v44 = vpop.permute.xlu1 %795  ;;  %v4350_v26 = vpop.permute.xlu0 %856 }
 0x14a   : > { %8077 = vst [vmem:[#allocation51_spill] sm:$0xff] %v4348_v44  ;;  %8078 = vst [vmem:[#allocation52_spill] sm:$0xff] %v4350_v26  ;;  %1199 = vrot.lane.b32.xlu1 %v3954_v15, %s7852_s16  ;;  %1217 = vrot.lane.b32.xlu0 %v3991_v22, %s7852_s16 }
 0x14d   : > { %v4356_v62 = vpop.permute.xlu1 %848  ;;  %v4358_v63 = vpop.permute.xlu0 %864 }
 0x14e   : > { %8079 = vst [vmem:[#allocation53_spill] sm:$0xff] %v4356_v62  ;;  %8080 = vst [vmem:[#allocation54_spill] sm:$0xff] %v4358_v63  ;;  %1203 = vrot.lane.b32.xlu1 %v3964_v17, %s7852_s16  ;;  %1221 = vrot.lane.b32.xlu0 %v4001_v24, %s7852_s16 }
 0x151   : > { %v4364_v13 = vpop.permute.xlu1 %852  ;;  %v4366_v44 = vpop.permute.xlu0 %872 }
 0x152   : > { %8081 = vst [vmem:[#allocation55_spill] sm:$0xff] %v4364_v13  ;;  %8082 = vst [vmem:[#allocation56_spill] sm:$0xff] %v4366_v44  ;;  %1207 = vrot.lane.b32.xlu1 %v3974_v19, %s7852_s16  ;;  %1274 = vperm.xlu0 %3546, %v3894_v4  }
 0x155   : > { %v4371_v26 = vpop.permute.xlu1 %860  ;;  %v4373_v62 = vpop.permute.xlu0 %909 }
 0x156   : > { %8083 = vst [vmem:[#allocation57_spill] sm:$0xff] %v4371_v26  ;;  %8084 = vst [vmem:[#allocation58_spill] sm:$0xff] %v4373_v62  ;;  %1211 = vrot.lane.b32.xlu1 %v3984_v21, %s7852_s16  ;;  %1286 = vperm.xlu0 %3546, %v3907_v6   ;;  %v7786_v62 = vmov 7  }
 0x159   : > { %v4378_v63 = vpop.permute.xlu1 %868  ;;  %v4380_v0 = vpop.permute.xlu0 %913 }
 0x15a   : > { %8085 = vst [vmem:[#allocation59_spill] sm:$0xff] %v4378_v63  ;;  %8086 = vst [vmem:[#allocation60_spill] sm:$0xff] %v4380_v0  ;;  %1215 = vrot.lane.b32.xlu1 %v3994_v23, %s7852_s16  ;;  %1294 = vperm.xlu0 %3546, %v3919_v8  }
 0x15d   : > { %v4385_v44 = vpop.permute.xlu1 %907  ;;  %v4387_v13 = vpop.permute.xlu0 %917 }
 0x15e   : > { %8087 = vst [vmem:[#allocation61_spill] sm:$0xff] %v4385_v44  ;;  %8088 = vst [vmem:[#allocation62_spill] sm:$0xff] %v4387_v13  ;;  %1219 = vrot.lane.b32.xlu1 %v4004_v25, %s7852_s16  ;;  %1333 = vrot.lane.b32.xlu0 %v3932_v10, %s7850_s25  ;;  %s8375_s16 = smov 1  }
 0x15f   : > { %3547 = vset.pattern.permute.xlu0 %v7786_v62 }
 0x161   : > { %v4394_v63 = vpop.permute.xlu1 %911  ;;  %v4396_v0 = vpop.permute.xlu0 %921 }
 0x162   : > { %8089 = vst [vmem:[#allocation63_spill] sm:$0xff] %v4394_v63  ;;  %8090 = vst [vmem:[#allocation64_spill] sm:$0xff] %v4396_v0  ;;  %1270 = vperm.xlu1 %3545, %v3881_v2   ;;  %1337 = vrot.lane.b32.xlu0 %v3942_v12, %s7850_s25 }
 0x165   : > { %v4401_v13 = vpop.permute.xlu1 %915  ;;  %v4403_v44 = vpop.permute.xlu0 %925 }
 0x166   : > { %8091 = vst [vmem:[#allocation65_spill] sm:$0xff] %v4401_v13  ;;  %8092 = vst [vmem:[#allocation66_spill] sm:$0xff] %v4403_v44  ;;  %1278 = vperm.xlu1 %3545, %v3876_v1   ;;  %1341 = vrot.lane.b32.xlu0 %v3954_v15, %s7850_s25 }
 0x169   : > { %v4408_v26 = vpop.permute.xlu1 %919  ;;  %v4410_v62 = vpop.permute.xlu0 %929 }
 0x16a   : > { %8093 = vst [vmem:[#allocation67_spill] sm:$0xff] %v4408_v26  ;;  %8094 = vst [vmem:[#allocation68_spill] sm:$0xff] %v4410_v62  ;;  %1282 = vperm.xlu1 %3545, %v3889_v3   ;;  %1345 = vrot.lane.b32.xlu0 %v3964_v17, %s7850_s25 }
 0x16d   : > { %v4415_v0 = vpop.permute.xlu1 %923  ;;  %v4417_v63 = vpop.permute.xlu0 %933 }
 0x16e   : > { %8095 = vst [vmem:[#allocation69_spill] sm:$0xff] %v4415_v0  ;;  %8096 = vst [vmem:[#allocation70_spill] sm:$0xff] %v4417_v63  ;;  %1290 = vperm.xlu1 %3545, %v3902_v5   ;;  %1349 = vrot.lane.b32.xlu0 %v3974_v19, %s7850_s25  ;;  %v8101_v63 = vmov 7  }
 0x171   : > { %v4422_v13 = vpop.permute.xlu1 %927  ;;  %v4424_v44 = vpop.permute.xlu0 %937 }
 0x172   : > { %8097 = vst [vmem:[#allocation71_spill] sm:$0xff] %v4422_v13  ;;  %8098 = vst [vmem:[#allocation72_spill] sm:$0xff] %v4424_v44  ;;  %1298 = vperm.xlu1 %3545, %v3914_v7   ;;  %1353 = vrot.lane.b32.xlu0 %v3984_v21, %s7850_s25 }
 0x175   : > { %v4429_v26 = vpop.permute.xlu1 %931  ;;  %v4431_v62 = vpop.permute.xlu0 %990 }
 0x176   : > { %8099 = vst [vmem:[#allocation73_spill] sm:$0xff] %v4429_v26  ;;  %8100 = vst [vmem:[#allocation74_spill] sm:$0xff] %v4431_v62  ;;  %1335 = vrot.lane.b32.xlu1 %v3929_v9, %s7850_s25  ;;  %1357 = vrot.lane.b32.xlu0 %v3994_v23, %s7850_s25 }
 0x177   : > { %3548 = vset.pattern.permute.xlu1 %v8101_v63 }
 0x179   : > { %v4438_v13 = vpop.permute.xlu1 %935  ;;  %v4440_v44 = vpop.permute.xlu0 %1002 }
 0x17a   : > { %8102 = vst [vmem:[#allocation75_spill] sm:$0xff] %v4438_v13  ;;  %8103 = vst [vmem:[#allocation76_spill] sm:$0xff] %v4440_v44  ;;  %1339 = vrot.lane.b32.xlu1 %v3939_v11, %s7850_s25  ;;  %1361 = vrot.lane.b32.xlu0 %v4004_v25, %s7850_s25 }
 0x17d   : > { %v4446_v0 = vpop.permute.xlu1 %986  ;;  %v4448_v62 = vpop.permute.xlu0 %1010 }
 0x17e   : > { %8104 = vst [vmem:[#allocation77_spill] sm:$0xff] %v4446_v0  ;;  %8105 = vst [vmem:[#allocation78_spill] sm:$0xff] %v4448_v62  ;;  %1343 = vrot.lane.b32.xlu1 %v3951_v14, %s7850_s25  ;;  %1412 = vperm.xlu0 %3547, %v3881_v2  }
 0x181   : > { %v4453_v63 = vpop.permute.xlu1 %994  ;;  %v4455_v13 = vpop.permute.xlu0 %1049 }
 0x182   : > { %8106 = vst [vmem:[#allocation79_spill] sm:$0xff] %v4453_v63  ;;  %8107 = vst [vmem:[#allocation80_spill] sm:$0xff] %v4455_v13  ;;  %1347 = vrot.lane.b32.xlu1 %v3961_v16, %s7850_s25  ;;  %1424 = vperm.xlu0 %3547, %v3889_v3  }
 0x185   : > { %v4460_v44 = vpop.permute.xlu1 %998  ;;  %v4462_v26 = vpop.permute.xlu0 %1053 }
 0x186   : > { %8108 = vst [vmem:[#allocation81_spill] sm:$0xff] %v4460_v44  ;;  %8109 = vst [vmem:[#allocation82_spill] sm:$0xff] %v4462_v26  ;;  %1351 = vrot.lane.b32.xlu1 %v3971_v18, %s7850_s25  ;;  %1432 = vperm.xlu0 %3547, %v3902_v5   ;;  %v7812_v26 = vmov 8  }
 0x189   : > { %v4467_v62 = vpop.permute.xlu1 %1006  ;;  %v4469_v0 = vpop.permute.xlu0 %1057 }
 0x18a   : > { %8110 = vst [vmem:[#allocation83_spill] sm:$0xff] %v4467_v62  ;;  %8111 = vst [vmem:[#allocation84_spill] sm:$0xff] %v4469_v0  ;;  %1355 = vrot.lane.b32.xlu1 %v3981_v20, %s7850_s25  ;;  %1440 = vperm.xlu0 %3547, %v3914_v7  }
 0x18d   : > { %v4474_v13 = vpop.permute.xlu1 %1014  ;;  %v4476_v63 = vpop.permute.xlu0 %1061 }
 0x18e   : > { %8112 = vst [vmem:[#allocation85_spill] sm:$0xff] %v4474_v13  ;;  %8113 = vst [vmem:[#allocation86_spill] sm:$0xff] %v4476_v63  ;;  %1359 = vrot.lane.b32.xlu1 %v3991_v22, %s7850_s25  ;;  %1477 = vrot.lane.b32.xlu0 %v3929_v9, %s7908_s30 }
 0x18f   : > { %3550 = vset.pattern.permute.xlu0 %v7812_v26 }
 0x191   : > { %v4483_v0 = vpop.permute.xlu1 %1051  ;;  %v4485_v62 = vpop.permute.xlu0 %1065 }
 0x192   : > { %8114 = vst [vmem:[#allocation87_spill] sm:$0xff] %v4483_v0  ;;  %8115 = vst [vmem:[#allocation88_spill] sm:$0xff] %v4485_v62  ;;  %1363 = vrot.lane.b32.xlu1 %v4001_v24, %s7850_s25  ;;  %1558 = vperm.xlu0 %3550, %v3894_v4   ;;  %s8386_s25 = smov 127  }
 0x195   : > { %v4490_v63 = vpop.permute.xlu1 %1055  ;;  %v4492_v13 = vpop.permute.xlu0 %1069 }
 0x196   : > { %8116 = vst [vmem:[#allocation89_spill] sm:$0xff] %v4490_v63  ;;  %8117 = vst [vmem:[#allocation90_spill] sm:$0xff] %v4492_v13  ;;  %1416 = vperm.xlu1 %3548, %v3894_v4   ;;  %1562 = vperm.xlu0 %3550, %v3876_v1  }
 0x199   : > { %v4496_v44 = vpop.permute.xlu1 %1059  ;;  %v4498_v26 = vpop.permute.xlu0 %1073 }
 0x19a   : > { %8118 = vst [vmem:[#allocation91_spill] sm:$0xff] %v4496_v44  ;;  %8119 = vst [vmem:[#allocation92_spill] sm:$0xff] %v4498_v26  ;;  %1420 = vperm.xlu1 %3548, %v3876_v1   ;;  %1481 = vrot.lane.b32.xlu0 %v3939_v11, %s7908_s30 }
 0x19d   : > { %v4503_v0 = vpop.permute.xlu1 %1063  ;;  %v4505_v62 = vpop.permute.xlu0 %1077 }
 0x19e   : > { %8120 = vst [vmem:[#allocation93_spill] sm:$0xff] %v4503_v0  ;;  %8121 = vst [vmem:[#allocation94_spill] sm:$0xff] %v4505_v62  ;;  %1428 = vperm.xlu1 %3548, %v3907_v6   ;;  %1497 = vrot.lane.b32.xlu0 %v3981_v20, %s7908_s30  ;;  %v8126_v62 = vmov 8  }
 0x1a1   : > { %v4510_v13 = vpop.permute.xlu1 %1067  ;;  %v4512_v63 = vpop.permute.xlu0 %1128 }
 0x1a2   : > { %8122 = vst [vmem:[#allocation95_spill] sm:$0xff] %v4510_v13  ;;  %8123 = vst [vmem:[#allocation96_spill] sm:$0xff] %v4512_v63  ;;  %1436 = vperm.xlu1 %3548, %v3919_v8   ;;  %1574 = vperm.xlu0 %3550, %v3902_v5  }
 0x1a5   : > { %v4516_v44 = vpop.permute.xlu1 %1071  ;;  %v4518_v26 = vpop.permute.xlu0 %1140 }
 0x1a6   : > { %8124 = vst [vmem:[#allocation97_spill] sm:$0xff] %v4516_v44  ;;  %8125 = vst [vmem:[#allocation98_spill] sm:$0xff] %v4518_v26  ;;  %1475 = vrot.lane.b32.xlu1 %v3932_v10, %s7908_s30  ;;  %1483 = vrot.lane.b32.xlu0 %v3954_v15, %s7908_s30 }
 0x1a7   : > { %3549 = vset.pattern.permute.xlu1 %v8126_v62 }
 0x1a9   : > { %v4525_v0 = vpop.permute.xlu1 %1075  ;;  %v4527_v13 = vpop.permute.xlu0 %1148 }
 0x1aa   : > { %8127 = vst [vmem:[#allocation99_spill] sm:$0xff] %v4525_v0  ;;  %8128 = vst [vmem:[#allocation100_spill] sm:$0xff] %v4527_v13  ;;  %1554 = vperm.xlu1 %3549, %v3881_v2   ;;  %1499 = vrot.lane.b32.xlu0 %v3994_v23, %s7908_s30  ;;  %v7834_v13 = vmov 9  }
 0x1ad   : > { %v4532_v63 = vpop.permute.xlu1 %1079  ;;  %v4534_v26 = vpop.permute.xlu0 %1156 }
 0x1ae   : > { %8129 = vst [vmem:[#allocation101_spill] sm:$0xff] %v4532_v63  ;;  %8130 = vst [vmem:[#allocation102_spill] sm:$0xff] %v4534_v26  ;;  %1491 = vrot.lane.b32.xlu1 %v3974_v19, %s7908_s30  ;;  %1578 = vperm.xlu0 %3550, %v3919_v8  }
 0x1b1   : > { %v4539_v44 = vpop.permute.xlu1 %1132  ;;  %v4541_v61 = vpop.permute.xlu0 %1193 }
 0x1b2   : > { %8131 = vst [vmem:[#allocation103_spill] sm:$0xff] %v4539_v44  ;;  %8132 = vst [vmem:[#allocation104_spill] sm:$0xff] %v4541_v61  ;;  %1493 = vrot.lane.b32.xlu1 %v3971_v18, %s7908_s30  ;;  %3554 = vset.pattern.permute.xlu0 %v7834_v13  ;;  %v8146_v61 = vmov 9  }
 0x1b3   : > { %1618 = vperm.xlu0 %3554, %v3881_v2  }
 0x1b5   : > { %v4547_v63 = vpop.permute.xlu1 %1136  ;;  %v4549_v26 = vpop.permute.xlu0 %1197 }
 0x1b6   : > { %8133 = vst [vmem:[#allocation105_spill] sm:$0xff] %v4547_v63  ;;  %8134 = vst [vmem:[#allocation106_spill] sm:$0xff] %v4549_v26  ;;  %1566 = vperm.xlu1 %3549, %v3889_v3  }
 0x1b7   : > { %1634 = vperm.xlu0 %3554, %v3907_v6  }
 0x1b9   : > { %v4553_v0 = vpop.permute.xlu1 %1144  ;;  %v4555_v44 = vpop.permute.xlu0 %1201 }
 0x1ba   : > { %8135 = vst [vmem:[#allocation107_spill] sm:$0xff] %v4553_v0  ;;  %8136 = vst [vmem:[#allocation108_spill] sm:$0xff] %v4555_v44  ;;  %3551 = vset.pattern.permute.xlu1 %v7834_v13 }
 0x1bb   : > { %1622 = vperm.xlu1 %3551, %v3894_v4   ;;  %1489 = vrot.lane.b32.xlu0 %v3961_v16, %s7908_s30 }
 0x1bd   : > { %v4561_v2 = vpop.permute.xlu1 %1152  ;;  %v4563_v63 = vpop.permute.xlu0 %1205 }
 0x1be   : > { %8137 = vst [vmem:[#allocation109_spill] sm:$0xff] %v4561_v2  ;;  %8138 = vst [vmem:[#allocation110_spill] sm:$0xff] %v4563_v63  ;;  %v8143_v63 = vmov 4  }
 0x1bf   : > { %1479 = vrot.lane.b32.xlu1 %v3942_v12, %s7908_s30  ;;  %1505 = vrot.lane.b32.xlu0 %v4001_v24, %s7908_s30  ;;  %v4667_v12 = vmul.f32 %v4086_v30, %v3981_v20  ;;  %v4698_v20 = vmul.f32 %v4094_v32, %v3991_v22 }
 0x1c0   : > { %3552 = vset.pattern.permute.xlu1 %v8126_v62 }
 0x1c1   : > { %v4570_v44 = vpop.permute.xlu1 %1191  ;;  %v4572_v13 = vpop.permute.xlu0 %1209 }
 0x1c2   : > { %8139 = vst [vmem:[#allocation111_spill] sm:$0xff] %v4570_v44  ;;  %8140 = vst [vmem:[#allocation112_spill] sm:$0xff] %v4572_v13  ;;  %v512_v13 = vlaneseq }
 0x1c3   : > { %1495 = vrot.lane.b32.xlu1 %v3984_v21, %s7908_s30  ;;  %1646 = vperm.xlu0 %3554, %v3914_v7  }
 0x1c5   : > { %v4577_v4 = vpop.permute.xlu1 %1195  ;;  %v4579_v2 = vpop.permute.xlu0 %1213 }
 0x1c6   : > { %8141 = vst [vmem:[#allocation113_spill] sm:$0xff] %v4577_v4  ;;  %8142 = vst [vmem:[#allocation114_spill] sm:$0xff] %v4579_v2  ;;  %v534_v2 = vshrl.u32 %v512_v13, 7 }
 0x1c7   : > { %1570 = vperm.xlu1 %3552, %v3907_v6   ;;  %3557 = vset.pattern.permute.xlu0 %v8143_v63 }
 0x1c9   : > { %v4583_v26 = vpop.permute.xlu1 %1199  ;;  %v4585_v0 = vpop.permute.xlu0 %1217 }
 0x1ca   : > { %8144 = vst [vmem:[#allocation115_spill] sm:$0xff] %v4583_v26  ;;  %8145 = vst [vmem:[#allocation116_spill] sm:$0xff] %v4585_v0  ;;  %v4600_v0 = vand.u32 127, %v512_v13  ;;  %v4602_v26 = vsub.s32 0, %v534_v2  ;;  %v3360_v13 = vld [vmem:[%s7708_s1 + $0x4] sm:$0x3] }
 0x1cb   : > { %3553 = vset.pattern.permute.xlu1 %v8146_v61 }
 0x1cc   : > { %1626 = vperm.xlu1 %3553, %v3876_v1   ;;  %vm514_vm0 = vcmp.lt.s32.totalorder %v4600_v0, 17  ;;  %v4638_v63 = vrot.slane %v3360_v13, %v4602_v26  ;;  %vm655_vm1 = vcmp.lt.s32.totalorder %v4600_v0, 16  ;;  %vm797_vm2 = vcmp.lt.s32.totalorder %v4600_v0, 15 }
 0x1cd   : > { %v4589_v44 = vpop.permute.xlu1 %1203  ;;  %v4591_v27 = vpop.permute.xlu0 %1221  ;;  %vm939_vm3 = vcmp.lt.s32.totalorder %v4600_v0, 1  ;;  %vm1081_vm4 = vcmp.lt.s32.totalorder %v4600_v0, 127  ;;  %vm1365_vm5 = vcmp.lt.s32.totalorder %v4600_v0, 112  ;;  %vm1223_vm6 = vcmp.lt.s32.totalorder %v4600_v0, 113 }
 0x1ce   : > { %8147 = vst [vmem:[#allocation117_spill] sm:$0xff] %v4589_v44  ;;  %8148 = vst [vmem:[#allocation118_spill] sm:$0xff] %v4591_v27  ;;  %v4610_v44 = vsub.s32 1, %v534_v2  ;;  %vm1507_vm7 = vcmp.lt.s32.totalorder %v4600_v0, 111 }
 0x1cf   : > { %8158 = vst [vmem:[#allocation128_spill] sm:$0xff] %v4638_v63  ;;  %v4659_v63 = vmul.f32 %v4080_v29, %v3974_v19  ;;  %v524_v19 = vsel %vm514_vm0, %v4136_v45, %v4109_v36 }
 0x1d0   : > { %1630 = vperm.xlu1 %3553, %v3889_v3   ;;  %v531_v3 = vld [vmem:[%s7708_s1] sm:$0x3] }
 0x1d1   : > { %v4594_v4 = vpop.permute.xlu1 %1207  ;;  %v4596_v6 = vpop.permute.xlu0 %1274 }
 0x1d2   : > { %8149 = vst [vmem:[#allocation119_spill] sm:$0xff] %v4594_v4  ;;  %8150 = vst [vmem:[#allocation120_spill] sm:$0xff] %v4596_v6  ;;  %v3359_v6 = vld [vmem:[%s7708_s1 + $0x2] sm:$0x3] }
 0x1d3   : > { %v4635_v4 = vrot.slane %v3359_v6, %v4610_v44 }
 0x1d4   : > { %1485 = vrot.lane.b32.xlu1 %v3951_v14, %s7908_s30 }
 0x1d5   : > { %v4604_v1 = vpop.permute.xlu1 %1211  ;;  %3555 = vset.pattern.permute.xlu1 %v8126_v62  ;;  %v4612_v27 = vpop.permute.xlu0 %1286  ;;  %v4624_v62 = vrot.slane %v531_v3, %v4602_v26  ;;  %8157 = vst [vmem:[#allocation127_spill] sm:$0xff] %v4635_v4 }
 0x1d6   : > { %8151 = vst [vmem:[#allocation121_spill] sm:$0xff] %v4604_v1  ;;  %8152 = vst [vmem:[#allocation122_spill] sm:$0xff] %v4612_v27  ;;  %v4629_v27 = vrot.slane %v531_v3, %v4610_v44  ;;  %v4632_v1 = vrot.slane %v3359_v6, %v4602_v26  ;;  %v4652_v3 = vmul.f32 %v4080_v29, %v3932_v10 }
 0x1d7   : > { %8153 = vst [vmem:[#allocation123_spill] sm:$0xff] %v4624_v62  ;;  %v4655_v6 = vrot.slane %v3360_v13, %v4610_v44  ;;  %v4676_v10 = vmul.f32 %v4088_v31, %v3971_v18  ;;  %v4694_v18 = vmul.f32 %v4094_v32, %v3951_v14  ;;  %v515_v29 = vsel %vm514_vm0, %v4111_v37, %v4138_v46 }
 0x1d8   : > { %1501 = vrot.lane.b32.xlu1 %v3991_v22, %s7908_s30  ;;  %8155 = vst [vmem:[#allocation125_spill] sm:$0xff] %v4629_v27  ;;  %8156 = vst [vmem:[#allocation126_spill] sm:$0xff] %v4632_v1  ;;  %v4716_v14 = vmul.f32 %v4102_v34, %v3961_v16  ;;  %v4720_v22 = vmul.f32 %v4102_v34, %v4001_v24  ;;  %v4728_v32 = vmul.f32 %v4104_v35, %v4004_v25 }
 0x1d9   : > { %v4626_v2 = vpop.permute.xlu1 %1215  ;;  %v4640_v8 = vpop.permute.xlu0 %1294  ;;  %8160 = vst [vmem:[#allocation130_spill] sm:$0xff] %v4655_v6  ;;  %v544_v16 = vmul.f32 %v4629_v27, %v515_v29  ;;  %v518_v24 = vsel %vm514_vm0, %v4116_v38, %v4143_v47  ;;  %v526_v34 = vsel %vm514_vm0, %v4143_v47, %v4116_v38  ;;  %v528_v38 = vsel %vm514_vm0, %v4152_v49, %v4122_v40 }
 0x1da   : > { %8154 = vst [vmem:[#allocation124_spill] sm:$0xff] %v4626_v2  ;;  %8159 = vst [vmem:[#allocation129_spill] sm:$0xff] %v4640_v8  ;;  %v4648_v2 = vmul.f32 %v4078_v28, %v3984_v21  ;;  %v4663_v8 = vmul.f32 %v4086_v30, %v3939_v11  ;;  %v4671_v21 = vmul.f32 %v4088_v31, %v3929_v9 }
 0x1db   : > { %v516_v11 = vsel %vm514_vm0, %v4109_v36, %v4136_v45  ;;  %v523_v9 = vsel %vm514_vm0, %v4138_v46, %v4111_v37  ;;  %v4702_v28 = vmul.f32 %v4096_v33, %v3954_v15  ;;  %v4712_v31 = vmul.f32 %v4096_v33, %v3994_v23 }
 0x1dc   : > { %1582 = vperm.xlu1 %3555, %v3914_v7   ;;  %v4724_v15 = vmul.f32 %v4104_v35, %v3964_v17  ;;  %v545_v36 = vmul.f32 %v4624_v62, %v524_v19  ;;  %v546_v23 = vmul.f32 %v4629_v27, %v516_v11  ;;  %v543_v33 = vmul.f32 %v4624_v62, %v523_v9 }
 0x1dd   : > { %v4690_v7 = vpop.permute.xlu1 %1219  ;;  %v4708_v30 = vpop.permute.xlu0 %1333  ;;  %v525_v35 = vsel %vm514_vm0, %v4145_v48, %v4118_v39  ;;  %v517_v45 = vsel %vm514_vm0, %v4118_v39, %v4145_v48  ;;  %v520_v46 = vsel %vm514_vm0, %v4122_v40, %v4152_v49  ;;  %v519_v39 = vsel %vm514_vm0, %v4124_v41, %v4154_v50 }
 0x1de   : > { %8161 = vst [vmem:[#allocation131_spill] sm:$0xff] %v4690_v7  ;;  %v522_v48 = vsel %vm514_vm0, %v4128_v42, %v4160_v51  ;;  %v530_v40 = vsel %vm514_vm0, %v4160_v51, %v4128_v42  ;;  %v529_v49 = vsel %vm514_vm0, %v4162_v52, %v4130_v43  ;;  %v549_v13 = vmul.f32 %v4624_v62, %v526_v34  ;;  %v3361_v42 = vld [vmem:[%s7708_s1 + $0x6] sm:$0x3] }
 0x1df   : > { %v550_v11 = vmul.f32 %v4629_v27, %v518_v24  ;;  %v548_v51 = vmul.f32 %v4629_v27, %v517_v45  ;;  %v553_v19 = vmul.f32 %v4624_v62, %v528_v38  ;;  %v554_v9 = vmul.f32 %v4629_v27, %v520_v46 }
 0x1e0   : > { %3556 = vset.pattern.permute.xlu1 %v8146_v61  ;;  %v558_v34 = vmul.f32 %v4629_v27, %v522_v48  ;;  %v593_v46 = vmul.f32 %v4168_v53, %v545_v36  ;;  %v591_v61 = vmul.f32 %v4170_v54, %v543_v33  ;;  %v4819_v48 = vrot.slane %v3361_v42, %v4610_v44 }
 0x1e1   : > { %1638 = vperm.xlu1 %3556, %v3902_v5   ;;  %v4748_v37 = vpop.permute.xlu1 %1270  ;;  %v527_v5 = vsel %vm514_vm0, %v4154_v50, %v4124_v41  ;;  %v4766_v47 = vpop.permute.xlu0 %1337  ;;  %v547_v41 = vmul.f32 %v4624_v62, %v525_v35  ;;  %v521_v50 = vsel %vm514_vm0, %v4130_v43, %v4162_v52  ;;  %v552_v43 = vmul.f32 %v4629_v27, %v519_v39 }
 0x1e2   : > { %8162 = vst [vmem:[#allocation132_spill] sm:$0xff] %v4766_v47  ;;  %v551_v29 = vmul.f32 %v4624_v62, %v527_v5  ;;  %v557_v52 = vmul.f32 %v4624_v62, %v530_v40  ;;  %v555_v35 = vmul.f32 %v4624_v62, %v529_v49  ;;  %v556_v38 = vmul.f32 %v4629_v27, %v521_v50 }
 0x1e3   : > { %v594_v5 = vmul.f32 %v4168_v53, %v546_v23  ;;  %v592_v39 = vmul.f32 %v4170_v54, %v544_v16  ;;  %v595_v40 = vmul.f32 %v4176_v55, %v547_v41  ;;  %8164 = vst [vmem:[#allocation134_spill] sm:$0xff] %v4819_v48  ;;  %v596_v49 = vmul.f32 %v4176_v55, %v548_v51 }
 0x1e4   : > { %v597_v50 = vmul.f32 %v4178_v56, %v549_v13  ;;  %v598_v36 = vmul.f32 %v4178_v56, %v550_v11  ;;  %v599_v53 = vmul.f32 %v4184_v57, %v551_v29  ;;  %v600_v54 = vmul.f32 %v4184_v57, %v552_v43  ;;  %v8167_v11 = vld [vmem:[#allocation10_spill] sm:$0xff]  ;;  %v8172_v43 = vld [vmem:[#allocation19_spill] sm:$0xff] }
 0x1e5   : > { %1487 = vrot.lane.b32.xlu1 %v3964_v17, %s7908_s30  ;;  %v4801_v24 = vpop.permute.xlu1 %1278  ;;  %v4807_v45 = vpop.permute.xlu0 %1341  ;;  %v4813_v17 = vrot.slane %v3361_v42, %v4602_v26  ;;  %v601_v33 = vmul.f32 %v4186_v58, %v553_v19  ;;  %v602_v16 = vmul.f32 %v4186_v58, %v554_v9  ;;  %v603_v41 = vmul.f32 %v4192_v59, %v555_v35  ;;  %v8176_v35 = vld [vmem:[#allocation13_spill] sm:$0xff] }
 0x1e6   : > { %v4836_v13 = vadd.f32 %v593_v46, %v4671_v21  ;;  %v4839_v56 = vadd.f32 %v594_v5, %v4676_v10  ;;  %v605_v42 = vmul.f32 %v8167_v11, %v557_v52  ;;  %v4844_v57 = vadd.f32 %v591_v61, %v4652_v3  ;;  %v8168_v3 = vld [vmem:[#allocation9_spill] sm:$0xff]  ;;  %v8174_v52 = vld [vmem:[#allocation20_spill] sm:$0xff]  ;;  %v8178_v5 = vld [vmem:[#allocation22_spill] sm:$0xff] }
 0x1e7   : > { %8163 = vst [vmem:[#allocation133_spill] sm:$0xff] %v4813_v17  ;;  %v4847_v51 = vadd.f32 %v592_v39, %v4659_v63  ;;  %v4850_v58 = vadd.f32 %v595_v40, %v4644_v60  ;;  %v606_v19 = vmul.f32 %v8167_v11, %v558_v34  ;;  %v4854_v21 = vadd.f32 %v596_v49, %v4648_v2  ;;  %v8175_v34 = vld [vmem:[#allocation12_spill] sm:$0xff]  ;;  %v8179_v39 = vld [vmem:[#allocation14_spill] sm:$0xff] }
 0x1e8   : > { %v4857_v10 = vadd.f32 %v597_v50, %v4663_v8  ;;  %v4863_v61 = vadd.f32 %v599_v53, %v4702_v28  ;;  %v4869_v60 = vadd.f32 %v600_v54, %v4712_v31  ;;  %v4872_v9 = vadd.f32 %v601_v33, %v4694_v18  ;;  %v8173_v31 = vld [vmem:[#allocation11_spill] sm:$0xff]  ;;  %v8184_v11 = vld [vmem:[#allocation16_spill] sm:$0xff] }
 0x1e9   : > { %1503 = vrot.lane.b32.xlu1 %v4004_v25, %s7908_s30  ;;  %v4827_v23 = vpop.permute.xlu1 %1282  ;;  %v4833_v55 = vpop.permute.xlu0 %1345  ;;  %v604_v25 = vmul.f32 %v4192_v59, %v556_v38  ;;  %v4860_v59 = vadd.f32 %v598_v36, %v4667_v12  ;;  %v4875_v2 = vadd.f32 %v602_v16, %v4698_v20  ;;  %v4878_v8 = vadd.f32 %v603_v41, %v4724_v15  ;;  %v8177_v38 = vld [vmem:[#allocation21_spill] sm:$0xff]  ;;  %v8180_v50 = vld [vmem:[#allocation15_spill] sm:$0xff]  ;;  %s8400_s30 = smov 113  }
 0x1ea   : > { %8165 = vst [vmem:[#allocation135_spill] sm:$0xff] %v4827_v23  ;;  %8166 = vst [vmem:[#allocation136_spill] sm:$0xff] %v4833_v55  ;;  %v4886_v29 = vadd.f32 %v605_v42, %v4716_v14  ;;  %v656_v18 = vsel %vm655_vm1, %v8173_v31, %v8172_v43  ;;  %v664_v20 = vsel %vm655_vm1, %v8172_v43, %v8173_v31  ;;  %v8181_v36 = vld [vmem:[#allocation23_spill] sm:$0xff]  ;;  %v8183_v33 = vmov 4   ;;  %v8185_v42 = vld [vmem:[#allocation24_spill] sm:$0xff] }
 0x1eb   : > { %8170 = vst [vmem:[#allocation9_spill] sm:$0xff] %v4878_v8  ;;  %v4883_v28 = vadd.f32 %v604_v25, %v4728_v32  ;;  %v4897_v15 = vadd.f32 %v606_v19, %v4720_v22  ;;  %v657_v32 = vsel %vm655_vm1, %v8175_v34, %v8174_v52  ;;  %v665_v14 = vsel %vm655_vm1, %v8174_v52, %v8175_v34 }
 0x1ec   : > { %v666_v46 = vsel %vm655_vm1, %v8177_v38, %v8176_v35  ;;  %v658_v22 = vsel %vm655_vm1, %v8176_v35, %v8177_v38  ;;  %v659_v40 = vsel %vm655_vm1, %v8179_v39, %v8178_v5  ;;  %v667_v49 = vsel %vm655_vm1, %v8178_v5, %v8179_v39  ;;  %v8187_v5 = vld [vmem:[#allocation25_spill] sm:$0xff] }
 0x1ed   : > { %1642 = vperm.xlu1 %3556, %v8168_v3   ;;  %v4866_v63 = vpop.permute.xlu1 %1290  ;;  %v4880_v12 = vpop.permute.xlu0 %1349  ;;  %8171 = vst [vmem:[#allocation137_spill] sm:$0xff] %v4883_v28  ;;  %v668_v53 = vsel %vm655_vm1, %v8181_v36, %v8180_v50  ;;  %v685_v16 = vmul.f32 %v4632_v1, %v664_v20  ;;  %v686_v41 = vmul.f32 %v4635_v4, %v656_v18  ;;  %v8188_v39 = vld [vmem:[#allocation17_spill] sm:$0xff] }
 0x1ee   : > { %8169 = vst [vmem:[#allocation10_spill] sm:$0xff] %v4866_v63  ;;  %v660_v25 = vsel %vm655_vm1, %v8180_v50, %v8181_v36  ;;  %v669_v19 = vsel %vm655_vm1, %v8185_v42, %v8184_v11  ;;  %v687_v43 = vmul.f32 %v4632_v1, %v665_v14  ;;  %v688_v31 = vmul.f32 %v4635_v4, %v657_v32  ;;  %v3362_v14 = vld [vmem:[%s7708_s1 + $0xa] sm:$0x3] }
 0x1ef   : > { %v689_v20 = vmul.f32 %v4632_v1, %v666_v46  ;;  %v661_v18 = vsel %vm655_vm1, %v8184_v11, %v8185_v42  ;;  %v690_v52 = vmul.f32 %v4635_v4, %v658_v22  ;;  %v691_v34 = vmul.f32 %v4632_v1, %v667_v49  ;;  %v8189_v36 = vld [vmem:[#allocation18_spill] sm:$0xff] }
 0x1f0   : > { %v692_v35 = vmul.f32 %v4635_v4, %v659_v40  ;;  %v693_v38 = vmul.f32 %v4632_v1, %v668_v53  ;;  %v694_v32 = vmul.f32 %v4635_v4, %v660_v25  ;;  %v695_v46 = vmul.f32 %v4632_v1, %v669_v19  ;;  %v8190_v53 = vld [vmem:[#allocation26_spill] sm:$0xff]  ;;  %v8191_v25 = vld [vmem:[#allocation27_spill] sm:$0xff] }
 0x1f1   : > { %v4927_v54 = vpop.permute.xlu1 %1298  ;;  %3558 = vset.pattern.permute.xlu1 %v8183_v33  ;;  %v4940_v3 = vpop.permute.xlu0 %1353  ;;  %v662_v50 = vsel %vm655_vm1, %v8188_v39, %v8187_v5  ;;  %v670_v22 = vsel %vm655_vm1, %v8187_v5, %v8188_v39  ;;  %v696_v49 = vmul.f32 %v4635_v4, %v661_v18  ;;  %v671_v33 = vsel %vm655_vm1, %v8190_v53, %v8189_v36  ;;  %v8192_v39 = vld [vmem:[#allocation28_spill] sm:$0xff] }
 0x1f2   : > { %8182 = vst [vmem:[#allocation19_spill] sm:$0xff] %v4927_v54  ;;  %8186 = vst [vmem:[#allocation11_spill] sm:$0xff] %v4940_v3  ;;  %v733_v11 = vmul.f32 %v8191_v25, %v685_v16  ;;  %v734_v42 = vmul.f32 %v8191_v25, %v686_v41  ;;  %v663_v5 = vsel %vm655_vm1, %v8189_v36, %v8190_v53  ;;  %v8195_v25 = vld [vmem:[#allocation29_spill] sm:$0xff]  ;;  %v8196_v53 = vld [vmem:[#allocation30_spill] sm:$0xff] }
 0x1f3   : > { %v735_v27 = vmul.f32 %v8192_v39, %v687_v43  ;;  %v4984_v18 = vrot.slane %v3362_v14, %v4602_v26  ;;  %v4987_v62 = vrot.slane %v3362_v14, %v4610_v44  ;;  %v697_v55 = vmul.f32 %v4632_v1, %v670_v22  ;;  %v8230_v3 = vld [vmem:[#allocation54_spill] sm:$0xff] }
 0x1f4   : > { %v698_v16 = vmul.f32 %v4635_v4, %v662_v50  ;;  %v736_v41 = vmul.f32 %v8192_v39, %v688_v31  ;;  %v737_v7 = vmul.f32 %v8195_v25, %v689_v20  ;;  %v699_v28 = vmul.f32 %v4632_v1, %v671_v33  ;;  %v8198_v31 = vld [vmem:[#allocation31_spill] sm:$0xff] }
 0x1f5   : > { %v4967_v40 = vpop.permute.xlu1 %1335  ;;  %v4976_v19 = vpop.permute.xlu0 %1357  ;;  %8193 = vst [vmem:[#allocation20_spill] sm:$0xff] %v4984_v18  ;;  %8194 = vst [vmem:[#allocation12_spill] sm:$0xff] %v4987_v62  ;;  %v738_v36 = vmul.f32 %v8195_v25, %v690_v52  ;;  %v741_v43 = vmul.f32 %v8196_v53, %v693_v38  ;;  %v742_v8 = vmul.f32 %v8196_v53, %v694_v32  ;;  %v8200_v32 = vld [vmem:[#allocation33_spill] sm:$0xff]  ;;  %v8223_v1 = vld [vmem:[#allocation43_spill] sm:$0xff] }
 0x1f6   : > { %v700_v14 = vmul.f32 %v4635_v4, %v663_v5  ;;  %v5001_v22 = vadd.f32 %v733_v11, %v4844_v57  ;;  %v5004_v50 = vadd.f32 %v734_v42, %v4847_v51  ;;  %v739_v20 = vmul.f32 %v8198_v31, %v691_v34  ;;  %v8201_v51 = vld [vmem:[#allocation35_spill] sm:$0xff] }
 0x1f7   : > { %v5010_v52 = vadd.f32 %v735_v27, %v4836_v13  ;;  %v740_v38 = vmul.f32 %v8198_v31, %v692_v35  ;;  %v743_v33 = vmul.f32 %v8200_v32, %v695_v46  ;;  %v744_v25 = vmul.f32 %v8200_v32, %v696_v49  ;;  %v8202_v35 = vld [vmem:[#allocation32_spill] sm:$0xff]  ;;  %v8214_v32 = vld [vmem:[#allocation46_spill] sm:$0xff] }
 0x1f8   : > { %v5016_v5 = vadd.f32 %v736_v41, %v4839_v56  ;;  %v5019_v57 = vadd.f32 %v737_v7, %v4850_v58  ;;  %v747_v11 = vmul.f32 %v8201_v51, %v699_v28  ;;  %v748_v34 = vmul.f32 %v8201_v51, %v700_v14  ;;  %v8206_v28 = vld [vmem:[#allocation42_spill] sm:$0xff]  ;;  %v8209_v41 = vld [vmem:[#allocation44_spill] sm:$0xff]  ;;  %v8211_v14 = vld [vmem:[#allocation45_spill] sm:$0xff] }
 0x1f9   : > { %v4997_v63 = vpop.permute.xlu1 %1339  ;;  %v5007_v39 = vpop.permute.xlu0 %1361  ;;  %v5024_v42 = vadd.f32 %v738_v36, %v4854_v21  ;;  %v5027_v27 = vadd.f32 %v741_v43, %v4863_v61  ;;  %v5030_v13 = vadd.f32 %v742_v8, %v4869_v60  ;;  %v5033_v46 = vmul.f32 %v8202_v35, %v697_v55  ;;  %v8207_v21 = vld [vmem:[#allocation34_spill] sm:$0xff]  ;;  %v8212_v31 = vld [vmem:[#allocation128_spill] sm:$0xff] }
 0x1fa   : > { %8197 = vst [vmem:[#allocation13_spill] sm:$0xff] %v4997_v63  ;;  %8199 = vst [vmem:[#allocation21_spill] sm:$0xff] %v5007_v39  ;;  %v5038_v7 = vadd.f32 %v739_v20, %v4857_v10  ;;  %v5041_v58 = vmul.f32 %v8202_v35, %v698_v16  ;;  %v798_v61 = vsel %vm797_vm2, %v8207_v21, %v8206_v28  ;;  %v8208_v16 = vld [vmem:[#allocation36_spill] sm:$0xff]  ;;  %v8217_v35 = vld [vmem:[#allocation39_spill] sm:$0xff] }
 0x1fb   : > { %8203 = vst [vmem:[#allocation22_spill] sm:$0xff] %v5033_v46  ;;  %v806_v60 = vsel %vm797_vm2, %v8206_v28, %v8207_v21  ;;  %v756_v8 = vadd.f32 %v740_v38, %v4860_v59  ;;  %v5055_v10 = vadd.f32 %v743_v33, %v4872_v9  ;;  %v5058_v49 = vadd.f32 %v744_v25, %v4875_v2  ;;  %v8210_v9 = vld [vmem:[#allocation37_spill] sm:$0xff] }
 0x1fc   : > { %8205 = vst [vmem:[#allocation15_spill] sm:$0xff] %v5041_v58  ;;  %v808_v36 = vsel %vm797_vm2, %v8209_v41, %v8208_v16  ;;  %v5065_v53 = vadd.f32 %v747_v11, %v4886_v29  ;;  %v5068_v43 = vadd.f32 %v748_v34, %v4897_v15  ;;  %v800_v59 = vsel %vm797_vm2, %v8208_v16, %v8209_v41  ;;  %v8213_v15 = vld [vmem:[#allocation38_spill] sm:$0xff]  ;;  %v8216_v34 = vld [vmem:[#allocation47_spill] sm:$0xff]  ;;  %v8219_v41 = vld [vmem:[#allocation48_spill] sm:$0xff] }
 0x1fd   : > { %v5035_v56 = vpop.permute.xlu1 %1343  ;;  %v5051_v55 = vpop.permute.xlu0 %1412  ;;  %v807_v2 = vsel %vm797_vm2, %v8211_v14, %v8210_v9  ;;  %v827_v20 = vmul.f32 %v8212_v31, %v806_v60  ;;  %v828_v38 = vmul.f32 %v4655_v6, %v798_v61  ;;  %v799_v29 = vsel %vm797_vm2, %v8210_v9, %v8211_v14 }
 0x1fe   : > { %8204 = vst [vmem:[#allocation14_spill] sm:$0xff] %v5035_v56  ;;  %v810_v33 = vsel %vm797_vm2, %v8214_v32, %v8213_v15  ;;  %v831_v51 = vmul.f32 %v8212_v31, %v808_v36  ;;  %v802_v11 = vsel %vm797_vm2, %v8213_v15, %v8214_v32  ;;  %v801_v28 = vsel %vm797_vm2, %v8217_v35, %v8216_v34  ;;  %v8220_v36 = vld [vmem:[#allocation40_spill] sm:$0xff]  ;;  %v3363_v15 = vld [vmem:[%s7708_s1 + $0xc] sm:$0x3] }
 0x1ff   : > { %v809_v21 = vsel %vm797_vm2, %v8216_v34, %v8217_v35  ;;  %v832_v60 = vmul.f32 %v4655_v6, %v800_v59  ;;  %v829_v16 = vmul.f32 %v8212_v31, %v807_v2  ;;  %v804_v9 = vsel %vm797_vm2, %v8220_v36, %v8219_v41  ;;  %v8221_v34 = vld [vmem:[#allocation49_spill] sm:$0xff]  ;;  %v8227_v56 = vld [vmem:[#allocation50_spill] sm:$0xff] }
 0x200   : > { %v812_v14 = vsel %vm797_vm2, %v8219_v41, %v8220_v36  ;;  %v830_v32 = vmul.f32 %v4655_v6, %v799_v29  ;;  %v835_v59 = vmul.f32 %v8212_v31, %v810_v33  ;;  %v8222_v2 = vld [vmem:[#allocation41_spill] sm:$0xff]  ;;  %v836_v41 = vmul.f32 %v4655_v6, %v802_v11  ;;  %v8224_v33 = vld [vmem:[#allocation51_spill] sm:$0xff] }
 0x201   : > { %v5088_v25 = vpop.permute.xlu1 %1347  ;;  %v5103_v61 = vpop.permute.xlu0 %1424  ;;  %v803_v35 = vsel %vm797_vm2, %v8222_v2, %v8221_v34  ;;  %v811_v4 = vsel %vm797_vm2, %v8221_v34, %v8222_v2  ;;  %v833_v36 = vmul.f32 %v8212_v31, %v809_v21  ;;  %v834_v29 = vmul.f32 %v4655_v6, %v801_v28 }
 0x202   : > { %8215 = vst [vmem:[#allocation23_spill] sm:$0xff] %v5088_v25  ;;  %8218 = vst [vmem:[#allocation16_spill] sm:$0xff] %v5103_v61  ;;  %v813_v39 = vsel %vm797_vm2, %v8224_v33, %v8223_v1  ;;  %v839_v46 = vmul.f32 %v8212_v31, %v812_v14  ;;  %v840_v54 = vmul.f32 %v4655_v6, %v804_v9  ;;  %v8228_v61 = vld [vmem:[#allocation52_spill] sm:$0xff] }
 0x203   : > { %v805_v11 = vsel %vm797_vm2, %v8223_v1, %v8224_v33  ;;  %v5145_v21 = vrot.slane %v3363_v15, %v4602_v26  ;;  %v837_v34 = vmul.f32 %v8212_v31, %v811_v4  ;;  %v838_v2 = vmul.f32 %v4655_v6, %v803_v35  ;;  %v8229_v1 = vld [vmem:[#allocation53_spill] sm:$0xff] }
 0x204   : > { %v875_v25 = vmul.f32 %v8227_v56, %v827_v20  ;;  %v876_v14 = vmul.f32 %v8227_v56, %v828_v38  ;;  %v841_v9 = vmul.f32 %v8212_v31, %v813_v39  ;;  %v881_v23 = vmul.f32 %v8228_v61, %v833_v36  ;;  %v8233_v39 = vld [vmem:[#allocation55_spill] sm:$0xff]  ;;  %v8258_v31 = vld [vmem:[#allocation76_spill] sm:$0xff] }
 0x205   : > { %v5136_v58 = vpop.permute.xlu1 %1351  ;;  %8225 = vst [vmem:[#allocation24_spill] sm:$0xff] %v5145_v21  ;;  %v5147_v28 = vpop.permute.xlu0 %1432  ;;  %v882_v63 = vmul.f32 %v8228_v61, %v834_v29  ;;  %v877_v33 = vmul.f32 %v8229_v1, %v829_v16  ;;  %v842_v47 = vmul.f32 %v4655_v6, %v805_v11  ;;  %v885_v4 = vmul.f32 %v8230_v3, %v837_v34  ;;  %v8234_v61 = vld [vmem:[#allocation56_spill] sm:$0xff]  ;;  %v8236_v34 = vld [vmem:[#allocation57_spill] sm:$0xff] }
 0x206   : > { %8226 = vst [vmem:[#allocation25_spill] sm:$0xff] %v5147_v28  ;;  %v878_v28 = vmul.f32 %v8229_v1, %v830_v32  ;;  %v5161_v35 = vrot.slane %v3363_v15, %v4610_v44  ;;  %v886_v56 = vmul.f32 %v8230_v3, %v838_v2  ;;  %v879_v38 = vmul.f32 %v8233_v39, %v831_v51 }
 0x207   : > { %v880_v36 = vmul.f32 %v8233_v39, %v832_v60  ;;  %v889_v29 = vmul.f32 %v8234_v61, %v841_v9  ;;  %v5172_v11 = vadd.f32 %v875_v25, %v5001_v22  ;;  %v890_v32 = vmul.f32 %v8234_v61, %v842_v47  ;;  %v8237_v47 = vld [vmem:[#allocation66_spill] sm:$0xff] }
 0x208   : > { %8231 = vst [vmem:[#allocation17_spill] sm:$0xff] %v5161_v35  ;;  %v883_v15 = vmul.f32 %v8236_v34, %v835_v59  ;;  %v884_v1 = vmul.f32 %v8236_v34, %v836_v41  ;;  %v5178_v6 = vadd.f32 %v876_v14, %v5004_v50  ;;  %v5181_v3 = vadd.f32 %v881_v23, %v5038_v7  ;;  %v8238_v25 = vld [vmem:[#allocation58_spill] sm:$0xff]  ;;  %v8242_v14 = vld [vmem:[#allocation73_spill] sm:$0xff]  ;;  %v8250_v34 = vld [vmem:[#allocation59_spill] sm:$0xff] }
 0x209   : > { %v5163_v20 = vpop.permute.xlu1 %1355  ;;  %v5169_v16 = vpop.permute.xlu0 %1440  ;;  %v5183_v51 = vadd.f32 %v882_v63, %v756_v8  ;;  %v893_v60 = vadd.f32 %v877_v33, %v5010_v52  ;;  %v894_v2 = vadd.f32 %v878_v28, %v5016_v5  ;;  %v5188_v22 = vadd.f32 %v885_v4, %v5055_v10  ;;  %v8244_v33 = vld [vmem:[#allocation68_spill] sm:$0xff]  ;;  %v8248_v61 = vld [vmem:[#allocation70_spill] sm:$0xff] }
 0x20a   : > { %8232 = vst [vmem:[#allocation18_spill] sm:$0xff] %v5163_v20  ;;  %8235 = vst [vmem:[#allocation26_spill] sm:$0xff] %v5169_v16  ;;  %v941_v59 = vsel %vm939_vm3, %v8238_v25, %v8237_v47  ;;  %v949_v23 = vsel %vm939_vm3, %v8237_v47, %v8238_v25  ;;  %v5201_v63 = vadd.f32 %v886_v56, %v5058_v49  ;;  %v8241_v49 = vld [vmem:[#allocation65_spill] sm:$0xff]  ;;  %v8266_v20 = vld [vmem:[#allocation67_spill] sm:$0xff] }
 0x20b   : > { %v5204_v52 = vadd.f32 %v879_v38, %v5019_v57  ;;  %v5207_v5 = vadd.f32 %v880_v36, %v5024_v42  ;;  %v5210_v7 = vadd.f32 %v889_v29, %v5065_v53  ;;  %v5215_v10 = vadd.f32 %v890_v32, %v5068_v43  ;;  %v8243_v53 = vld [vmem:[#allocation60_spill] sm:$0xff]  ;;  %v8245_v43 = vld [vmem:[#allocation69_spill] sm:$0xff]  ;;  %v8247_v36 = vld [vmem:[#allocation62_spill] sm:$0xff] }
 0x20c   : > { %v899_v41 = vadd.f32 %v883_v15, %v5027_v27  ;;  %v900_v28 = vadd.f32 %v884_v1, %v5030_v13  ;;  %v952_v57 = vsel %vm939_vm3, %v8242_v14, %v8241_v49  ;;  %v971_v42 = vmul.f32 %v4813_v17, %v949_v23  ;;  %v8246_v56 = vld [vmem:[#allocation61_spill] sm:$0xff] }
 0x20d   : > { %v5198_v50 = vpop.permute.xlu1 %1359  ;;  %v5212_v8 = vpop.permute.xlu0 %1477  ;;  %8240 = vst [vmem:[#allocation28_spill] sm:$0xff] %v5215_v10  ;;  %v972_v9 = vmul.f32 %v4819_v48, %v941_v59  ;;  %v951_v4 = vsel %vm939_vm3, %v8244_v33, %v8243_v53  ;;  %v944_v27 = vsel %vm939_vm3, %v8241_v49, %v8242_v14  ;;  %v943_v13 = vsel %vm939_vm3, %v8243_v53, %v8244_v33  ;;  %v8253_v49 = vld [vmem:[#allocation71_spill] sm:$0xff] }
 0x20e   : > { %8239 = vst [vmem:[#allocation27_spill] sm:$0xff] %v5198_v50  ;;  %v940_v39 = vsel %vm939_vm3, %v8246_v56, %v8245_v43  ;;  %v948_v38 = vsel %vm939_vm3, %v8245_v43, %v8246_v56  ;;  %v953_v29 = vsel %vm939_vm3, %v8248_v61, %v8247_v36  ;;  %v5253_v15 = vmul.f32 %v8250_v34, %v839_v46  ;;  %v8254_v14 = vld [vmem:[#allocation63_spill] sm:$0xff]  ;;  %v3364_v56 = vld [vmem:[%s7708_s1 + $0xe] sm:$0x3] }
 0x20f   : > { %v5256_v1 = vmul.f32 %v8250_v34, %v840_v54  ;;  %v945_v47 = vsel %vm939_vm3, %v8247_v36, %v8248_v61  ;;  %v977_v25 = vmul.f32 %v4813_v17, %v952_v57  ;;  %v975_v23 = vmul.f32 %v4813_v17, %v951_v4  ;;  %v8255_v61 = vld [vmem:[#allocation64_spill] sm:$0xff] }
 0x210   : > { %8251 = vst [vmem:[#allocation30_spill] sm:$0xff] %v5253_v15  ;;  %v942_v46 = vsel %vm939_vm3, %v8254_v14, %v8253_v49  ;;  %v950_v54 = vsel %vm939_vm3, %v8253_v49, %v8254_v14  ;;  %v978_v53 = vmul.f32 %v4819_v48, %v944_v27  ;;  %v976_v33 = vmul.f32 %v4819_v48, %v943_v13  ;;  %v8256_v34 = vld [vmem:[#allocation72_spill] sm:$0xff]  ;;  %v8257_v27 = vld [vmem:[#allocation74_spill] sm:$0xff] }
 0x211   : > { %v5250_v32 = vpop.permute.xlu1 %1363  ;;  %8252 = vst [vmem:[#allocation31_spill] sm:$0xff] %v5256_v1  ;;  %v5263_v59 = vpop.permute.xlu0 %1558  ;;  %v969_v57 = vmul.f32 %v4813_v17, %v948_v38  ;;  %v970_v43 = vmul.f32 %v4819_v48, %v940_v39  ;;  %v979_v4 = vmul.f32 %v4813_v17, %v953_v29  ;;  %v980_v36 = vmul.f32 %v4819_v48, %v945_v47 }
 0x212   : > { %8249 = vst [vmem:[#allocation29_spill] sm:$0xff] %v5250_v32  ;;  %v955_v49 = vsel %vm939_vm3, %v8256_v34, %v8255_v61  ;;  %v1019_v14 = vmul.f32 %v8257_v27, %v971_v42  ;;  %v1020_v13 = vmul.f32 %v8257_v27, %v972_v9  ;;  %v973_v39 = vmul.f32 %v4813_v17, %v950_v54  ;;  %v8260_v42 = vld [vmem:[#allocation77_spill] sm:$0xff]  ;;  %v8263_v32 = vld [vmem:[#allocation79_spill] sm:$0xff] }
 0x213   : > { %v974_v29 = vmul.f32 %v4819_v48, %v942_v46  ;;  %v947_v47 = vsel %vm939_vm3, %v8255_v61, %v8256_v34  ;;  %v1025_v1 = vmul.f32 %v8258_v31, %v977_v25  ;;  %v1026_v16 = vmul.f32 %v8258_v31, %v978_v53  ;;  %v8264_v53 = vld [vmem:[#allocation81_spill] sm:$0xff] }
 0x214   : > { %v1017_v50 = vmul.f32 %v8260_v42, %v969_v57  ;;  %v5303_v9 = vrot.slane %v3364_v56, %v4602_v26  ;;  %v5306_v54 = vrot.slane %v3364_v56, %v4610_v44  ;;  %v983_v46 = vmul.f32 %v4813_v17, %v955_v49  ;;  %v8265_v56 = vld [vmem:[#allocation75_spill] sm:$0xff] }
 0x215   : > { %v5289_v38 = vpop.permute.xlu1 %1416  ;;  %v5298_v15 = vpop.permute.xlu0 %1562  ;;  %v1018_v27 = vmul.f32 %v8260_v42, %v970_v43  ;;  %v1021_v61 = vmul.f32 %v8263_v32, %v973_v39  ;;  %v1022_v25 = vmul.f32 %v8263_v32, %v974_v29  ;;  %v984_v34 = vmul.f32 %v4819_v48, %v947_v47 }
 0x216   : > { %8259 = vst [vmem:[#allocation33_spill] sm:$0xff] %v5298_v15  ;;  %8261 = vst [vmem:[#allocation35_spill] sm:$0xff] %v5303_v9  ;;  %v5313_v10 = vadd.f32 %v1019_v14, %v893_v60  ;;  %v5315_v31 = vadd.f32 %v1020_v13, %v894_v2  ;;  %v1023_v57 = vmul.f32 %v8264_v53, %v975_v23  ;;  %v8269_v13 = vld [vmem:[#allocation83_spill] sm:$0xff] }
 0x217   : > { %8262 = vst [vmem:[#allocation32_spill] sm:$0xff] %v5306_v54  ;;  %v5324_v49 = vsel %vm939_vm3, %v8266_v20, %v8265_v56  ;;  %v5330_v32 = vsel %vm939_vm3, %v8265_v56, %v8266_v20  ;;  %v5332_v60 = vadd.f32 %v1025_v1, %v899_v41  ;;  %v1024_v2 = vmul.f32 %v8264_v53, %v976_v33  ;;  %v8270_v1 = vld [vmem:[#allocation88_spill] sm:$0xff] }
 0x218   : > { %8267 = vst [vmem:[#allocation42_spill] sm:$0xff] %v5324_v49  ;;  %8268 = vst [vmem:[#allocation34_spill] sm:$0xff] %v5330_v32  ;;  %v5337_v23 = vadd.f32 %v1026_v16, %v900_v28  ;;  %v1033_v14 = vadd.f32 %v1017_v50, %v5172_v11  ;;  %v1027_v39 = vmul.f32 %v8269_v13, %v979_v4  ;;  %v8271_v33 = vld [vmem:[#allocation80_spill] sm:$0xff]  ;;  %v8272_v50 = vld [vmem:[#allocation85_spill] sm:$0xff] }
 0x219   : > { %v5318_v15 = vpop.permute.xlu1 %1420  ;;  %v5335_v43 = vpop.permute.xlu0 %1481  ;;  %v1028_v29 = vmul.f32 %v8269_v13, %v980_v36  ;;  %v1034_v47 = vadd.f32 %v1018_v27, %v5178_v6  ;;  %v5345_v20 = vadd.f32 %v1021_v61, %v5204_v52  ;;  %v5348_v41 = vadd.f32 %v1022_v25, %v5207_v5  ;;  %v8273_v52 = vld [vmem:[#allocation97_spill] sm:$0xff]  ;;  %v8275_v27 = vld [vmem:[#allocation90_spill] sm:$0xff]  ;;  %v8280_v13 = vld [vmem:[#allocation84_spill] sm:$0xff] }
 0x21a   : > { %v1082_v16 = vsel %vm1081_vm4, %v8271_v33, %v8270_v1  ;;  %v1039_v11 = vadd.f32 %v1023_v57, %v5181_v3  ;;  %v1031_v28 = vmul.f32 %v8272_v50, %v983_v46  ;;  %v1090_v6 = vsel %vm1081_vm4, %v8270_v1, %v8271_v33  ;;  %v8274_v4 = vld [vmem:[#allocation89_spill] sm:$0xff]  ;;  %v8276_v61 = vld [vmem:[#allocation82_spill] sm:$0xff] }
 0x21b   : > { %v1085_v5 = vsel %vm1081_vm4, %v8274_v4, %v8273_v52  ;;  %v1040_v42 = vadd.f32 %v1024_v2, %v5183_v51  ;;  %v1084_v3 = vsel %vm1081_vm4, %v8276_v61, %v8275_v27  ;;  %v1092_v46 = vsel %vm1081_vm4, %v8275_v27, %v8276_v61  ;;  %v8279_v2 = vld [vmem:[#allocation92_spill] sm:$0xff]  ;;  %v8285_v27 = vld [vmem:[#allocation87_spill] sm:$0xff] }
 0x21c   : > { %v1093_v25 = vsel %vm1081_vm4, %v8273_v52, %v8274_v4  ;;  %v5383_v57 = vadd.f32 %v1027_v39, %v5188_v22  ;;  %v5386_v51 = vadd.f32 %v1028_v29, %v5201_v63  ;;  %v1111_v56 = vmul.f32 %v4984_v18, %v1082_v16  ;;  %v3365_v39 = vld [vmem:[%s7708_s1 + $0x10] sm:$0x3] }
 0x21d   : > { %v5365_v36 = vpop.permute.xlu1 %1428  ;;  %v5380_v53 = vpop.permute.xlu0 %1497  ;;  %v1086_v1 = vsel %vm1081_vm4, %v8280_v13, %v8279_v2  ;;  %v5394_v33 = vmul.f32 %v8272_v50, %v984_v34  ;;  %v1112_v52 = vmul.f32 %v4987_v62, %v1090_v6  ;;  %v1094_v22 = vsel %vm1081_vm4, %v8279_v2, %v8280_v13  ;;  %v8289_v13 = vld [vmem:[#allocation96_spill] sm:$0xff] }
 0x21e   : > { %8277 = vst [vmem:[#allocation36_spill] sm:$0xff] %v5383_v57  ;;  %8278 = vst [vmem:[#allocation44_spill] sm:$0xff] %v5386_v51  ;;  %v1117_v63 = vmul.f32 %v4984_v18, %v1085_v5  ;;  %v5406_v29 = vadd.f32 %v1031_v28, %v5210_v7  ;;  %v1115_v16 = vmul.f32 %v4984_v18, %v1084_v3  ;;  %v8284_v5 = vld [vmem:[#allocation95_spill] sm:$0xff] }
 0x21f   : > { %8281 = vst [vmem:[#allocation37_spill] sm:$0xff] %v5394_v33  ;;  %v5410_v34 = vmul.f32 %v4987_v62, %v1092_v46  ;;  %v1118_v50 = vmul.f32 %v4987_v62, %v1093_v25  ;;  %v5416_v4 = vmul.f32 %v4984_v18, %v1086_v1  ;;  %v1083_v61 = vsel %vm1081_vm4, %v8285_v27, %v8284_v5  ;;  %v8286_v28 = vld [vmem:[#allocation99_spill] sm:$0xff] }
 0x220   : > { %8282 = vst [vmem:[#allocation45_spill] sm:$0xff] %v5406_v29  ;;  %v1091_v7 = vsel %vm1081_vm4, %v8284_v5, %v8285_v27  ;;  %v8287_v3 = vld [vmem:[#allocation91_spill] sm:$0xff]  ;;  %v5433_v2 = vmul.f32 %v4987_v62, %v1094_v22  ;;  %v1159_v1 = vmul.f32 %v8289_v13, %v1111_v56  ;;  %v1160_v48 = vmul.f32 %v8289_v13, %v1112_v52  ;;  %v8291_v5 = vld [vmem:[#allocation98_spill] sm:$0xff] }
 0x221   : > { %v5413_v6 = vpop.permute.xlu1 %1436  ;;  %v1087_v46 = vsel %vm1081_vm4, %v8287_v3, %v8286_v28  ;;  %v5430_v25 = vpop.permute.xlu0 %1574  ;;  %v1165_v27 = vmul.f32 %v8291_v5, %v1117_v63  ;;  %v1095_v49 = vsel %vm1081_vm4, %v8286_v28, %v8287_v3  ;;  %v1113_v22 = vmul.f32 %v4984_v18, %v1083_v61  ;;  %v8293_v52 = vld [vmem:[#allocation119_spill] sm:$0xff]  ;;  %v8295_v3 = vld [vmem:[#allocation112_spill] sm:$0xff] }
 0x222   : > { %8283 = vst [vmem:[#allocation38_spill] sm:$0xff] %v5413_v6  ;;  %8288 = vst [vmem:[#allocation46_spill] sm:$0xff] %v5430_v25  ;;  %v5438_v6 = vrot.slane %v3365_v39, %v4602_v26  ;;  %v5447_v25 = vrot.slane %v3365_v39, %v4610_v44  ;;  %v1114_v56 = vmul.f32 %v4987_v62, %v1091_v7  ;;  %v8294_v13 = vld [vmem:[#allocation111_spill] sm:$0xff] }
 0x223   : > { %v1166_v17 = vmul.f32 %v8291_v5, %v1118_v50  ;;  %v1121_v26 = vmul.f32 %v4984_v18, %v1087_v46  ;;  %v1224_v63 = vsel %vm1223_vm6, %v8294_v13, %v8293_v52  ;;  %v1232_v44 = vsel %vm1223_vm6, %v8293_v52, %v8294_v13  ;;  %v8296_v46 = vld [vmem:[#allocation104_spill] sm:$0xff]  ;;  %v8297_v51 = vld [vmem:[#allocation103_spill] sm:$0xff] }
 0x224   : > { %8290 = vst [vmem:[#allocation47_spill] sm:$0xff] %v5438_v6  ;;  %8292 = vst [vmem:[#allocation39_spill] sm:$0xff] %v5447_v25  ;;  %v1366_v39 = vsel %vm1365_vm5, %v4708_v30, %v4880_v12  ;;  %v1374_v50 = vsel %vm1365_vm5, %v4880_v12, %v4708_v30  ;;  %v1175_v7 = vadd.f32 %v1159_v1, %v1033_v14  ;;  %v8298_v18 = vld [vmem:[#allocation100_spill] sm:$0xff] }
 0x225   : > { %v1476_v32 = vpop.permute.xlu1 %1475  ;;  %v5469_v61 = vpop.permute.xlu0 %1483  ;;  %v1122_v28 = vmul.f32 %v4987_v62, %v1095_v49  ;;  %v1225_v5 = vsel %vm1223_vm6, %v8296_v46, %v8295_v3  ;;  %v1233_v52 = vsel %vm1223_vm6, %v8295_v3, %v8296_v46  ;;  %v1176_v13 = vadd.f32 %v1160_v48, %v1034_v47 }
 0x226   : > { %v5480_v29 = vadd.f32 %v1165_v27, %v1039_v11  ;;  %v1161_v30 = vmul.f32 %v8297_v51, %v1113_v22  ;;  %v1162_v12 = vmul.f32 %v8297_v51, %v1114_v56  ;;  %v1253_v14 = vmul.f32 %v5145_v21, %v1224_v63  ;;  %v8299_v27 = vld [vmem:[#allocation101_spill] sm:$0xff] }
 0x227   : > { %v1254_v49 = vmul.f32 %v5161_v35, %v1232_v44  ;;  %v1395_v1 = vmul.f32 %v5303_v9, %v1366_v39  ;;  %v1396_v62 = vmul.f32 %v5306_v54, %v1374_v50  ;;  %v5488_v33 = vadd.f32 %v1166_v17, %v1040_v42  ;;  %v8300_v22 = vld [vmem:[#allocation93_spill] sm:$0xff] }
 0x228   : > { %v5491_v3 = vmul.f32 %v8298_v18, %v1121_v26  ;;  %v1255_v48 = vmul.f32 %v5145_v21, %v1225_v5  ;;  %v1256_v47 = vmul.f32 %v5161_v35, %v1233_v52  ;;  %v5498_v51 = vmul.f32 %v8298_v18, %v1122_v28  ;;  %v8301_v44 = vld [vmem:[#allocation105_spill] sm:$0xff] }
 0x229   : > { %v1555_v57 = vpop.permute.xlu1 %1554  ;;  %v5495_v11 = vpop.permute.xlu0 %1499  ;;  %v5504_v56 = vsel %vm1081_vm4, %v8300_v22, %v8299_v27  ;;  %v1301_v17 = vmul.f32 %v4748_v37, %v1253_v14  ;;  %v1302_v42 = vmul.f32 %v4748_v37, %v1254_v49  ;;  %v5512_v26 = vsel %vm1081_vm4, %v8299_v27, %v8300_v22 }
 0x22a   : > { %v1177_v63 = vadd.f32 %v1161_v30, %v5313_v10  ;;  %v1178_v18 = vadd.f32 %v1162_v12, %v5315_v31  ;;  %v1163_v39 = vmul.f32 %v8301_v44, %v1115_v16  ;;  %v1443_v50 = vmul.f32 %v5051_v55, %v1395_v1  ;;  %v8302_v10 = vld [vmem:[#allocation120_spill] sm:$0xff] }
 0x22b   : > { %v1444_v28 = vmul.f32 %v5051_v55, %v1396_v62  ;;  %v1367_v37 = vsel %vm1365_vm5, %v4967_v40, %v5136_v58  ;;  %v1375_v46 = vsel %vm1365_vm5, %v5136_v58, %v4967_v40  ;;  %v1303_v52 = vmul.f32 %v8302_v10, %v1255_v48  ;;  %v8303_v40 = vld [vmem:[#allocation124_spill] sm:$0xff]  ;;  %v8304_v58 = vld [vmem:[#allocation115_spill] sm:$0xff] }
 0x22c   : > { %v1304_v31 = vmul.f32 %v8302_v10, %v1256_v47  ;;  %v1317_v30 = vadd.f32 %v1301_v17, %v1175_v7  ;;  %v1318_v12 = vadd.f32 %v1302_v42, %v1176_v13  ;;  %v1228_v1 = vsel %vm1223_vm6, %v8304_v58, %v8303_v40 }
 0x22d   : > { %v1492_v5 = vpop.permute.xlu1 %1491  ;;  %v5533_v55 = vpop.permute.xlu0 %1578  ;;  %v1236_v48 = vsel %vm1223_vm6, %v8303_v40, %v8304_v58  ;;  %v1398_v47 = vmul.f32 %v5306_v54, %v1375_v46 }
 0x22e   : > { %v1508_v16 = vsel %vm1507_vm7, %v1476_v32, %v1492_v5  ;;  %v1516_v62 = vsel %vm1507_vm7, %v1492_v5, %v1476_v32  ;;  %v1397_v32 = vmul.f32 %v5303_v9, %v1367_v37  ;;  %v1459_v7 = vadd.f32 %v1443_v50, %v1317_v30 }
 0x22f   : > { %v1537_v14 = vmul.f32 %v5438_v6, %v1508_v16  ;;  %v1538_v49 = vmul.f32 %v5447_v25, %v1516_v62  ;;  %v1460_v13 = vadd.f32 %v1444_v28, %v1318_v12  ;;  %v1446_v5 = vmul.f32 %v5289_v38, %v1398_v47 }
 0x230   : > { %v1445_v42 = vmul.f32 %v5289_v38, %v1397_v32  ;;  %v1164_v62 = vmul.f32 %v8301_v44, %v5410_v34  ;;  %v1319_v30 = vadd.f32 %v1303_v52, %v1177_v63  ;;  %v1320_v38 = vadd.f32 %v1304_v31, %v1178_v18  ;;  %v8305_v32 = vld [vmem:[#allocation107_spill] sm:$0xff]  ;;  %v8307_v34 = vld [vmem:[#allocation113_spill] sm:$0xff] }
 0x231   : > { %v1585_v27 = vmul.f32 %v1555_v57, %v1537_v14  ;;  %v1586_v22 = vmul.f32 %v1555_v57, %v1538_v49  ;;  %v1494_v17 = vpop.permute.xlu1 %1493  ;;  %v1261_v12 = vmul.f32 %v5145_v21, %v1228_v1  ;;  %v1167_v47 = vmul.f32 %v8305_v32, %v5416_v4  ;;  %v8310_v1 = vld [vmem:[#allocation114_spill] sm:$0xff] }
 0x232   : > { %v1509_v10 = vsel %vm1507_vm7, %v5212_v8, %v1494_v17  ;;  %v1517_v16 = vsel %vm1507_vm7, %v1494_v17, %v5212_v8  ;;  %v1619_v57 = vpop.permute.xlu0 %1618  ;;  %v1262_v18 = vmul.f32 %v5161_v35, %v1236_v48  ;;  %v1461_v44 = vadd.f32 %v1445_v42, %v1319_v30 }
 0x233   : > { %v1539_v37 = vmul.f32 %v5438_v6, %v1509_v10  ;;  %v1540_v50 = vmul.f32 %v5447_v25, %v1517_v16  ;;  %v1601_v28 = vadd.f32 %v1585_v27, %v1459_v7  ;;  %v1602_v46 = vadd.f32 %v1586_v22, %v1460_v13  ;;  %v8306_v13 = vld [vmem:[#allocation121_spill] sm:$0xff]  ;;  %v8311_v27 = vld [vmem:[#allocation106_spill] sm:$0xff] }
 0x234   : > { %v1168_v7 = vmul.f32 %v8305_v32, %v5433_v2  ;;  %v1226_v63 = vsel %vm1223_vm6, %v8307_v34, %v8306_v13  ;;  %v1462_v52 = vadd.f32 %v1446_v5, %v1320_v38  ;;  %v1227_v4 = vsel %vm1223_vm6, %v8311_v27, %v8310_v1  ;;  %v8312_v22 = vld [vmem:[#allocation122_spill] sm:$0xff]  ;;  %v8315_v32 = vld [vmem:[#allocation132_spill] sm:$0xff] }
 0x235   : > { %v1587_v14 = vmul.f32 %v5263_v59, %v1539_v37  ;;  %v1588_v49 = vmul.f32 %v5263_v59, %v1540_v50  ;;  %v1649_v40 = vadd.f32 %v1619_v57, %v1601_v28  ;;  %v1650_v8 = vadd.f32 %v1619_v57, %v1602_v46  ;;  %v5562_v58 = vpop.permute.xlu1 %1566 }
 0x236   : > { %v1235_v2 = vsel %vm1223_vm6, %v8310_v1, %v8311_v27  ;;  %v1234_v48 = vsel %vm1223_vm6, %v8306_v13, %v8307_v34  ;;  %v1309_v17 = vmul.f32 %v8312_v22, %v1261_v12  ;;  %v1257_v42 = vmul.f32 %v5145_v21, %v1226_v63  ;;  %v8316_v13 = vld [vmem:[#allocation18_spill] sm:$0xff]  ;;  %v8317_v34 = vld [vmem:[#allocation13_spill] sm:$0xff] }
 0x237   : > { %v5573_v59 = vmax.f32 %v1649_v40, 0.0  ;;  %v5575_v31 = vmax.f32 %v1650_v8, 0.0  ;;  %v1603_v5 = vadd.f32 %v1587_v14, %v1461_v44  ;;  %v1604_v10 = vadd.f32 %v1588_v49, %v1462_v52  ;;  %v8314_v8 = vld [vmem:[#allocation11_spill] sm:$0xff] }
 0x238   : > { %v1179_v37 = vadd.f32 %v1163_v39, %v5345_v20  ;;  %v1180_v50 = vadd.f32 %v1164_v62, %v5348_v41  ;;  %v1183_v28 = vadd.f32 %v1167_v47, %v5332_v60  ;;  %v1184_v46 = vadd.f32 %v1168_v7, %v5337_v23 }
 0x239   : > { %8308 = vst [vmem:[#allocation48_spill] sm:$0xff] %v5573_v59  ;;  %8309 = vst [vmem:[#allocation40_spill] sm:$0xff] %v5575_v31  ;;  %v1681_v16 = vadd.f32 %v5575_v31, %v5573_v59  ;;  %v1310_v30 = vmul.f32 %v8312_v22, %v1262_v18  ;;  %v1305_v38 = vmul.f32 %v4801_v24, %v1257_v42 }
 0x23a   : > { %v1623_v57 = vpop.permute.xlu1 %1622  ;;  %v1259_v14 = vmul.f32 %v5145_v21, %v1227_v4  ;;  %v1260_v49 = vmul.f32 %v5161_v35, %v1235_v2  ;;  %v1258_v20 = vmul.f32 %v5161_v35, %v1234_v48  ;;  %v1325_v39 = vadd.f32 %v1309_v17, %v1183_v28 }
 0x23b   : > { %v1651_v12 = vadd.f32 %v1623_v57, %v1603_v5  ;;  %v1652_v40 = vadd.f32 %v1623_v57, %v1604_v10  ;;  %1682 = vadd.xlane.f32.xlu1 %v1681_v16  ;;  %v1370_v60 = vsel %vm1365_vm5, %v4807_v45, %v4976_v19  ;;  %v1378_v23 = vsel %vm1365_vm5, %v4976_v19, %v4807_v45 }
 0x23c   : > { %v1368_v47 = vsel %vm1365_vm5, %v8315_v32, %v8314_v8  ;;  %v1376_v7 = vsel %vm1365_vm5, %v8314_v8, %v8315_v32  ;;  %v1369_v63 = vsel %vm1365_vm5, %v8317_v34, %v8316_v13  ;;  %v1377_v45 = vsel %vm1365_vm5, %v8316_v13, %v8317_v34 }
 0x23d   : > { %v5610_v41 = vmax.f32 %v1651_v12, 0.0  ;;  %v5612_v62 = vmax.f32 %v1652_v40, 0.0  ;;  %v1306_v18 = vmul.f32 %v4801_v24, %v1258_v20  ;;  %v1321_v44 = vadd.f32 %v1305_v38, %v1179_v37 }
 0x23e   : > { %v1480_v19 = vpop.permute.xlu1 %1479  ;;  %v1326_v52 = vadd.f32 %v1310_v30, %v1184_v46  ;;  %v1403_v27 = vmul.f32 %v5303_v9, %v1370_v60  ;;  %v1404_v4 = vmul.f32 %v5306_v54, %v1378_v23  ;;  %v1512_v2 = vsel %vm1507_vm7, %v5469_v61, %v5495_v11  ;;  %v8319_v60 = vld [vmem:[#allocation16_spill] sm:$0xff] }
 0x23f   : > { %8313 = vst [vmem:[#allocation49_spill] sm:$0xff] %v5610_v41  ;;  %v1684_v1 = vadd.f32 %v5612_v62, %v5610_v41  ;;  %v1520_v48 = vsel %vm1507_vm7, %v5495_v11, %v5469_v61  ;;  %v1399_v24 = vmul.f32 %v5303_v9, %v1368_v47  ;;  %v1400_v22 = vmul.f32 %v5306_v54, %v1376_v7  ;;  %v8320_v47 = vld [vmem:[#allocation33_spill] sm:$0xff] }
 0x240   : > { %v1401_v17 = vmul.f32 %v5303_v9, %v1369_v63  ;;  %v1402_v42 = vmul.f32 %v5306_v54, %v1377_v45  ;;  %v1451_v5 = vmul.f32 %v5365_v36, %v1403_v27  ;;  %v1452_v10 = vmul.f32 %v5365_v36, %v1404_v4  ;;  %v1635_v27 = vpop.permute.xlu0 %1634 }
 0x241   : > { %1685 = vadd.xlane.f32.xlu0 %v1684_v1  ;;  %v1511_v16 = vsel %vm1507_vm7, %v5335_v43, %v5380_v53  ;;  %v1519_v61 = vsel %vm1507_vm7, %v5380_v53, %v5335_v43  ;;  %v1545_v37 = vmul.f32 %v5438_v6, %v1512_v2  ;;  %v1546_v28 = vmul.f32 %v5447_v25, %v1520_v48  ;;  %v8318_v53 = vld [vmem:[#allocation135_spill] sm:$0xff] }
 0x242   : > { %v1496_v11 = vpop.permute.xlu1 %1495  ;;  %v1447_v57 = vmul.f32 %v5318_v15, %v1399_v24  ;;  %v1448_v30 = vmul.f32 %v5318_v15, %v1400_v22  ;;  %v1322_v43 = vadd.f32 %v1306_v18, %v1180_v50  ;;  %v1307_v40 = vmul.f32 %v8318_v53, %v1259_v14  ;;  %v8321_v50 = vld [vmem:[#allocation20_spill] sm:$0xff] }
 0x243   : > { %v1510_v46 = vsel %vm1507_vm7, %v1480_v19, %v1496_v11  ;;  %v1518_v36 = vsel %vm1507_vm7, %v1496_v11, %v1480_v19  ;;  %v1308_v20 = vmul.f32 %v8318_v53, %v1260_v49  ;;  %v1449_v23 = vmul.f32 %v8319_v60, %v1401_v17 }
 0x244   : > { %v1541_v38 = vmul.f32 %v5438_v6, %v1510_v46  ;;  %v1542_v12 = vmul.f32 %v5447_v25, %v1518_v36  ;;  %v1543_v8 = vmul.f32 %v5438_v6, %v1511_v16  ;;  %v1544_v32 = vmul.f32 %v5447_v25, %v1519_v61  ;;  %v8324_v16 = vld [vmem:[#allocation36_spill] sm:$0xff]  ;;  %v1490_v46 = vpop.permute.xlu0 %1489 }
 0x245   : > { %v1467_v34 = vadd.f32 %v1451_v5, %v1325_v39  ;;  %v1468_v63 = vadd.f32 %v1452_v10, %v1326_v52  ;;  %v1125_v14 = vmul.f32 %v8321_v50, %v5504_v56  ;;  %v1450_v49 = vmul.f32 %v8319_v60, %v1402_v42  ;;  %v8322_v5 = vld [vmem:[#allocation28_spill] sm:$0xff]  ;;  %v8323_v10 = vld [vmem:[#allocation37_spill] sm:$0xff] }
 0x246   : > { %v1589_v7 = vmul.f32 %v8320_v47, %v1541_v38  ;;  %v1590_v13 = vmul.f32 %v8320_v47, %v1542_v12  ;;  %v1571_v15 = vpop.permute.xlu1 %1570  ;;  %v1463_v18 = vadd.f32 %v1447_v57, %v1321_v44  ;;  %v1464_v1 = vadd.f32 %v1448_v30, %v1322_v43  ;;  %v8325_v36 = vld [vmem:[#allocation44_spill] sm:$0xff]  ;;  %v8327_v38 = vld [vmem:[#allocation102_spill] sm:$0xff] }
 0x247   : > { %v1593_v45 = vmul.f32 %v1571_v15, %v1545_v37  ;;  %v1594_v19 = vmul.f32 %v1571_v15, %v1546_v28  ;;  %v1323_v4 = vadd.f32 %v1307_v40, %v5480_v29  ;;  %v1324_v2 = vadd.f32 %v1308_v20, %v5488_v33  ;;  %v8326_v57 = vld [vmem:[#allocation12_spill] sm:$0xff] }
 0x248   : > { %v1591_v22 = vmul.f32 %v5562_v58, %v1543_v8  ;;  %v1592_v39 = vmul.f32 %v5562_v58, %v1544_v32  ;;  %v1605_v52 = vadd.f32 %v1589_v7, %v1463_v18  ;;  %v1606_v17 = vadd.f32 %v1590_v13, %v1464_v1  ;;  %v8328_v43 = vld [vmem:[#allocation116_spill] sm:$0xff]  ;;  %v8331_v8 = vld [vmem:[#allocation29_spill] sm:$0xff]  ;;  %v8336_v18 = vld [vmem:[#allocation118_spill] sm:$0xff] }
 0x249   : > { %v1609_v48 = vadd.f32 %v1593_v45, %v1467_v34  ;;  %v1610_v24 = vadd.f32 %v1594_v19, %v1468_v63  ;;  %v1048_v56 = vadd.f32 %v8323_v10, %v8322_v5  ;;  %v5685_v44 = vadd.f32 %v5491_v3, %v8324_v16  ;;  %v8329_v3 = vld [vmem:[#allocation108_spill] sm:$0xff]  ;;  %v8337_v1 = vld [vmem:[#allocation110_spill] sm:$0xff] }
 0x24a   : > { %v1465_v29 = vadd.f32 %v1449_v23, %v1323_v4  ;;  %v1466_v28 = vadd.f32 %v1450_v49, %v1324_v2  ;;  %v5689_v58 = vadd.f32 %v5498_v51, %v8325_v36  ;;  %v1126_v30 = vmul.f32 %v8326_v57, %v5512_v26  ;;  %v8332_v26 = vld [vmem:[#allocation23_spill] sm:$0xff] }
 0x24b   : > { %v1657_v42 = vadd.f32 %v1635_v27, %v1609_v48  ;;  %v1627_v61 = vpop.permute.xlu1 %1626  ;;  %v1658_v11 = vadd.f32 %v1635_v27, %v1610_v24  ;;  %v1173_v12 = vmul.f32 %v8327_v38, %v1125_v14  ;;  %v1229_v53 = vsel %vm1223_vm6, %v8329_v3, %v8328_v43  ;;  %v8335_v14 = vld [vmem:[#allocation45_spill] sm:$0xff]  ;;  %v8338_v2 = vld [vmem:[#allocation27_spill] sm:$0xff]  ;;  %v8339_v48 = vld [vmem:[#allocation14_spill] sm:$0xff] }
 0x24c   : > { %v1653_v33 = vadd.f32 %v1627_v61, %v1605_v52  ;;  %v1654_v37 = vadd.f32 %v1627_v61, %v1606_v17  ;;  %v1607_v60 = vadd.f32 %v1591_v22, %v1465_v29  ;;  %v1608_v23 = vadd.f32 %v1592_v39, %v1466_v28  ;;  %v1506_v17 = vpop.permute.xlu0 %1505 }
 0x24d   : > { %v1237_v51 = vsel %vm1223_vm6, %v8328_v43, %v8329_v3  ;;  %v1373_v32 = vsel %vm1365_vm5, %v8332_v26, %v8331_v8  ;;  %v1381_v47 = vsel %vm1365_vm5, %v8331_v8, %v8332_v26  ;;  %v5714_v7 = vmax.f32 %v1657_v42, 0.0  ;;  %v8340_v43 = vld [vmem:[#allocation19_spill] sm:$0xff]  ;;  %v8342_v8 = vld [vmem:[#allocation26_spill] sm:$0xff] }
 0x24e   : > { %v5698_v40 = vmax.f32 %v1653_v33, 0.0  ;;  %v5700_v20 = vmax.f32 %v1654_v37, 0.0  ;;  %v5716_v15 = vmax.f32 %v1658_v11, 0.0  ;;  %v1174_v19 = vmul.f32 %v8327_v38, %v1126_v30 }
 0x24f   : > { %8333 = vst [vmem:[#allocation43_spill] sm:$0xff] %v5714_v7  ;;  %v1631_v13 = vpop.permute.xlu1 %1630  ;;  %v1189_v49 = vadd.f32 %v1173_v12, %v8335_v14  ;;  %v1231_v27 = vsel %vm1223_vm6, %v8337_v1, %v8336_v18  ;;  %v1239_v4 = vsel %vm1223_vm6, %v8336_v18, %v8337_v1  ;;  %v1371_v24 = vsel %vm1365_vm5, %v8339_v48, %v8338_v2  ;;  %v8344_v1 = vld [vmem:[#allocation34_spill] sm:$0xff] }
 0x250   : > { %8330 = vst [vmem:[#allocation41_spill] sm:$0xff] %v5698_v40  ;;  %8334 = vst [vmem:[#allocation51_spill] sm:$0xff] %v5716_v15  ;;  %v1655_v34 = vadd.f32 %v1631_v13, %v1607_v60  ;;  %v1656_v63 = vadd.f32 %v1631_v13, %v1608_v23  ;;  %v1687_v45 = vadd.f32 %v5700_v20, %v5698_v40  ;;  %v8341_v60 = vld [vmem:[#allocation10_spill] sm:$0xff] }
 0x251   : > { %v1379_v22 = vsel %vm1365_vm5, %v8338_v2, %v8339_v48  ;;  %v1263_v5 = vmul.f32 %v5145_v21, %v1229_v53  ;;  %v1264_v10 = vmul.f32 %v5161_v35, %v1237_v51  ;;  %v1409_v16 = vmul.f32 %v5303_v9, %v1373_v32  ;;  %v8346_v2 = vld [vmem:[#allocation42_spill] sm:$0xff] }
 0x252   : > { %v5738_v39 = vmax.f32 %v1655_v34, 0.0  ;;  %v5740_v52 = vmax.f32 %v1656_v63, 0.0  ;;  %1688 = vadd.xlane.f32.xlu0 %v1687_v45  ;;  %v1410_v42 = vmul.f32 %v5306_v54, %v1381_v47  ;;  %v1267_v29 = vmul.f32 %v5145_v21, %v1231_v27  ;;  %v8343_v63 = vld [vmem:[#allocation25_spill] sm:$0xff]  ;;  %v8347_v48 = vld [vmem:[#allocation134_spill] sm:$0xff] }
 0x253   : > { %v1486_v61 = vpop.permute.xlu1 %1485  ;;  %v1268_v11 = vmul.f32 %v5161_v35, %v1239_v4  ;;  %v1693_v37 = vadd.f32 %v5716_v15, %v5714_v7  ;;  %v1405_v28 = vmul.f32 %v5303_v9, %v1371_v24  ;;  %v1406_v36 = vmul.f32 %v5306_v54, %v1379_v22  ;;  %v8345_v27 = vld [vmem:[#allocation133_spill] sm:$0xff] }
 0x254   : > { %v1690_v33 = vadd.f32 %v5740_v52, %v5738_v39  ;;  %v1515_v30 = vsel %vm1507_vm7, %v1490_v46, %v1506_v17  ;;  %v1523_v38 = vsel %vm1507_vm7, %v1506_v17, %v1490_v46  ;;  %v1190_v12 = vadd.f32 %v1174_v19, %v1048_v56 }
 0x255   : > { %v1315_v3 = vmul.f32 %v8340_v43, %v1267_v29  ;;  %v1316_v53 = vmul.f32 %v8340_v43, %v1268_v11  ;;  %v1311_v23 = vmul.f32 %v8341_v60, %v1263_v5  ;;  %v1312_v51 = vmul.f32 %v8341_v60, %v1264_v10  ;;  %v8351_v43 = vld [vmem:[#allocation137_spill] sm:$0xff]  ;;  %v8352_v60 = vld [vmem:[#allocation15_spill] sm:$0xff] }
 0x256   : > { %1691 = vadd.xlane.f32.xlu1 %v1690_v33  ;;  %1694 = vadd.xlane.f32.xlu0 %v1693_v37  ;;  %v1457_v26 = vmul.f32 %v8342_v8, %v1409_v16  ;;  %v1458_v32 = vmul.f32 %v8342_v8, %v1410_v42  ;;  %v1551_v46 = vmul.f32 %v5438_v6, %v1515_v30  ;;  %v8348_v16 = vld [vmem:[#allocation46_spill] sm:$0xff] }
 0x257   : > { %v1502_v47 = vpop.permute.xlu1 %1501  ;;  %v1552_v34 = vmul.f32 %v5447_v25, %v1523_v38  ;;  %v1453_v45 = vmul.f32 %v8343_v63, %v1405_v28  ;;  %v1454_v19 = vmul.f32 %v8343_v63, %v1406_v36  ;;  %v981_v4 = vmul.f32 %v8345_v27, %v8344_v1  ;;  %v8349_v36 = vld [vmem:[#allocation9_spill] sm:$0xff]  ;;  %v8350_v30 = vld [vmem:[#allocation22_spill] sm:$0xff] }
 0x258   : > { %v1513_v13 = vsel %vm1507_vm7, %v1486_v61, %v1502_v47  ;;  %v1521_v56 = vsel %vm1507_vm7, %v1502_v47, %v1486_v61  ;;  %v982_v24 = vmul.f32 %v8347_v48, %v8346_v2  ;;  %v1331_v22 = vadd.f32 %v1315_v3, %v1189_v49  ;;  %v1647_v2 = vpop.permute.xlu0 %1646 }
 0x259   : > { %v1547_v14 = vmul.f32 %v5438_v6, %v1513_v13  ;;  %v1548_v18 = vmul.f32 %v5447_v25, %v1521_v56  ;;  %v1332_v17 = vadd.f32 %v1316_v53, %v1190_v12  ;;  %v1327_v5 = vadd.f32 %v1311_v23, %v5685_v44  ;;  %v8353_v44 = vld [vmem:[#allocation94_spill] sm:$0xff] }
 0x25a   : > { %v1328_v10 = vadd.f32 %v1312_v51, %v5689_v58  ;;  %v1473_v37 = vadd.f32 %v1457_v26, %v1331_v22  ;;  %v761_v38 = vadd.f32 %v8350_v30, %v8349_v36  ;;  %v762_v49 = vadd.f32 %v8352_v60, %v8351_v43  ;;  %v8354_v53 = vld [vmem:[#allocation86_spill] sm:$0xff]  ;;  %v8355_v26 = vld [vmem:[#allocation131_spill] sm:$0xff] }
 0x25b   : > { %v1595_v42 = vmul.f32 %v8348_v16, %v1547_v14  ;;  %v1596_v61 = vmul.f32 %v8348_v16, %v1548_v18  ;;  %v1583_v29 = vpop.permute.xlu1 %1582  ;;  %v1474_v28 = vadd.f32 %v1458_v32, %v1332_v17  ;;  %v1469_v12 = vadd.f32 %v1453_v45, %v1327_v5  ;;  %v8356_v32 = vld [vmem:[#allocation117_spill] sm:$0xff]  ;;  %v8358_v45 = vld [vmem:[#allocation31_spill] sm:$0xff]  ;;  %v8359_v14 = vld [vmem:[#allocation78_spill] sm:$0xff] }
 0x25c   : > { %v1599_v11 = vmul.f32 %v1583_v29, %v1551_v46  ;;  %v1600_v33 = vmul.f32 %v1583_v29, %v1552_v34  ;;  %v1470_v3 = vadd.f32 %v1454_v19, %v1328_v10  ;;  %v1088_v58 = vsel %vm1081_vm4, %v8354_v53, %v8353_v44  ;;  %v8357_v34 = vld [vmem:[#allocation30_spill] sm:$0xff] }
 0x25d   : > { %v1096_v23 = vsel %vm1081_vm4, %v8353_v44, %v8354_v53  ;;  %v1230_v47 = vsel %vm1223_vm6, %v8356_v32, %v8355_v26  ;;  %v1238_v13 = vsel %vm1223_vm6, %v8355_v26, %v8356_v32  ;;  %v1611_v56 = vadd.f32 %v1595_v42, %v1469_v12 }
 0x25e   : > { %v1615_v51 = vadd.f32 %v1599_v11, %v1473_v37  ;;  %v1616_v8 = vadd.f32 %v1600_v33, %v1474_v28  ;;  %v1612_v46 = vadd.f32 %v1596_v61, %v1470_v3  ;;  %v903_v63 = vadd.f32 %v8357_v34, %v761_v38  ;;  %v8360_v33 = vld [vmem:[#allocation21_spill] sm:$0xff]  ;;  %v8361_v37 = vld [vmem:[#allocation136_spill] sm:$0xff] }
 0x25f   : > { %v904_v19 = vadd.f32 %v8358_v45, %v762_v49  ;;  %v1029_v18 = vmul.f32 %v8359_v14, %v981_v4  ;;  %v1030_v1 = vmul.f32 %v8359_v14, %v982_v24  ;;  %v1123_v29 = vmul.f32 %v8321_v50, %v1088_v58  ;;  %v8362_v38 = vld [vmem:[#allocation109_spill] sm:$0xff] }
 0x260   : > { %v1639_v22 = vpop.permute.xlu1 %1638  ;;  %v1663_v17 = vadd.f32 %v1647_v2, %v1615_v51  ;;  %v1664_v5 = vadd.f32 %v1647_v2, %v1616_v8  ;;  %v1124_v11 = vmul.f32 %v8326_v57, %v1096_v23  ;;  %v1265_v42 = vmul.f32 %v5145_v21, %v1230_v47  ;;  %v8363_v58 = vld [vmem:[#allocation129_spill] sm:$0xff] }
 0x261   : > { %v1659_v10 = vadd.f32 %v1639_v22, %v1611_v56  ;;  %v1660_v16 = vadd.f32 %v1639_v22, %v1612_v46  ;;  %v1266_v61 = vmul.f32 %v5161_v35, %v1238_v13  ;;  %v1372_v4 = vsel %vm1365_vm5, %v8361_v37, %v8360_v33  ;;  %v8364_v13 = vld [vmem:[#allocation38_spill] sm:$0xff] }
 0x262   : > { %v1380_v24 = vsel %vm1365_vm5, %v8360_v33, %v8361_v37  ;;  %v1045_v30 = vadd.f32 %v1029_v18, %v903_v63  ;;  %v1171_v43 = vmul.f32 %v8362_v38, %v1123_v29  ;;  %v1172_v60 = vmul.f32 %v8362_v38, %v1124_v11  ;;  %v5873_v38 = vld [vmem:[%s7711_s4 + $0x20] sm:$0xff] }
 0x263   : > { %v5818_v28 = vmax.f32 %v1659_v10, 0.0  ;;  %v5820_v36 = vmax.f32 %v1660_v16, 0.0  ;;  %v1046_v12 = vadd.f32 %v1030_v1, %v904_v19  ;;  %v5824_v3 = vmax.f32 %v1663_v17, 0.0 }
 0x264   : > { %v1488_v49 = vpop.permute.xlu1 %1487  ;;  %v5826_v44 = vmax.f32 %v1664_v5, 0.0  ;;  %v1313_v23 = vmul.f32 %v8363_v58, %v1265_v42  ;;  %v1314_v51 = vmul.f32 %v8363_v58, %v1266_v61  ;;  %v1407_v8 = vmul.f32 %v5303_v9, %v1372_v4 }
 0x265   : > { %v1696_v53 = vadd.f32 %v5820_v36, %v5818_v28  ;;  %v1408_v26 = vmul.f32 %v5306_v54, %v1380_v24  ;;  %v1187_v32 = vadd.f32 %v1171_v43, %v1045_v30  ;;  %v1188_v47 = vadd.f32 %v1172_v60, %v1046_v12  ;;  %v5855_v24 = vld [vmem:[%s7711_s4 + $0x8] sm:$0xff]  ;;  %v5867_v30 = vld [vmem:[%s7711_s4 + $0x18] sm:$0xff]  ;;  %v5879_v43 = vld [vmem:[%s7711_s4] sm:$0xff] }
 0x266   : > { %v1455_v56 = vmul.f32 %v8364_v13, %v1407_v8  ;;  %v1702_v19 = vadd.f32 %v5826_v44, %v5824_v3  ;;  %8367 = vst [vmem:[#allocation53_spill] sm:$0xff] %v5879_v43  ;;  %v5884_v60 = vld [vmem:[%s7711_s4 + $0x28] sm:$0xff]  ;;  %v5895_v12 = vld [vmem:[%s7711_s4 + $0x30] sm:$0xff]  ;;  %v8369_v58 = vmov 1  }
 0x267   : > { %1697 = vadd.xlane.f32.xlu1 %v1696_v53  ;;  %v1456_v46 = vmul.f32 %v8364_v13, %v1408_v26  ;;  %v1329_v14 = vadd.f32 %v1313_v23, %v1187_v32  ;;  %v1330_v18 = vadd.f32 %v1314_v51, %v1188_v47  ;;  %8368 = vst [vmem:[#allocation54_spill] sm:$0xff] %v5895_v12  ;;  %v5903_v53 = vld [vmem:[%s7711_s4 + $0x38] sm:$0xff]  ;;  %v8370_v23 = vmov 0  }
 0x268   : > { %v1504_v34 = vpop.permute.xlu1 %1503 }
 0x269   : > { %v1514_v63 = vsel %vm1507_vm7, %v1488_v49, %v1504_v34  ;;  %v1522_v45 = vsel %vm1507_vm7, %v1504_v34, %v1488_v49  ;;  %v1471_v22 = vadd.f32 %v1455_v56, %v1329_v14  ;;  %v1472_v17 = vadd.f32 %v1456_v46, %v1330_v18  ;;  %v1713_v49 = vld [vmem:[%s7712_s5] sm:$0xff] }
 0x26a   : > { %v1549_v1 = vmul.f32 %v5438_v6, %v1514_v63  ;;  %v1550_v2 = vmul.f32 %v5447_v25, %v1522_v45  ;;  %3420 = vmatprep.mubr.msk.f32.mxu0 %vm1717_vm8, %v1713_v49  ;;  %v8372_v56 = vmov 2  }
 0x26b   : > { %1703 = vadd.xlane.f32.xlu1 %v1702_v19 }
 0x26c   : > { %v1597_v5 = vmul.f32 %v5533_v55, %v1549_v1  ;;  %v1598_v10 = vmul.f32 %v5533_v55, %v1550_v2  ;;  %v1643_v11 = vpop.permute.xlu1 %1642  ;;  %v5861_v55 = vld [vmem:[%s7711_s4 + $0x10] sm:$0xff] }
 0x26e   : > { %v1613_v16 = vadd.f32 %v1597_v5, %v1471_v22  ;;  %v1614_v29 = vadd.f32 %v1598_v10, %v1472_v17 }
 0x270   : > { %v1661_v42 = vadd.f32 %v1643_v11, %v1613_v16  ;;  %v1662_v61 = vadd.f32 %v1643_v11, %v1614_v29 }
 0x272   : > { %v5846_v33 = vmax.f32 %v1661_v42, 0.0  ;;  %v5848_v37 = vmax.f32 %v1662_v61, 0.0 }
 0x274   : > { %8365 = vst [vmem:[#allocation50_spill] sm:$0xff] %v5846_v33  ;;  %8366 = vst [vmem:[#allocation52_spill] sm:$0xff] %v5848_v37  ;;  %v1699_v4 = vadd.f32 %v5848_v37, %v5846_v33 }
 0x276   : > { %1700 = vadd.xlane.f32.xlu0 %v1699_v4  ;;  %v1714_v4 = vld [vmem:[%s7712_s5 + $0x8] sm:$0xf] }
 0x27c   : > { %2005 = vperm.xlu1 %3558, %v5855_v24  }
 0x280   : > { %2010 = vperm.xlu1 %3558, %v5861_v55  }
 0x284   : > { %2015 = vperm.xlu1 %3558, %v5867_v30  }
 0x288   : > { %2020 = vperm.xlu1 %3558, %v5873_v38  }
 0x28c   : > { %2000 = vperm.xlu0 %3557, %v5879_v43   ;;  %2025 = vperm.xlu1 %3558, %v5884_v60  }
 0x290   : > { %2056 = vrot.lane.b32.xlu0 %v5610_v41, %s3708_s15  ;;  %2030 = vperm.xlu1 %3558, %v5895_v12  }
 0x291   : > { %3560 = vset.pattern.permute.xlu0 %v8369_v58 }
 0x294   : > { %2060 = vrot.lane.b32.xlu0 %v5738_v39, %s3708_s15  ;;  %2035 = vperm.xlu1 %3558, %v5903_v53  }
 0x298   : > { %2064 = vrot.lane.b32.xlu0 %v5818_v28, %s3708_s15  ;;  %2054 = vrot.lane.b32.xlu1 %v5573_v59, %s3708_s15 }
 0x299   : > { %3559 = vset.pattern.permute.xlu1 %v8370_v23 }
 0x29c   : > { %2068 = vrot.lane.b32.xlu0 %v5824_v3, %s3708_s15  ;;  %2058 = vrot.lane.b32.xlu1 %v5698_v40, %s3708_s15 }
 0x2a0   : > { %2072 = vrot.lane.b32.xlu0 %v5612_v62, %s3708_s15  ;;  %2062 = vrot.lane.b32.xlu1 %v5714_v7, %s3708_s15 }
 0x2a4   : > { %2076 = vrot.lane.b32.xlu0 %v5740_v52, %s3708_s15  ;;  %2066 = vrot.lane.b32.xlu1 %v5846_v33, %s3708_s15 }
 0x2a8   : > { %2080 = vrot.lane.b32.xlu0 %v5820_v36, %s3708_s15  ;;  %2070 = vrot.lane.b32.xlu1 %v5575_v31, %s3708_s15 }
 0x2ac   : > { %2084 = vrot.lane.b32.xlu0 %v5826_v44, %s3708_s15  ;;  %2074 = vrot.lane.b32.xlu1 %v5700_v20, %s3708_s15 }
 0x2b0   : > { %2182 = vrot.lane.b32.xlu0 %v5573_v59, %s3710_s26  ;;  %2078 = vrot.lane.b32.xlu1 %v5716_v15, %s3708_s15 }
 0x2b4   : > { %2186 = vrot.lane.b32.xlu0 %v5698_v40, %s3710_s26  ;;  %2082 = vrot.lane.b32.xlu1 %v5848_v37, %s3708_s15  ;;  %s8371_s15 = smov 15  }
 0x2b8   : > { %2190 = vrot.lane.b32.xlu0 %v5714_v7, %s3710_s26  ;;  %2119 = vperm.xlu1 %3559, %v5879_v43  }
 0x2bc   : > { %2194 = vrot.lane.b32.xlu0 %v5846_v33, %s3710_s26  ;;  %2127 = vperm.xlu1 %3559, %v5861_v55  }
 0x2c0   : > { %2198 = vrot.lane.b32.xlu0 %v5575_v31, %s3710_s26  ;;  %2131 = vperm.xlu1 %3559, %v5867_v30  }
 0x2c4   : > { %2202 = vrot.lane.b32.xlu0 %v5700_v20, %s3710_s26  ;;  %2139 = vperm.xlu1 %3559, %v5884_v60  }
 0x2c8   : > { %2206 = vrot.lane.b32.xlu0 %v5716_v15, %s3710_s26  ;;  %2147 = vperm.xlu1 %3559, %v5903_v53   ;;  %v1683_v51 = vpop.xlane.xlu1 %1682 }
 0x2c9   : > { %v1705_v26 = vmul.f32 0.00390625, %v1683_v51  ;;  %v8376_v51 = vmov 3  }
 0x2cc   : > { %2210 = vrot.lane.b32.xlu0 %v5848_v37, %s3710_s26  ;;  %2184 = vrot.lane.b32.xlu1 %v5610_v41, %s3710_s26 }
 0x2cd   : > { %3561 = vset.pattern.permute.xlu1 %v8369_v58 }
 0x2ce   : > { %v1686_v8 = vpop.xlane.xlu0 %1685 }
 0x2cf   : > { %v1706_v32 = vmul.f32 0.00390625, %v1686_v8 }
 0x2d0   : > { %2247 = vperm.xlu0 %3560, %v5879_v43   ;;  %2188 = vrot.lane.b32.xlu1 %v5738_v39, %s3710_s26 }
 0x2d1   : > { %v3439_v47 = vpack.c.bf16 %v1706_v32, %v1705_v26 }
 0x2d3   : > { %3440 = vmatprep.subr.bf16.mxu0 %v3439_v47 }
 0x2d4   : > { %2259 = vperm.xlu0 %3560, %v5867_v30   ;;  %2192 = vrot.lane.b32.xlu1 %v5818_v28, %s3710_s26 }
 0x2d5   : > { %3442 = vmatpush3.bf16.msra.mxu0 %v3439_v47 }
 0x2d8   : > { %2267 = vperm.xlu0 %3560, %v5884_v60   ;;  %2196 = vrot.lane.b32.xlu1 %v5824_v3, %s3710_s26 }
 0x2dc   : > { %2275 = vperm.xlu0 %3560, %v5903_v53   ;;  %2200 = vrot.lane.b32.xlu1 %v5612_v62, %s3710_s26 }
 0x2df   : > { %v1689_v13 = vpop.xlane.xlu0 %1688 }
 0x2e0   : > { %2312 = vrot.lane.b32.xlu0 %v5610_v41, %s8371_s15  ;;  %2204 = vrot.lane.b32.xlu1 %v5740_v52, %s3710_s26  ;;  %v1707_v34 = vmul.f32 0.00390625, %v1689_v13 }
 0x2e1   : > { %3563 = vset.pattern.permute.xlu0 %v8372_v56 }
 0x2e3   : > { %v1692_v46 = vpop.xlane.xlu1 %1691  ;;  %v1695_v19 = vpop.xlane.xlu0 %1694 }
 0x2e4   : > { %v1708_v63 = vmul.f32 0.00390625, %v1692_v46  ;;  %2316 = vrot.lane.b32.xlu0 %v5738_v39, %s8371_s15  ;;  %2208 = vrot.lane.b32.xlu1 %v5820_v36, %s3710_s26  ;;  %v1709_v18 = vmul.f32 0.00390625, %v1695_v19 }
 0x2e6   : > { %v3443_v45 = vpack.c.bf16 %v1708_v63, %v1707_v34 }
 0x2e8   : > { %2320 = vrot.lane.b32.xlu0 %v5818_v28, %s8371_s15  ;;  %2212 = vrot.lane.b32.xlu1 %v5826_v44, %s3710_s26 }
 0x2e9   : > { %3444 = vmatprep.subr.bf16.mxu0 %v3443_v45 }
 0x2ea   : > { %3446 = vmatpush3.bf16.msra.mxu0 %v3443_v45 }
 0x2ec   : > { %2324 = vrot.lane.b32.xlu0 %v5824_v3, %s8371_s15  ;;  %2251 = vperm.xlu1 %3561, %v5855_v24  }
 0x2f0   : > { %2328 = vrot.lane.b32.xlu0 %v5612_v62, %s8371_s15  ;;  %2255 = vperm.xlu1 %3561, %v5861_v55  }
 0x2f4   : > { %v1698_v14 = vpop.xlane.xlu1 %1697  ;;  %2332 = vrot.lane.b32.xlu0 %v5740_v52, %s8371_s15  ;;  %2263 = vperm.xlu1 %3561, %v5873_v38  }
 0x2f5   : > { %v1710_v1 = vmul.f32 0.00390625, %v1698_v14 }
 0x2f7   : > { %v3447_v2 = vpack.c.bf16 %v1710_v1, %v1709_v18 }
 0x2f8   : > { %2336 = vrot.lane.b32.xlu0 %v5820_v36, %s8371_s15  ;;  %2271 = vperm.xlu1 %3561, %v5895_v12   ;;  %v1704_v22 = vpop.xlane.xlu1 %1703 }
 0x2f9   : > { %3448 = vmatprep.subr.bf16.mxu0 %v3447_v2  ;;  %v1712_v16 = vmul.f32 0.00390625, %v1704_v22 }
 0x2fa   : > { %3450 = vmatpush3.bf16.msra.mxu0 %v3447_v2 }
 0x2fc   : > { %2340 = vrot.lane.b32.xlu0 %v5826_v44, %s8371_s15  ;;  %2310 = vrot.lane.b32.xlu1 %v5573_v59, %s8371_s15  ;;  %v6003_v17 = vpop.permute.xlu1 %2005 }
 0x2fd   : > { %8373 = vst [vmem:[#allocation55_spill] sm:$0xff] %v6003_v17  ;;  %3562 = vset.pattern.permute.xlu1 %v8372_v56 }
 0x300   : > { %2379 = vperm.xlu0 %3563, %v5855_v24   ;;  %2314 = vrot.lane.b32.xlu1 %v5698_v40, %s8371_s15  ;;  %v6009_v5 = vpop.permute.xlu1 %2010 }
 0x303   : > { %v1701_v10 = vpop.xlane.xlu0 %1700 }
 0x304   : > { %v1711_v29 = vmul.f32 0.00390625, %v1701_v10  ;;  %2391 = vperm.xlu0 %3563, %v5873_v38   ;;  %2318 = vrot.lane.b32.xlu1 %v5714_v7, %s8371_s15  ;;  %v6014_v11 = vpop.permute.xlu1 %2015 }
 0x306   : > { %v3451_v42 = vpack.c.bf16 %v1712_v16, %v1711_v29 }
 0x308   : > { %2399 = vperm.xlu0 %3563, %v5895_v12   ;;  %2322 = vrot.lane.b32.xlu1 %v5846_v33, %s8371_s15  ;;  %v6019_v61 = vpop.permute.xlu1 %2020 }
 0x309   : > { %8374 = vst [vmem:[#allocation56_spill] sm:$0xff] %v6019_v61  ;;  %3452 = vmatprep.subr.bf16.mxu0 %v3451_v42 }
 0x30a   : > { %3454 = vmatpush3.bf16.msra.mxu0 %v3451_v42 }
 0x30b   : > { %v6024_v49 = vpop.permute.xlu0 %2000 }
 0x30c   : > { %2438 = vrot.lane.b32.xlu0 %v5573_v59, %s8375_s16  ;;  %2326 = vrot.lane.b32.xlu1 %v5575_v31, %s8371_s15  ;;  %v6030_v58 = vpop.permute.xlu1 %2025 }
 0x30d   : > { %3421 = vmatmul.mubr.msk.f32.vlgmr.msra.gmra.mrb[0].mxu0 %vm1717_vm8, %v1714_v4  ;;  %3564 = vset.pattern.permute.xlu0 %v8376_v51 }
 0x30f   : > { %v6034_v8 = vpop.permute.xlu0 %2056 }
 0x310   : > { %8377 = vst [vmem:[#allocation57_spill] sm:$0xff] %v6034_v8  ;;  %2442 = vrot.lane.b32.xlu0 %v5698_v40, %s8375_s16  ;;  %2330 = vrot.lane.b32.xlu1 %v5700_v20, %s8371_s15  ;;  %v6040_v26 = vpop.permute.xlu1 %2030 }
 0x311   : > { %8378 = vst [vmem:[#allocation66_spill] sm:$0xff] %v6040_v26 }
 0x313   : > { %v6042_v32 = vpop.permute.xlu0 %2060 }
 0x314   : > { %2446 = vrot.lane.b32.xlu0 %v5714_v7, %s8375_s16  ;;  %2334 = vrot.lane.b32.xlu1 %v5716_v15, %s8371_s15  ;;  %v6048_v47 = vpop.permute.xlu1 %2035 }
 0x317   : > { %v6050_v13 = vpop.permute.xlu0 %2064 }
 0x318   : > { %2450 = vrot.lane.b32.xlu0 %v5846_v33, %s8375_s16  ;;  %2338 = vrot.lane.b32.xlu1 %v5848_v37, %s8371_s15  ;;  %v6056_v56 = vpop.permute.xlu1 %2054  ;;  %s8444_s15 = smov 111  }
 0x31b   : > { %v6058_v46 = vpop.permute.xlu0 %2068 }
 0x31c   : > { %2454 = vrot.lane.b32.xlu0 %v5575_v31, %s8375_s16  ;;  %2375 = vperm.xlu1 %3562, %v5879_v43   ;;  %v6063_v34 = vpop.permute.xlu1 %2058 }
 0x31f   : > { %v6065_v63 = vpop.permute.xlu0 %2072 }
 0x320   : > { %8379 = vst [vmem:[#allocation58_spill] sm:$0xff] %v6065_v63  ;;  %2458 = vrot.lane.b32.xlu0 %v5700_v20, %s8375_s16  ;;  %2383 = vperm.xlu1 %3562, %v5861_v55   ;;  %v6070_v45 = vpop.permute.xlu1 %2062 }
 0x321   : > { %8380 = vst [vmem:[#allocation65_spill] sm:$0xff] %v6070_v45 }
 0x323   : > { %v6072_v19 = vpop.permute.xlu0 %2076 }
 0x324   : > { %2462 = vrot.lane.b32.xlu0 %v5716_v15, %s8375_s16  ;;  %2387 = vperm.xlu1 %3562, %v5867_v30   ;;  %v6077_v14 = vpop.permute.xlu1 %2066 }
 0x325   : > { %8381 = vst [vmem:[#allocation73_spill] sm:$0xff] %v6077_v14  ;;  %v8387_v14 = vmov 5  }
 0x327   : > { %v6079_v18 = vpop.permute.xlu0 %2080 }
 0x328   : > { %2466 = vrot.lane.b32.xlu0 %v5848_v37, %s8375_s16  ;;  %2395 = vperm.xlu1 %3562, %v5884_v60   ;;  %v6084_v1 = vpop.permute.xlu1 %2070 }
 0x32b   : > { %v6086_v2 = vpop.permute.xlu0 %2084 }
 0x32c   : > { %2503 = vperm.xlu0 %3564, %v5879_v43   ;;  %2403 = vperm.xlu1 %3562, %v5903_v53   ;;  %v6090_v22 = vpop.permute.xlu1 %2074 }
 0x32f   : > { %v6092_v10 = vpop.permute.xlu0 %2182 }
 0x330   : > { %2515 = vperm.xlu0 %3564, %v5867_v30   ;;  %2440 = vrot.lane.b32.xlu1 %v5610_v41, %s8375_s16  ;;  %v6097_v16 = vpop.permute.xlu1 %2078 }
 0x331   : > { %8382 = vst [vmem:[#allocation60_spill] sm:$0xff] %v6097_v16  ;;  %3565 = vset.pattern.permute.xlu1 %v8376_v51 }
 0x333   : > { %v6100_v29 = vpop.permute.xlu0 %2186 }
 0x334   : > { %2523 = vperm.xlu0 %3564, %v5884_v60   ;;  %2444 = vrot.lane.b32.xlu1 %v5738_v39, %s8375_s16  ;;  %v6105_v42 = vpop.permute.xlu1 %2082 }
 0x335   : > { %8383 = vst [vmem:[#allocation68_spill] sm:$0xff] %v6105_v42 }
 0x337   : > { %v6107_v4 = vpop.permute.xlu0 %2190 }
 0x338   : > { %8384 = vst [vmem:[#allocation69_spill] sm:$0xff] %v6107_v4  ;;  %2531 = vperm.xlu0 %3564, %v5903_v53   ;;  %2448 = vrot.lane.b32.xlu1 %v5818_v28, %s8375_s16  ;;  %v6112_v25 = vpop.permute.xlu1 %2119 }
 0x33b   : > { %v6114_v6 = vpop.permute.xlu0 %2194 }
 0x33c   : > { %8385 = vst [vmem:[#allocation61_spill] sm:$0xff] %v6114_v6  ;;  %2568 = vrot.lane.b32.xlu0 %v5610_v41, %s8386_s25  ;;  %2452 = vrot.lane.b32.xlu1 %v5824_v3, %s8375_s16  ;;  %v6120_v51 = vpop.permute.xlu1 %2127 }
 0x33d   : > { %3567 = vset.pattern.permute.xlu0 %v8387_v14 }
 0x33f   : > { %v6123_v4 = vpop.permute.xlu0 %2198 }
 0x340   : > { %2456 = vrot.lane.b32.xlu1 %v5612_v62, %s8375_s16  ;;  %v6127_v42 = vpop.permute.xlu1 %2131  ;;  %2572 = vrot.lane.b32.xlu0 %v5738_v39, %s8386_s25 }
 0x343   : > { %v6131_v6 = vpop.permute.xlu0 %2202 }
 0x344   : > { %2460 = vrot.lane.b32.xlu1 %v5740_v52, %s8375_s16  ;;  %v6135_v26 = vpop.permute.xlu1 %2139  ;;  %2576 = vrot.lane.b32.xlu0 %v5818_v28, %s8386_s25 }
 0x347   : > { %v6139_v61 = vpop.permute.xlu0 %2206 }
 0x348   : > { %8388 = vst [vmem:[#allocation62_spill] sm:$0xff] %v6139_v61  ;;  %2464 = vrot.lane.b32.xlu1 %v5820_v36, %s8375_s16  ;;  %v6143_v45 = vpop.permute.xlu1 %2147  ;;  %2580 = vrot.lane.b32.xlu0 %v5824_v3, %s8386_s25 }
 0x349   : > { %8389 = vst [vmem:[#allocation70_spill] sm:$0xff] %v6143_v45 }
 0x34b   : > { %v6147_v16 = vpop.permute.xlu0 %2210 }
 0x34c   : > { %8390 = vst [vmem:[#allocation59_spill] sm:$0xff] %v6147_v16  ;;  %2468 = vrot.lane.b32.xlu1 %v5826_v44, %s8375_s16  ;;  %v6151_v8 = vpop.permute.xlu1 %2184  ;;  %2584 = vrot.lane.b32.xlu0 %v5612_v62, %s8386_s25 }
 0x34d   : > { %8391 = vst [vmem:[#allocation71_spill] sm:$0xff] %v6151_v8 }
 0x34f   : > { %v6155_v63 = vpop.permute.xlu0 %2247 }
 0x350   : > { %2507 = vperm.xlu1 %3565, %v5855_v24   ;;  %v6158_v61 = vpop.permute.xlu1 %2188  ;;  %2588 = vrot.lane.b32.xlu0 %v5740_v52, %s8386_s25 }
 0x353   : > { %v6162_v17 = vpop.permute.xlu0 %2259 }
 0x354   : > { %2511 = vperm.xlu1 %3565, %v5861_v55   ;;  %v6165_v16 = vpop.permute.xlu1 %2192  ;;  %2592 = vrot.lane.b32.xlu0 %v5820_v36, %s8386_s25 }
 0x357   : > { %v6169_v8 = vpop.permute.xlu0 %2267 }
 0x358   : > { %8392 = vst [vmem:[#allocation63_spill] sm:$0xff] %v6169_v8  ;;  %2519 = vperm.xlu1 %3565, %v5873_v38   ;;  %v6172_v54 = vpop.permute.xlu1 %2196  ;;  %2596 = vrot.lane.b32.xlu0 %v5826_v44, %s8386_s25 }
 0x359   : > { %8393 = vst [vmem:[#allocation64_spill] sm:$0xff] %v6172_v54 }
 0x35b   : > { %v6176_v9 = vpop.permute.xlu0 %2275 }
 0x35c   : > { %8394 = vst [vmem:[#allocation72_spill] sm:$0xff] %v6176_v9  ;;  %2527 = vperm.xlu1 %3565, %v5895_v12   ;;  %v6179_v35 = vpop.permute.xlu1 %2200  ;;  %2635 = vperm.xlu0 %3567, %v5855_v24  }
 0x35d   : > { %8395 = vst [vmem:[#allocation74_spill] sm:$0xff] %v6179_v35 }
 0x35f   : > { %v6182_v21 = vpop.permute.xlu0 %2312 }
 0x360   : > { %8396 = vst [vmem:[#allocation76_spill] sm:$0xff] %v6182_v21  ;;  %2566 = vrot.lane.b32.xlu1 %v5573_v59, %s8386_s25  ;;  %v6186_v57 = vpop.permute.xlu1 %2204  ;;  %2647 = vperm.xlu0 %3567, %v5873_v38  }
 0x361   : > { %3566 = vset.pattern.permute.xlu1 %v8387_v14  ;;  %v8401_v14 = vmov 6  }
 0x363   : > { %v6190_v50 = vpop.permute.xlu0 %2316 }
 0x364   : > { %8397 = vst [vmem:[#allocation77_spill] sm:$0xff] %v6190_v50  ;;  %2570 = vrot.lane.b32.xlu1 %v5698_v40, %s8386_s25  ;;  %v6194_v23 = vpop.permute.xlu1 %2208  ;;  %2655 = vperm.xlu0 %3567, %v5895_v12  }
 0x367   : > { %v6197_v35 = vpop.permute.xlu0 %2320 }
 0x368   : > { %8398 = vst [vmem:[#allocation79_spill] sm:$0xff] %v6197_v35  ;;  %2574 = vrot.lane.b32.xlu1 %v5714_v7, %s8386_s25  ;;  %v6201_v21 = vpop.permute.xlu1 %2212  ;;  %2694 = vrot.lane.b32.xlu0 %v5573_v59, %s8400_s30 }
 0x369   : > { %8399 = vst [vmem:[#allocation81_spill] sm:$0xff] %v6201_v21  ;;  %3568 = vset.pattern.permute.xlu0 %v8401_v14  ;;  %v2088_v21 = vsel %vm514_vm0, %v6063_v34, %v6090_v22 }
 0x36b   : > { %v6206_v9 = vpop.permute.xlu0 %2324 }
 0x36c   : > { %8402 = vst [vmem:[#allocation75_spill] sm:$0xff] %v6206_v9  ;;  %2578 = vrot.lane.b32.xlu1 %v5846_v33, %s8386_s25  ;;  %v6210_v48 = vpop.permute.xlu1 %2251  ;;  %2698 = vrot.lane.b32.xlu0 %v5698_v40, %s8400_s30 }
 0x36d   : > { %8403 = vst [vmem:[#allocation67_spill] sm:$0xff] %v6210_v48 }
 0x36f   : > { %v6214_v27 = vpop.permute.xlu0 %2328 }
 0x370   : > { %8404 = vst [vmem:[#allocation83_spill] sm:$0xff] %v6214_v27  ;;  %2582 = vrot.lane.b32.xlu1 %v5575_v31, %s8386_s25  ;;  %v6218_v35 = vpop.permute.xlu1 %2255  ;;  %2702 = vrot.lane.b32.xlu0 %v5714_v7, %s8400_s30 }
 0x373   : > { %v6222_v45 = vpop.permute.xlu0 %2332 }
 0x374   : > { %8405 = vst [vmem:[#allocation88_spill] sm:$0xff] %v6222_v45  ;;  %2586 = vrot.lane.b32.xlu1 %v5700_v20, %s8386_s25  ;;  %v6226_v9 = vpop.permute.xlu1 %2263  ;;  %2706 = vrot.lane.b32.xlu0 %v5846_v33, %s8400_s30  ;;  %v8422_v45 = vld [vmem:[#allocation127_spill] sm:$0xff] }
 0x375   : > { %8406 = vst [vmem:[#allocation80_spill] sm:$0xff] %v6226_v9 }
 0x377   : > { %v6230_v48 = vpop.permute.xlu0 %2336 }
 0x378   : > { %8407 = vst [vmem:[#allocation85_spill] sm:$0xff] %v6230_v48  ;;  %2590 = vrot.lane.b32.xlu1 %v5716_v15, %s8386_s25  ;;  %v6234_v27 = vpop.permute.xlu1 %2271  ;;  %2710 = vrot.lane.b32.xlu0 %v5575_v31, %s8400_s30 }
 0x379   : > { %8408 = vst [vmem:[#allocation97_spill] sm:$0xff] %v6234_v27 }
 0x37b   : > { %v6238_v7 = vpop.permute.xlu0 %2340 }
 0x37c   : > { %8409 = vst [vmem:[#allocation89_spill] sm:$0xff] %v6238_v7  ;;  %2594 = vrot.lane.b32.xlu1 %v5848_v37, %s8386_s25  ;;  %v2311_v12 = vpop.permute.xlu1 %2310  ;;  %2714 = vrot.lane.b32.xlu0 %v5700_v20, %s8400_s30  ;;  %s7655_s25 = scalar_lea.hbm %s7718_s11, %s3383_s22 }
 0x37f   : > { %v6244_v9 = vpop.permute.xlu0 %2379 }
 0x380   : > { %8410 = vst [vmem:[#allocation90_spill] sm:$0xff] %v6244_v9  ;;  %2631 = vperm.xlu1 %3566, %v5879_v43   ;;  %v6247_v33 = vpop.permute.xlu1 %2314  ;;  %2718 = vrot.lane.b32.xlu0 %v5716_v15, %s8400_s30 }
 0x383   : > { %v6251_v27 = vpop.permute.xlu0 %2391 }
 0x384   : > { %8411 = vst [vmem:[#allocation82_spill] sm:$0xff] %v6251_v27  ;;  %2639 = vperm.xlu1 %3566, %v5861_v55   ;;  %v6254_v7 = vpop.permute.xlu1 %2318  ;;  %2722 = vrot.lane.b32.xlu0 %v5848_v37, %s8400_s30 }
 0x385   : > { %8412 = vst [vmem:[#allocation92_spill] sm:$0xff] %v6254_v7 }
 0x387   : > { %v6258_v48 = vpop.permute.xlu0 %2399 }
 0x388   : > { %8413 = vst [vmem:[#allocation84_spill] sm:$0xff] %v6258_v48  ;;  %2643 = vperm.xlu1 %3566, %v5867_v30   ;;  %v6261_v9 = vpop.permute.xlu1 %2322  ;;  %2759 = vperm.xlu0 %3568, %v5879_v43   ;;  %v2086_v48 = vsel %vm514_vm0, %v6056_v56, %v6084_v1  ;;  %v8418_v43 = vld [vmem:[#allocation123_spill] sm:$0xff] }
 0x389   : > { %8414 = vst [vmem:[#allocation95_spill] sm:$0xff] %v6261_v9  ;;  %v2094_v9 = vsel %vm514_vm0, %v6084_v1, %v6056_v56  ;;  %v8419_v56 = vld [vmem:[#allocation125_spill] sm:$0xff] }
 0x38a   : > { %v2102_v37 = vmul.f32 %v2094_v9, %v8418_v43  ;;  %v2103_v1 = vmul.f32 %v2086_v48, %v8419_v56  ;;  %v2039_v9 = vmul.f32 %v6024_v49, %v5575_v31 }
 0x38b   : > { %v6264_v54 = vpop.permute.xlu0 %2438 }
 0x38c   : > { %8415 = vst [vmem:[#allocation87_spill] sm:$0xff] %v6264_v54  ;;  %2651 = vperm.xlu1 %3566, %v5884_v60   ;;  %v2327_v27 = vpop.permute.xlu1 %2326  ;;  %2771 = vperm.xlu0 %3568, %v5867_v30   ;;  %v2222_v30 = vsel %vm655_vm1, %v6123_v4, %v6092_v10 }
 0x38f   : > { %v6268_v15 = vpop.permute.xlu0 %2442 }
 0x390   : > { %8416 = vst [vmem:[#allocation99_spill] sm:$0xff] %v6268_v15  ;;  %2659 = vperm.xlu1 %3566, %v5903_v53   ;;  %v2331_v7 = vpop.permute.xlu1 %2330  ;;  %2779 = vperm.xlu0 %3568, %v5884_v60   ;;  %v2096_v60 = vsel %vm514_vm0, %v6090_v22, %v6063_v34  ;;  %v2214_v15 = vsel %vm655_vm1, %v6092_v10, %v6123_v4  ;;  %v8421_v4 = vld [vmem:[#allocation126_spill] sm:$0xff] }
 0x391   : > { %v2038_v10 = vmul.f32 %v6024_v49, %v5573_v59  ;;  %v2230_v48 = vmul.f32 %v2222_v30, %v8421_v4  ;;  %v2150_v34 = vmul.f32 %v6112_v25, %v2102_v37  ;;  %v2151_v22 = vmul.f32 %v6112_v25, %v2103_v1 }
 0x392   : > { %v2216_v59 = vsel %vm655_vm1, %v6100_v29, %v6131_v6  ;;  %v2224_v49 = vsel %vm655_vm1, %v6131_v6, %v6100_v29  ;;  %v2042_v6 = vmul.f32 %v6009_v5, %v5698_v40 }
 0x393   : > { %v6292_v54 = vpop.permute.xlu0 %2446  ;;  %v2166_v29 = vadd.f32 %v2150_v34, %v2038_v10  ;;  %v2234_v1 = vmul.f32 %v2224_v49, %v8421_v4  ;;  %v2344_v10 = vsel %vm797_vm2, %v6247_v33, %v2331_v7 }
 0x394   : > { %8417 = vst [vmem:[#allocation91_spill] sm:$0xff] %v6292_v54  ;;  %2696 = vrot.lane.b32.xlu1 %v5610_v41, %s8400_s30  ;;  %v6302_v50 = vpop.permute.xlu1 %2334  ;;  %2787 = vperm.xlu0 %3568, %v5903_v53   ;;  %v2106_v54 = vmul.f32 %v2096_v60, %v8418_v43  ;;  %v2107_v53 = vmul.f32 %v2088_v21, %v8419_v56 }
 0x395   : > { %8420 = vst [vmem:[#allocation96_spill] sm:$0xff] %v6302_v50  ;;  %3569 = vset.pattern.permute.xlu1 %v8401_v14  ;;  %v2231_v50 = vmul.f32 %v2214_v15, %v8422_v45  ;;  %v2278_v14 = vmul.f32 %v6155_v63, %v2230_v48  ;;  %v2342_v15 = vsel %vm797_vm2, %v2311_v12, %v2327_v27 }
 0x396   : > { %v2350_v21 = vsel %vm797_vm2, %v2327_v27, %v2311_v12  ;;  %v2167_v60 = vadd.f32 %v2151_v22, %v2039_v9  ;;  %v2154_v27 = vmul.f32 %v6120_v51, %v2106_v54  ;;  %v2155_v12 = vmul.f32 %v6120_v51, %v2107_v53 }
 0x397   : > { %v6325_v30 = vpop.permute.xlu0 %2450  ;;  %v2279_v25 = vmul.f32 %v6155_v63, %v2231_v50  ;;  %v2043_v50 = vmul.f32 %v6009_v5, %v5700_v20  ;;  %v8426_v63 = vmov 7   ;;  %v2235_v48 = vmul.f32 %v2216_v59, %v8422_v45 }
 0x398   : > { %8423 = vst [vmem:[#allocation98_spill] sm:$0xff] %v6325_v30  ;;  %2700 = vrot.lane.b32.xlu1 %v5738_v39, %s8400_s30  ;;  %v6334_v37 = vpop.permute.xlu1 %2338  ;;  %2824 = vrot.lane.b32.xlu0 %v5610_v41, %s8425_s14  ;;  %v8427_v30 = vld [vmem:[#allocation128_spill] sm:$0xff]  ;;  %v8428_v41 = vld [vmem:[#allocation130_spill] sm:$0xff]  ;;  %v2294_v8 = vadd.f32 %v2278_v14, %v2166_v29  ;;  %v2352_v54 = vsel %vm797_vm2, %v2331_v7, %v6247_v33 }
 0x399   : > { %8424 = vst [vmem:[#allocation119_spill] sm:$0xff] %v6334_v37  ;;  %3571 = vset.pattern.permute.xlu0 %v8426_v63  ;;  %v2358_v37 = vmul.f32 %v2350_v21, %v8427_v30  ;;  %v2359_v31 = vmul.f32 %v2342_v15, %v8428_v41  ;;  %v2295_v5 = vadd.f32 %v2279_v25, %v2167_v60 }
 0x39a   : > { %v2282_v51 = vmul.f32 %v6218_v35, %v2234_v1  ;;  %v2283_v9 = vmul.f32 %v6218_v35, %v2235_v48  ;;  %v2170_v53 = vadd.f32 %v2154_v27, %v2042_v6  ;;  %v2171_v49 = vadd.f32 %v2155_v12, %v2043_v50 }
 0x39b   : > { %v6349_v40 = vpop.permute.xlu0 %2454  ;;  %v2362_v14 = vmul.f32 %v2352_v54, %v8427_v30  ;;  %v2363_v25 = vmul.f32 %v2344_v10, %v8428_v41 }
 0x39c   : > { %2704 = vrot.lane.b32.xlu1 %v5818_v28, %s8400_s30  ;;  %v2376_v59 = vpop.permute.xlu1 %2375  ;;  %2828 = vrot.lane.b32.xlu0 %v5738_v39, %s8425_s14  ;;  %v2299_v21 = vadd.f32 %v2283_v9, %v2171_v49  ;;  %v2225_v49 = vsel %vm655_vm1, %v6186_v57, %v6158_v61 }
 0x39d   : > { %v2406_v34 = vmul.f32 %v2376_v59, %v2358_v37  ;;  %v2407_v22 = vmul.f32 %v2376_v59, %v2359_v31  ;;  %v2298_v31 = vadd.f32 %v2282_v51, %v2170_v53  ;;  %v2097_v51 = vsel %vm514_vm0, %v6072_v19, %v6042_v32 }
 0x39e   : > { %v2108_v53 = vmul.f32 %v2097_v51, %v8418_v43  ;;  %v2048_v51 = vmul.f32 %v6030_v58, %v5818_v28 }
 0x39f   : > { %v6365_v7 = vadd.f32 %v2406_v34, %v2294_v8  ;;  %v6367_v33 = vadd.f32 %v2407_v22, %v2295_v5  ;;  %v6369_v15 = vpop.permute.xlu0 %2458  ;;  %v1840_v8 = vld [vmem:[%s7716_s9] sm:$0xff]  ;;  %v2089_v34 = vsel %vm514_vm0, %v6042_v32, %v6072_v19  ;;  %v2099_v22 = vsel %vm514_vm0, %v6079_v18, %v6050_v13 }
 0x3a0   : > { %2708 = vrot.lane.b32.xlu1 %v5824_v3, %s8400_s30  ;;  %v2384_v35 = vpop.permute.xlu1 %2383  ;;  %2832 = vrot.lane.b32.xlu0 %v5818_v28, %s8425_s14  ;;  %v2091_v32 = vsel %vm514_vm0, %v6050_v13, %v6079_v18  ;;  %v2217_v19 = vsel %vm655_vm1, %v6158_v61, %v6186_v57  ;;  %v2045_v13 = vmul.f32 %v6014_v11, %v5740_v52 }
 0x3a1   : > { %v2410_v37 = vmul.f32 %v2384_v35, %v2362_v14  ;;  %v2411_v29 = vmul.f32 %v2384_v35, %v2363_v25  ;;  %3427 = vmatprep.mubr.msk.f32.mxu1 %vm1856_vm9, %v1840_v8  ;;  %v2109_v25 = vmul.f32 %v2089_v34, %v8419_v56  ;;  %v2227_v35 = vsel %vm655_vm1, %v6194_v23, %v6165_v16 }
 0x3a2   : > { %v2112_v18 = vmul.f32 %v2099_v22, %v8418_v43  ;;  %v2219_v57 = vsel %vm655_vm1, %v6165_v16, %v6194_v23  ;;  %v2156_v61 = vmul.f32 %v6127_v42, %v2108_v53  ;;  %v2093_v23 = vsel %vm514_vm0, %v6058_v46, %v6086_v2 }
 0x3a3   : > { %v6378_v6 = vadd.f32 %v2410_v37, %v2298_v31  ;;  %v6380_v50 = vadd.f32 %v2411_v29, %v2299_v21  ;;  %v6382_v60 = vpop.permute.xlu0 %2462  ;;  %v2044_v21 = vmul.f32 %v6014_v11, %v5738_v39  ;;  %v2157_v37 = vmul.f32 %v6127_v42, %v2109_v25 }
 0x3a4   : > { %8429 = vst [vmem:[#allocation111_spill] sm:$0xff] %v6382_v60  ;;  %2712 = vrot.lane.b32.xlu1 %v5612_v62, %s8400_s30  ;;  %v6387_v27 = vpop.permute.xlu1 %2387  ;;  %2836 = vrot.lane.b32.xlu0 %v5824_v3, %s8425_s14  ;;  %v2236_v11 = vmul.f32 %v2225_v49, %v8421_v4  ;;  %v2113_v29 = vmul.f32 %v2091_v32, %v8419_v56  ;;  %v8443_v60 = vld [vmem:[#allocation48_spill] sm:$0xff] }
 0x3a5   : > { %v2240_v16 = vmul.f32 %v2227_v35, %v8421_v4  ;;  %v2049_v42 = vmul.f32 %v6030_v58, %v5820_v36  ;;  %v2160_v34 = vmul.f32 %v6135_v26, %v2112_v18  ;;  %v2241_v22 = vmul.f32 %v2219_v57, %v8422_v45  ;;  %v8433_v57 = vld [vmem:[#allocation63_spill] sm:$0xff] }
 0x3a6   : > { %v2161_v58 = vmul.f32 %v6135_v26, %v2113_v29  ;;  %v2117_v25 = vmul.f32 %v2093_v23, %v8419_v56  ;;  %v2172_v32 = vadd.f32 %v2156_v61, %v2044_v21  ;;  %v2284_v35 = vmul.f32 %v6162_v17, %v2236_v11  ;;  %v8437_v61 = vld [vmem:[#allocation64_spill] sm:$0xff]  ;;  %v8438_v11 = vld [vmem:[#allocation54_spill] sm:$0xff]  ;;  %v6768_v56 = vld [vmem:[%s7711_s4 + $0x30] sm:$0xff] }
 0x3a7   : > { %v6391_v12 = vpop.permute.xlu0 %2466  ;;  %v2176_v21 = vadd.f32 %v2160_v34, %v2048_v51  ;;  %v8442_v51 = vld [vmem:[#allocation85_spill] sm:$0xff]  ;;  %8474 = vst [vmem:[#allocation132_spill] sm:$0xff] %v6768_v56 }
 0x3a8   : > { %8430 = vst [vmem:[#allocation112_spill] sm:$0xff] %v6391_v12  ;;  %2716 = vrot.lane.b32.xlu1 %v5740_v52, %s8400_s30  ;;  %v6395_v1 = vpop.permute.xlu1 %2395  ;;  %2840 = vrot.lane.b32.xlu0 %v5612_v62, %s8425_s14  ;;  %v8435_v12 = vld [vmem:[#allocation77_spill] sm:$0xff] }
 0x3ab   : > { %v6399_v48 = vpop.permute.xlu0 %2503 }
 0x3ac   : > { %2720 = vrot.lane.b32.xlu1 %v5820_v36, %s8400_s30  ;;  %v6403_v5 = vpop.permute.xlu1 %2403  ;;  %2844 = vrot.lane.b32.xlu0 %v5740_v52, %s8425_s14 }
 0x3af   : > { %v6407_v10 = vpop.permute.xlu0 %2515 }
 0x3b0   : > { %2724 = vrot.lane.b32.xlu1 %v5826_v44, %s8400_s30  ;;  %v6411_v54 = vpop.permute.xlu1 %2440  ;;  %2848 = vrot.lane.b32.xlu0 %v5820_v36, %s8425_s14 }
 0x3b1   : > { %8431 = vst [vmem:[#allocation104_spill] sm:$0xff] %v6411_v54  ;;  %v8434_v54 = vld [vmem:[#allocation88_spill] sm:$0xff] }
 0x3b3   : > { %v6415_v59 = vpop.permute.xlu0 %2523 }
 0x3b4   : > { %2763 = vperm.xlu1 %3569, %v5855_v24   ;;  %v6422_v9 = vpop.permute.xlu1 %2444  ;;  %2852 = vrot.lane.b32.xlu0 %v5826_v44, %s8425_s14 }
 0x3b7   : > { %v6439_v14 = vpop.permute.xlu0 %2531 }
 0x3b8   : > { %2767 = vperm.xlu1 %3569, %v5861_v55   ;;  %v6455_v31 = vpop.permute.xlu1 %2448  ;;  %2891 = vperm.xlu0 %3571, %v5855_v24   ;;  %v2101_v55 = vsel %vm514_vm0, %v6086_v2, %v6058_v46  ;;  %v2237_v24 = vmul.f32 %v2217_v19, %v8422_v45  ;;  %v6494_v46 = vmul.f32 %v6048_v47, %v5824_v3 }
 0x3b9   : > { %v6498_v2 = vmul.f32 %v6048_v47, %v5826_v44  ;;  %v2116_v49 = vmul.f32 %v2101_v55, %v8418_v43  ;;  %v2173_v19 = vadd.f32 %v2157_v37, %v2045_v13  ;;  %v2345_v47 = vsel %vm797_vm2, %v8435_v12, %v8434_v54  ;;  %v8436_v55 = vld [vmem:[#allocation81_spill] sm:$0xff]  ;;  %v8476_v43 = vld [vmem:[#allocation12_spill] sm:$0xff] }
 0x3ba   : > { %v2285_v18 = vmul.f32 %v6162_v17, %v2237_v24  ;;  %v2289_v13 = vmul.f32 %v8433_v57, %v2241_v22  ;;  %v2221_v17 = vsel %vm655_vm1, %v8437_v61, %v8436_v55  ;;  %v2229_v37 = vsel %vm655_vm1, %v8436_v55, %v8437_v61 }
 0x3bb   : > { %v6481_v8 = vpop.permute.xlu0 %2568 }
 0x3bc   : > { %8432 = vst [vmem:[#allocation103_spill] sm:$0xff] %v6481_v8  ;;  %2775 = vperm.xlu1 %3569, %v5873_v38   ;;  %v6490_v53 = vpop.permute.xlu1 %2452  ;;  %2903 = vperm.xlu0 %3571, %v5873_v38   ;;  %v2288_v8 = vmul.f32 %v8433_v57, %v2240_v16  ;;  %v2353_v38 = vsel %vm797_vm2, %v8434_v54, %v8435_v12  ;;  %v8440_v54 = vld [vmem:[#allocation70_spill] sm:$0xff]  ;;  %v8441_v16 = vld [vmem:[#allocation79_spill] sm:$0xff] }
 0x3bd   : > { %v2177_v12 = vadd.f32 %v2161_v58, %v2049_v42  ;;  %v2164_v23 = vmul.f32 %v8440_v54, %v2116_v49  ;;  %v2165_v24 = vmul.f32 %v8440_v54, %v2117_v25  ;;  %v2355_v34 = vsel %vm797_vm2, %v8442_v51, %v8441_v16 }
 0x3be   : > { %v2364_v22 = vmul.f32 %v2353_v38, %v8427_v30  ;;  %v2365_v57 = vmul.f32 %v2345_v47, %v8428_v41  ;;  %v2347_v42 = vsel %vm797_vm2, %v8441_v16, %v8442_v51  ;;  %v2300_v58 = vadd.f32 %v2284_v35, %v2172_v32  ;;  %v8446_v35 = vld [vmem:[#allocation75_spill] sm:$0xff]  ;;  %v8450_v51 = vld [vmem:[#allocation72_spill] sm:$0xff] }
 0x3bf   : > { %v6515_v26 = vpop.permute.xlu0 %2572  ;;  %v2244_v49 = vmul.f32 %v2229_v37, %v8421_v4  ;;  %v2245_v25 = vmul.f32 %v2221_v17, %v8422_v45  ;;  %v2301_v55 = vadd.f32 %v2285_v18, %v2173_v19  ;;  %v2304_v61 = vadd.f32 %v2288_v8, %v2176_v21  ;;  %v8448_v37 = vld [vmem:[#allocation134_spill] sm:$0xff] }
 0x3c0   : > { %2783 = vperm.xlu1 %3569, %v8438_v11   ;;  %v6527_v29 = vpop.permute.xlu1 %2456  ;;  %2911 = vperm.xlu0 %3571, %v8438_v11   ;;  %v2368_v11 = vmul.f32 %v2355_v34, %v8427_v30  ;;  %v2412_v38 = vmul.f32 %v6387_v27, %v2364_v22  ;;  %v2413_v47 = vmul.f32 %v6387_v27, %v2365_v57  ;;  %v8445_v27 = vld [vmem:[#allocation89_spill] sm:$0xff] }
 0x3c1   : > { %8439 = vst [vmem:[#allocation100_spill] sm:$0xff] %v6527_v29  ;;  %v2305_v29 = vadd.f32 %v2289_v13, %v2177_v12  ;;  %v2369_v32 = vmul.f32 %v2347_v42, %v8428_v41  ;;  %v2349_v18 = vsel %vm797_vm2, %v8446_v35, %v8445_v27  ;;  %v2357_v21 = vsel %vm797_vm2, %v8445_v27, %v8446_v35  ;;  %v8447_v13 = vld [vmem:[#allocation133_spill] sm:$0xff] }
 0x3c2   : > { %v2416_v34 = vmul.f32 %v6395_v1, %v2368_v11  ;;  %v2428_v42 = vadd.f32 %v2412_v38, %v2300_v58 }
 0x3c3   : > { %v6544_v54 = vpop.permute.xlu0 %2576  ;;  %v2417_v22 = vmul.f32 %v6395_v1, %v2369_v32  ;;  %v2181_v32 = vadd.f32 %v2165_v24, %v6498_v2 }
 0x3c4   : > { %2822 = vrot.lane.b32.xlu1 %v8443_v60, %s8425_s14  ;;  %v2461_v16 = vpop.permute.xlu1 %2460  ;;  %2950 = vrot.lane.b32.xlu0 %v8443_v60, %s8444_s15  ;;  %v2292_v60 = vmul.f32 %v8450_v51, %v2244_v49  ;;  %v2372_v49 = vmul.f32 %v2357_v21, %v8427_v30 }
 0x3c5   : > { %v2473_v19 = vsel %vm939_vm3, %v6422_v9, %v2461_v16  ;;  %v2481_v8 = vsel %vm939_vm3, %v2461_v16, %v6422_v9  ;;  %3570 = vset.pattern.permute.xlu1 %v8426_v63  ;;  %v8449_v9 = vmov 8   ;;  %v2293_v63 = vmul.f32 %v8450_v51, %v2245_v25 }
 0x3c6   : > { %v2492_v17 = vmul.f32 %v2481_v8, %v8447_v13  ;;  %v2493_v12 = vmul.f32 %v2473_v19, %v8448_v37  ;;  %3572 = vset.pattern.permute.xlu0 %v8449_v9  ;;  %v2429_v16 = vadd.f32 %v2413_v47, %v2301_v55  ;;  %v8451_v19 = vld [vmem:[#allocation41_spill] sm:$0xff]  ;;  %v2373_v25 = vmul.f32 %v2349_v18, %v8428_v41 }
 0x3c7   : > { %v6576_v57 = vpop.permute.xlu0 %2580  ;;  %v2180_v47 = vadd.f32 %v2164_v23, %v6494_v46  ;;  %v2432_v18 = vadd.f32 %v2416_v34, %v2304_v61  ;;  %v2433_v21 = vadd.f32 %v2417_v22, %v2305_v29  ;;  %v2309_v46 = vadd.f32 %v2293_v63, %v2181_v32 }
 0x3c8   : > { %v2540_v27 = vmul.f32 %v6407_v10, %v2492_v17  ;;  %v2541_v8 = vmul.f32 %v6407_v10, %v2493_v12  ;;  %2826 = vrot.lane.b32.xlu1 %v8451_v19, %s8425_s14  ;;  %v2465_v35 = vpop.permute.xlu1 %2464  ;;  %2954 = vrot.lane.b32.xlu0 %v8451_v19, %s8444_s15  ;;  %v2421_v12 = vmul.f32 %v6403_v5, %v2373_v25 }
 0x3c9   : > { %v2475_v1 = vsel %vm939_vm3, %v6455_v31, %v2465_v35  ;;  %v2483_v58 = vsel %vm939_vm3, %v2465_v35, %v6455_v31  ;;  %v2420_v31 = vmul.f32 %v6403_v5, %v2372_v49 }
 0x3ca   : > { %v2496_v10 = vmul.f32 %v2483_v58, %v8447_v13  ;;  %v2497_v55 = vmul.f32 %v2475_v1, %v8448_v37  ;;  %v6594_v11 = vadd.f32 %v2540_v27, %v2428_v42  ;;  %v6596_v38 = vadd.f32 %v2541_v8, %v2429_v16  ;;  %v8453_v42 = vld [vmem:[#allocation43_spill] sm:$0xff]  ;;  %v8456_v1 = vld [vmem:[#allocation40_spill] sm:$0xff] }
 0x3cb   : > { %v6600_v17 = vpop.permute.xlu0 %2584  ;;  %v2308_v27 = vadd.f32 %v2292_v60, %v2180_v47  ;;  %v2437_v63 = vadd.f32 %v2421_v12, %v2309_v46  ;;  %v8459_v47 = vld [vmem:[#allocation51_spill] sm:$0xff]  ;;  %v8462_v12 = vld [vmem:[#allocation52_spill] sm:$0xff] }
 0x3cc   : > { %8452 = vst [vmem:[#allocation101_spill] sm:$0xff] %v6600_v17  ;;  %v2544_v51 = vmul.f32 %v6415_v59, %v2496_v10  ;;  %v2545_v19 = vmul.f32 %v6415_v59, %v2497_v55  ;;  %2830 = vrot.lane.b32.xlu1 %v8453_v42, %s8425_s14  ;;  %v2469_v16 = vpop.permute.xlu1 %2468  ;;  %2958 = vrot.lane.b32.xlu0 %v8453_v42, %s8444_s15 }
 0x3cd   : > { %v2477_v2 = vsel %vm939_vm3, %v6490_v53, %v2469_v16  ;;  %v2485_v29 = vsel %vm939_vm3, %v2469_v16, %v6490_v53  ;;  %v2436_v60 = vadd.f32 %v2420_v31, %v2308_v27  ;;  %v8454_v53 = vld [vmem:[#allocation50_spill] sm:$0xff] }
 0x3ce   : > { %v2500_v5 = vmul.f32 %v2485_v29, %v8447_v13  ;;  %v2501_v59 = vmul.f32 %v2477_v2, %v8448_v37  ;;  %v6618_v23 = vadd.f32 %v2544_v51, %v2432_v18  ;;  %v6620_v24 = vadd.f32 %v2545_v19, %v2433_v21  ;;  %v1716_v18 = vld [vmem:[%s7713_s6 + $0x8] sm:$0xf] }
 0x3cf   : > { %v6622_v61 = vpop.permute.xlu0 %2588 }
 0x3d0   : > { %v2548_v34 = vmul.f32 %v6439_v14, %v2500_v5  ;;  %v2549_v22 = vmul.f32 %v6439_v14, %v2501_v59  ;;  %2834 = vrot.lane.b32.xlu1 %v8454_v53, %s8425_s14  ;;  %v6628_v8 = vpop.permute.xlu1 %2507  ;;  %2962 = vrot.lane.b32.xlu0 %v8454_v53, %s8444_s15  ;;  %v8464_v5 = vld [vmem:[#allocation53_spill] sm:$0xff] }
 0x3d1   : > { %8455 = vst [vmem:[#allocation93_spill] sm:$0xff] %v6628_v8 }
 0x3d2   : > { %v6632_v35 = vadd.f32 %v2548_v34, %v2436_v60  ;;  %v6634_v49 = vadd.f32 %v2549_v22, %v2437_v63  ;;  %v6685_v22 = vld [vmem:[%s7711_s4 + $0x10] sm:$0xff] }
 0x3d3   : > { %v6636_v25 = vpop.permute.xlu0 %2592 }
 0x3d4   : > { %2838 = vrot.lane.b32.xlu1 %v8456_v1, %s8425_s14  ;;  %v6640_v58 = vpop.permute.xlu1 %2511  ;;  %2966 = vrot.lane.b32.xlu0 %v8456_v1, %s8444_s15 }
 0x3d7   : > { %v6644_v14 = vpop.permute.xlu0 %2596 }
 0x3d8   : > { %2842 = vrot.lane.b32.xlu1 %v5700_v20, %s8425_s14  ;;  %v6648_v10 = vpop.permute.xlu1 %2519  ;;  %2970 = vrot.lane.b32.xlu0 %v5700_v20, %s8444_s15  ;;  %v1715_v20 = vld [vmem:[%s7713_s6] sm:$0xff] }
 0x3d9   : > { %8457 = vst [vmem:[#allocation105_spill] sm:$0xff] %v6648_v10  ;;  %v8467_v10 = vmov 0  }
 0x3db   : > { %v6652_v55 = vpop.permute.xlu0 %2635 }
 0x3dc   : > { %8458 = vst [vmem:[#allocation120_spill] sm:$0xff] %v6652_v55  ;;  %2846 = vrot.lane.b32.xlu1 %v8459_v47, %s8425_s14  ;;  %v6656_v32 = vpop.permute.xlu1 %2527  ;;  %2974 = vrot.lane.b32.xlu0 %v8459_v47, %s8444_s15 }
 0x3dd   : > { %8460 = vst [vmem:[#allocation124_spill] sm:$0xff] %v6656_v32 }
 0x3df   : > { %v6663_v21 = vpop.permute.xlu0 %2647 }
 0x3e0   : > { %8461 = vst [vmem:[#allocation115_spill] sm:$0xff] %v6663_v21  ;;  %v3422_v31 = vpop.f32.mrb[0].mxu0  ;;  %2850 = vrot.lane.b32.xlu1 %v8462_v12, %s8425_s14  ;;  %v6670_v51 = vpop.permute.xlu1 %2566  ;;  %2978 = vrot.lane.b32.xlu0 %v8462_v12, %s8444_s15  ;;  %v3583_v21 = vld [vmem:[%s7711_s4 + $0x38] sm:$0xff]  ;;  %s392_s14 = sand.u32 1, %s3694_s18  }
 0x3e1   : > { %v1796_v19 = vadd.f32 %v3422_v31, %v1716_v18  ;;  %v1790_v16 = vpop.f32.mrb[1].mxu0  ;;  %s7605_s13 = sshll.u32 %s392_s14, 7  ;;  %s7665_s21 = scalar_lea.sflag [#allocation4], %s392_s14 }
 0x3e2   : > { %v1791_v27 = vadd.f32 %v1790_v16, %v1715_v20  ;;  %v3581_v20 = vld [vmem:[%s7711_s4 + $0x18] sm:$0xff] }
 0x3e3   : > { %v1802_v46 = vsel %vm1801_vm10, %v1796_v19, 0.0  ;;  %v6675_v2 = vpop.permute.xlu0 %2655 }
 0x3e4   : > { %8463 = vst [vmem:[#allocation107_spill] sm:$0xff] %v6675_v2  ;;  %v1800_v29 = vsel %vm1799_vm11, %v1791_v27, 0.0  ;;  %2887 = vperm.xlu1 %3570, %v8464_v5   ;;  %v6679_v59 = vpop.permute.xlu1 %2570  ;;  %3015 = vperm.xlu0 %3572, %v8464_v5   ;;  %v3582_v5 = vld [vmem:[%s7711_s4 + $0x28] sm:$0xff] }
 0x3e5   : > { %v1803_v60 = vadd.f32 %v1802_v46, %v1800_v29 }
 0x3e7   : > { %v1804_v63 = vrot.slane %v1803_v60, 4  ;;  %v2695_v34 = vpop.permute.xlu0 %2694 }
 0x3e8   : > { %2895 = vperm.xlu1 %3570, %v6685_v22   ;;  %v6688_v1 = vpop.permute.xlu1 %2574  ;;  %3027 = vperm.xlu0 %3572, %v3581_v20  }
 0x3e9   : > { %8465 = vst [vmem:[#allocation121_spill] sm:$0xff] %v6688_v1  ;;  %v1805_v18 = vadd.f32 %v1804_v63, %v1803_v60  ;;  %v8470_v1 = vld [vmem:[#allocation49_spill] sm:$0xff] }
 0x3eb   : > { %v1806_v31 = vrot.slane %v1805_v18, 2  ;;  %v2699_v16 = vpop.permute.xlu0 %2698 }
 0x3ec   : > { %2899 = vperm.xlu1 %3570, %v3581_v20   ;;  %v6693_v46 = vpop.permute.xlu1 %2578  ;;  %3035 = vperm.xlu0 %3572, %v3582_v5  }
 0x3ed   : > { %8466 = vst [vmem:[#allocation113_spill] sm:$0xff] %v6693_v46  ;;  %v1807_v29 = vadd.f32 %v1806_v31, %v1805_v18 }
 0x3ef   : > { %v1808_v2 = vrot.slane %v1807_v29, 1  ;;  %v2703_v32 = vpop.permute.xlu0 %2702 }
 0x3f0   : > { %2907 = vperm.xlu1 %3570, %v3582_v5   ;;  %v2583_v60 = vpop.permute.xlu1 %2582  ;;  %3043 = vperm.xlu0 %3572, %v3583_v21  }
 0x3f1   : > { %v1809_v63 = vadd.f32 %v1808_v2, %v1807_v29  ;;  %v6711_v2 = vld [vmem:[%s7711_s4 + $0x8] sm:$0xff] }
 0x3f2   : > { %8468 = vst [vmem:[#allocation114_spill] sm:$0xff] %v6711_v2 }
 0x3f3   : > { %v1811_v55 = vmul.f32 0.083333336, %v1809_v63  ;;  %v2707_v20 = vpop.permute.xlu0 %2706 }
 0x3f4   : > { %2915 = vperm.xlu1 %3570, %v3583_v21   ;;  %v6701_v46 = vpop.permute.xlu1 %2586  ;;  %3574 = vset.pattern.permute.xlu0 %v8467_v10 }
 0x3f5   : > { %v6703_v18 = vsub.f32 %v1791_v27, %v1811_v55  ;;  %v6705_v31 = vsub.f32 %v1796_v19, %v1811_v55  ;;  %2123 = vperm.xlu0 %3574, %v6711_v2   ;;  %v8469_v27 = vld [vmem:[#allocation87_spill] sm:$0xff] }
 0x3f6   : > { %v2470_v55 = vsel %vm939_vm3, %v8469_v27, %v6349_v40  ;;  %v2478_v19 = vsel %vm939_vm3, %v6349_v40, %v8469_v27  ;;  %v6740_v40 = vld [vmem:[%s7711_s4 + $0x20] sm:$0xff] }
 0x3f7   : > { %v1814_v29 = vmul.f32 %v6703_v18, %v6703_v18  ;;  %v1815_v21 = vmul.f32 %v6705_v31, %v6705_v31  ;;  %v2711_v5 = vpop.permute.xlu0 %2710  ;;  %8472 = vst [vmem:[#allocation122_spill] sm:$0xff] %v6740_v40 }
 0x3f8   : > { %v2726_v63 = vsel %vm1223_vm6, %v2695_v34, %v2711_v5  ;;  %v2734_v8 = vsel %vm1223_vm6, %v2711_v5, %v2695_v34  ;;  %2952 = vrot.lane.b32.xlu1 %v8470_v1, %s8444_s15  ;;  %v6732_v17 = vpop.permute.xlu1 %2590  ;;  %v2486_v34 = vmul.f32 %v2478_v19, %v8447_v13  ;;  %v2487_v5 = vmul.f32 %v2470_v55, %v8448_v37 }
 0x3f9   : > { %8471 = vst [vmem:[#allocation106_spill] sm:$0xff] %v6732_v17  ;;  %v1816_v41 = vsel %vm1799_vm11, %v1814_v29, 0.0  ;;  %v1817_v30 = vsel %vm1801_vm10, %v1815_v21, 0.0  ;;  %3573 = vset.pattern.permute.xlu1 %v8449_v9  ;;  %2135 = vperm.xlu0 %3574, %v6740_v40   ;;  %v2598_v29 = vsel %vm1081_vm4, %v6670_v51, %v2583_v60  ;;  %v2606_v55 = vsel %vm1081_vm4, %v2583_v60, %v6670_v51 }
 0x3fa   : > { %v1818_v45 = vadd.f32 %v1817_v30, %v1816_v41  ;;  %v2534_v21 = vmul.f32 %v6399_v48, %v2486_v34  ;;  %v2535_v19 = vmul.f32 %v6399_v48, %v2487_v5  ;;  %v2615_v34 = vmul.f32 %v2606_v55, %v8476_v43 }
 0x3fb   : > { %v2715_v27 = vpop.permute.xlu0 %2714  ;;  %v2601_v55 = vsel %vm1081_vm4, %v6515_v26, %v6622_v61 }
 0x3fc   : > { %v1819_v17 = vrot.slane %v1818_v45, 4  ;;  %v6750_v41 = vsel %vm1223_vm6, %v2699_v16, %v2715_v27  ;;  %v6754_v30 = vsel %vm1223_vm6, %v2715_v27, %v2699_v16  ;;  %2956 = vrot.lane.b32.xlu1 %v5738_v39, %s8444_s15  ;;  %v6758_v9 = vpop.permute.xlu1 %2594  ;;  %v8475_v16 = vld [vmem:[#allocation20_spill] sm:$0xff]  ;;  %v2551_v51 = vadd.f32 %v2535_v19, %v6367_v33 }
 0x3fd   : > { %8473 = vst [vmem:[#allocation11_spill] sm:$0xff] %v6758_v9  ;;  %2143 = vperm.xlu0 %3574, %v6768_v56   ;;  %v2614_v39 = vmul.f32 %v2598_v29, %v8475_v16 }
 0x3fe   : > { %v1820_v4 = vadd.f32 %v1819_v17, %v1818_v45  ;;  %v2550_v17 = vadd.f32 %v2534_v21, %v6365_v7  ;;  %v8477_v21 = vld [vmem:[#allocation24_spill] sm:$0xff] }
 0x3ff   : > { %v2719_v27 = vpop.permute.xlu0 %2718 }
 0x400   : > { %v1821_v9 = vrot.slane %v1820_v4, 2  ;;  %v6775_v12 = vsel %vm1223_vm6, %v2703_v32, %v2719_v27  ;;  %v6779_v45 = vsel %vm1223_vm6, %v2719_v27, %v2703_v32  ;;  %2960 = vrot.lane.b32.xlu1 %v5818_v28, %s8444_s15  ;;  %v2632_v48 = vpop.permute.xlu1 %2631  ;;  %v2609_v32 = vsel %vm1081_vm4, %v6622_v61, %v6515_v26  ;;  %v8478_v61 = vld [vmem:[#allocation17_spill] sm:$0xff] }
 0x401   : > { %v2662_v5 = vmul.f32 %v2632_v48, %v2614_v39  ;;  %v2663_v29 = vmul.f32 %v2632_v48, %v2615_v34  ;;  %v2742_v26 = vmul.f32 %v2726_v63, %v8477_v21  ;;  %v2743_v19 = vmul.f32 %v2734_v8, %v8478_v61 }
 0x402   : > { %v1822_v60 = vadd.f32 %v1821_v9, %v1820_v4  ;;  %v2603_v39 = vsel %vm1081_vm4, %v6544_v54, %v6636_v25  ;;  %v2620_v48 = vmul.f32 %v2601_v55, %v8475_v16 }
 0x403   : > { %v2723_v27 = vpop.permute.xlu0 %2722  ;;  %v2678_v53 = vadd.f32 %v2662_v5, %v2550_v17  ;;  %v2679_v47 = vadd.f32 %v2663_v29, %v2551_v51 }
 0x404   : > { %v1823_v28 = vrot.slane %v1822_v60, 1  ;;  %v6795_v7 = vsel %vm1223_vm6, %v2707_v20, %v2723_v27  ;;  %2964 = vrot.lane.b32.xlu1 %v5824_v3, %s8444_s15  ;;  %v6799_v4 = vpop.permute.xlu1 %2639  ;;  %v6803_v33 = vsel %vm1223_vm6, %v2723_v27, %v2707_v20  ;;  %v2621_v3 = vmul.f32 %v2609_v32, %v8476_v43 }
 0x405   : > { %v2611_v20 = vsel %vm1081_vm4, %v6636_v25, %v6544_v54  ;;  %v2624_v25 = vmul.f32 %v2603_v39, %v8475_v16 }
 0x406   : > { %v1824_v9 = vadd.f32 %v1823_v28, %v1822_v60 }
 0x407   : > { %v2760_v34 = vpop.permute.xlu0 %2759 }
 0x408   : > { %v1825_v17 = vmul.f32 0.083333336, %v1824_v9  ;;  %v2790_v51 = vmul.f32 %v2760_v34, %v2742_v26  ;;  %v2791_v63 = vmul.f32 %v2760_v34, %v2743_v19  ;;  %2968 = vrot.lane.b32.xlu1 %v5612_v62, %s8444_s15  ;;  %v2644_v8 = vpop.permute.xlu1 %2643  ;;  %v2625_v9 = vmul.f32 %v2611_v20, %v8476_v43 }
 0x409   : > { %v2668_v60 = vmul.f32 %v2644_v8, %v2620_v48  ;;  %v2669_v5 = vmul.f32 %v2644_v8, %v2621_v3 }
 0x40a   : > { %v1826_v29 = vadd.f32 1e-05, %v1825_v17  ;;  %v6819_v27 = vadd.f32 %v2790_v51, %v2678_v53  ;;  %v6821_v55 = vadd.f32 %v2791_v63, %v2679_v47  ;;  %v2605_v53 = vsel %vm1081_vm4, %v6576_v57, %v6644_v14  ;;  %v1831_v63 = vld [vmem:[%s7714_s7 + $0x8] sm:$0xf] }
 0x40b   : > { %v6824_v32 = vadd.f32 %v2668_v60, %v6594_v11  ;;  %v6827_v28 = vadd.f32 %v2669_v5, %v6596_v38  ;;  %v6829_v54 = vpop.permute.xlu0 %2771  ;;  %v2613_v11 = vsel %vm1081_vm4, %v6644_v14, %v6576_v57  ;;  %v2628_v19 = vmul.f32 %v2605_v53, %v8475_v16  ;;  %v1835_v5 = vld [vmem:[%s7715_s8 + $0x8] sm:$0xf] }
 0x40c   : > { %3578 = vrsqrt.f32 %v1826_v29  ;;  %2972 = vrot.lane.b32.xlu1 %v5740_v52, %s8444_s15  ;;  %v2652_v38 = vpop.permute.xlu1 %2651  ;;  %v2629_v39 = vmul.f32 %v2613_v11, %v8476_v43 }
 0x40d   : > { %v2672_v47 = vmul.f32 %v2652_v38, %v2624_v25  ;;  %v2673_v26 = vmul.f32 %v2652_v38, %v2625_v9 }
 0x40f   : > { %v6846_v34 = vadd.f32 %v2672_v47, %v6618_v23  ;;  %v6849_v48 = vadd.f32 %v2673_v26, %v6620_v24  ;;  %v6851_v3 = vpop.permute.xlu0 %2779 }
 0x410   : > { %2976 = vrot.lane.b32.xlu1 %v5820_v36, %s8444_s15  ;;  %v2660_v57 = vpop.permute.xlu1 %2659  ;;  %v1830_v36 = vld [vmem:[%s7714_s7] sm:$0xff] }
 0x411   : > { %v2676_v52 = vmul.f32 %v2660_v57, %v2628_v19  ;;  %v2677_v14 = vmul.f32 %v2660_v57, %v2629_v39  ;;  %v1841_v39 = vld [vmem:[%s7716_s9 + $0x8] sm:$0xff] }
 0x413   : > { %v6856_v20 = vadd.f32 %v2676_v52, %v6632_v35  ;;  %v6859_v17 = vadd.f32 %v2677_v14, %v6634_v49  ;;  %v6861_v51 = vpop.permute.xlu0 %2787 }
 0x414   : > { %2980 = vrot.lane.b32.xlu1 %v5826_v44, %s8444_s15  ;;  %v2697_v23 = vpop.permute.xlu1 %2696  ;;  %v1834_v44 = vld [vmem:[%s7715_s8] sm:$0xff]  ;;  %s7616_s15 = scalar_lea.vmem [#allocation5], %s7605_s13  ;;  %s3726_s13 = smov [#allocation5]  }
 0x415   : > { %s3276_s29 = sshll.u32 %s7616_s15, 4  ;;  %s3640_s22 = sshll.u32 %s3726_s13, 4  ;;  %s7659_s29 = int_to_ptr.vmem [resolvable:$true] %s3276_s29  ;;  %s3641_s22 = int_to_ptr.vmem [resolvable:$false] %s3640_s22 }
 0x416   : > { %v3579_v24 = vpop.eup %3578  ;;  %s3636_s30 = scalar_lea.vmem %s7659_s29, 2048  ;;  %p3643_p2 = scmp.lt.s32.totalorder %s7659_s29, %s3641_s22 }
 0x417   : > { %v1828_v35 = vmul.f32 %v3579_v24, %v6703_v18  ;;  %v2825_v8 = vpop.permute.xlu0 %2824  ;;  %v1829_v49 = vmul.f32 %v3579_v24, %v6705_v31  ;;  %p3637_p6 = scmp.ne.s32.totalorder %s7659_s29, %s3636_s30 }
 0x418   : > { %v2701_v60 = vpop.permute.xlu1 %2700  ;;  %3019 = vperm.xlu1 %3573, %v6711_v2   ;;  %v8503_v2 = vld [vmem:[#allocation52_spill] sm:$0xff] }
 0x419   : > { %v1832_v29 = vmul.f32 %v1830_v36, %v1828_v35  ;;  %v1833_v25 = vmul.f32 %v1831_v63, %v1829_v49  ;;  %v1843_v36 = vld [vmem:[%s7716_s9 + $0x18] sm:$0xff]  ;;  %v1844_v35 = vld [vmem:[%s7716_s9 + $0x20] sm:$0xff]  ;;  %v8479_v49 = vld [vmem:[#allocation99_spill] sm:$0xff]  ;;  %p3638_p10 = pnand %p3637_p6, %p8584_p9 }
 0x41b   : > { %v2829_v9 = vpop.permute.xlu0 %2828  ;;  %v1836_v53 = vadd.f32 %v1834_v44, %v1832_v29  ;;  %v1837_v11 = vadd.f32 %v1835_v5, %v1833_v25  ;;  %v2472_v44 = vsel %vm939_vm3, %v8479_v49, %v6369_v15  ;;  %p3639_p12 = pneg %p3638_p10 }
 0x41c   : > { %v2705_v18 = vpop.permute.xlu1 %2704  ;;  %3023 = vperm.xlu1 %3573, %v6685_v22   ;;  %v1842_v22 = vld [vmem:[%s7716_s9 + $0x10] sm:$0xff] }
 0x41d   : > { %v1838_v31 = vmax.f32 %v1836_v53, 0.0  ;;  %v1839_v38 = vmax.f32 %v1837_v11, 0.0 }
 0x41f   : > { %v2833_v47 = vpop.permute.xlu0 %2832  ;;  %v3455_v26 = vpack.c.bf16 %v1839_v38, %v1838_v31  ;;  %v2491_v38 = vmul.f32 %v2472_v44, %v8448_v37 }
 0x420   : > { %v2709_v19 = vpop.permute.xlu1 %2708  ;;  %3031 = vperm.xlu1 %3573, %v6740_v40  }
 0x421   : > { %3457 = vmatprep.subr.msk.bf16.mxu1 %vm3456_vm14, %v3455_v26 }
 0x422   : > { %3460 = vmatpush3.bf16.msk.msra.mxu1 %vm3456_vm14, %v3455_v26 }
 0x423   : > { %v6885_v57 = vpop.permute.xlu0 %2836 }
 0x424   : > { %v2713_v52 = vpop.permute.xlu1 %2712  ;;  %3039 = vperm.xlu1 %3573, %v6768_v56   ;;  %v8502_v56 = vld [vmem:[#allocation66_spill] sm:$0xff] }
 0x425   : > { %v2727_v14 = vsel %vm1223_vm6, %v2697_v23, %v2713_v52  ;;  %v2735_v24 = vsel %vm1223_vm6, %v2713_v52, %v2697_v23  ;;  %3428 = vmatmul.mubr.msk.f32.vlgmr.msra.gmra.mrb[0].mxu1 %vm1856_vm9, %v1841_v39  ;;  %v2480_v23 = vsel %vm939_vm3, %v6369_v15, %v8479_v49  ;;  %v2608_v49 = vsel %vm1081_vm4, %v6701_v46, %v6679_v59 }
 0x426   : > { %3430 = vmatprep.mubr.msk.f32.mxu1 %vm1856_vm9, %v1842_v22 }
 0x427   : > { %v2841_v63 = vpop.permute.xlu0 %2840 }
 0x428   : > { %v6913_v5 = vsel %vm1365_vm5, %v2825_v8, %v2841_v63  ;;  %v6917_v29 = vsel %vm1365_vm5, %v2841_v63, %v2825_v8  ;;  %v2717_v25 = vpop.permute.xlu1 %2716  ;;  %3575 = vset.pattern.permute.xlu1 %v8467_v10  ;;  %v1845_v8 = vld [vmem:[%s7716_s9 + $0x28] sm:$0xff]  ;;  %v2490_v10 = vmul.f32 %v2480_v23, %v8447_v13 }
 0x429   : > { %v2729_v53 = vsel %vm1223_vm6, %v2701_v60, %v2717_v25  ;;  %v2737_v11 = vsel %vm1223_vm6, %v2717_v25, %v2701_v60  ;;  %3431 = vmatmul.mubr.msk.f32.gmra.mrb[2].mxu1 %vm1856_vm9, %v1843_v36  ;;  %v1846_v60 = vld [vmem:[%s7716_s9 + $0x30] sm:$0xff]  ;;  %v1847_v25 = vld [vmem:[%s7716_s9 + $0x38] sm:$0xff] }
 0x42a   : > { %v2748_v15 = vmul.f32 %v2729_v53, %v8477_v21  ;;  %v2749_v31 = vmul.f32 %v2737_v11, %v8478_v61  ;;  %3433 = vmatprep.mubr.msk.f32.mxu1 %vm1856_vm9, %v1844_v35  ;;  %v2600_v35 = vsel %vm1081_vm4, %v6679_v59, %v6701_v46  ;;  %v2539_v53 = vmul.f32 %v6640_v58, %v2491_v38 }
 0x42b   : > { %v2845_v26 = vpop.permute.xlu0 %2844 }
 0x42c   : > { %v2796_v39 = vmul.f32 %v6829_v54, %v2748_v15  ;;  %v2797_v22 = vmul.f32 %v6829_v54, %v2749_v31  ;;  %v6940_v52 = vsel %vm1365_vm5, %v2829_v9, %v2845_v26  ;;  %v6944_v36 = vsel %vm1365_vm5, %v2845_v26, %v2829_v9  ;;  %v2721_v63 = vpop.permute.xlu1 %2720 }
 0x42d   : > { %v2731_v54 = vsel %vm1223_vm6, %v2705_v18, %v2721_v63  ;;  %v2739_v44 = vsel %vm1223_vm6, %v2721_v63, %v2705_v18  ;;  %3434 = vmatmul.mubr.msk.f32.gmra.mrb[4].mxu1 %vm1856_vm9, %v1845_v8  ;;  %v2538_v18 = vmul.f32 %v6640_v58, %v2490_v10  ;;  %v2619_v10 = vmul.f32 %v2608_v49, %v8476_v43 }
 0x42e   : > { %v2752_v9 = vmul.f32 %v2731_v54, %v8477_v21  ;;  %v2753_v23 = vmul.f32 %v2739_v44, %v8478_v61  ;;  %3436 = vmatprep.mubr.msk.f32.mxu1 %vm1856_vm9, %v1846_v60  ;;  %v6966_v59 = vadd.f32 %v2796_v39, %v6824_v32  ;;  %v6969_v46 = vadd.f32 %v2797_v22, %v6827_v28 }
 0x42f   : > { %v2849_v11 = vpop.permute.xlu0 %2848  ;;  %v2618_v28 = vmul.f32 %v2600_v35, %v8475_v16  ;;  %v2667_v63 = vmul.f32 %v6799_v4, %v2619_v10  ;;  %v2744_v35 = vmul.f32 %v2727_v14, %v8477_v21 }
 0x430   : > { %v2800_v15 = vmul.f32 %v6851_v3, %v2752_v9  ;;  %v2801_v31 = vmul.f32 %v6851_v3, %v2753_v23  ;;  %v6977_v8 = vsel %vm1365_vm5, %v2833_v47, %v2849_v11  ;;  %v6981_v32 = vsel %vm1365_vm5, %v2849_v11, %v2833_v47  ;;  %v2725_v26 = vpop.permute.xlu1 %2724 }
 0x431   : > { %v2733_v58 = vsel %vm1223_vm6, %v2709_v19, %v2725_v26  ;;  %v2741_v38 = vsel %vm1223_vm6, %v2725_v26, %v2709_v19  ;;  %3437 = vmatmul.mubr.msk.f32.gmra.mrb[6].mxu1 %vm1856_vm9, %v1847_v25  ;;  %v2666_v22 = vmul.f32 %v6799_v4, %v2618_v28  ;;  %v2745_v19 = vmul.f32 %v2735_v24, %v8478_v61  ;;  %v8481_v26 = vld [vmem:[#allocation32_spill] sm:$0xff] }
 0x432   : > { %v2756_v3 = vmul.f32 %v2733_v58, %v8477_v21  ;;  %v2757_v60 = vmul.f32 %v2741_v38, %v8478_v61  ;;  %v6993_v47 = vadd.f32 %v2800_v15, %v6846_v34  ;;  %v6996_v39 = vadd.f32 %v2801_v31, %v6849_v48  ;;  %v8480_v15 = vld [vmem:[#allocation35_spill] sm:$0xff] }
 0x433   : > { %v2853_v49 = vpop.permute.xlu0 %2852  ;;  %v2554_v24 = vadd.f32 %v2538_v18, %v6378_v6  ;;  %v2555_v23 = vadd.f32 %v2539_v53, %v6380_v50  ;;  %v2746_v11 = vmul.f32 %v6750_v41, %v8477_v21  ;;  %v2872_v31 = vmul.f32 %v6913_v5, %v8480_v15 }
 0x434   : > { %v2804_v54 = vmul.f32 %v6861_v51, %v2756_v3  ;;  %v2805_v44 = vmul.f32 %v6861_v51, %v2757_v60  ;;  %v7007_v34 = vsel %vm1365_vm5, %v6885_v57, %v2853_v49  ;;  %v7012_v48 = vsel %vm1365_vm5, %v2853_v49, %v6885_v57  ;;  %v2764_v4 = vpop.permute.xlu1 %2763 }
 0x435   : > { %v7014_v9 = vmul.f32 %v2764_v4, %v2744_v35  ;;  %v7016_v14 = vmul.f32 %v2764_v4, %v2745_v19  ;;  %v2747_v57 = vmul.f32 %v6754_v30, %v8478_v61  ;;  %v2873_v6 = vmul.f32 %v6917_v29, %v8481_v26 }
 0x436   : > { %v7021_v51 = vadd.f32 %v2804_v54, %v6856_v20  ;;  %v7024_v25 = vadd.f32 %v2805_v44, %v6859_v17  ;;  %v2682_v18 = vadd.f32 %v2666_v22, %v2554_v24  ;;  %v2683_v50 = vadd.f32 %v2667_v63, %v2555_v23 }
 0x437   : > { %v2892_v53 = vpop.permute.xlu0 %2891  ;;  %v2750_v41 = vmul.f32 %v6775_v12, %v8477_v21  ;;  %v2751_v30 = vmul.f32 %v6779_v45, %v8478_v61  ;;  %v2754_v63 = vmul.f32 %v6795_v7, %v8477_v21  ;;  %v2755_v35 = vmul.f32 %v6803_v33, %v8478_v61 }
 0x438   : > { %v2768_v20 = vpop.permute.xlu1 %2767  ;;  %v7034_v28 = vmul.f32 %v2892_v53, %v2872_v31  ;;  %v7036_v17 = vmul.f32 %v2892_v53, %v2873_v6 }
 0x439   : > { %v2794_v10 = vmul.f32 %v2768_v20, %v2746_v11  ;;  %v2795_v58 = vmul.f32 %v2768_v20, %v2747_v57  ;;  %v8493_v20 = vld [vmem:[#allocation55_spill] sm:$0xff] }
 0x43a   : > { %8482 = vst [vmem:[#allocation18_spill] sm:$0xff] %v7036_v17 }
 0x43b   : > { %v7042_v5 = vadd.f32 %v2794_v10, %v2682_v18  ;;  %v7044_v38 = vadd.f32 %v2795_v58, %v2683_v50  ;;  %v2904_v29 = vpop.permute.xlu0 %2903  ;;  %v7080_v10 = vmul.f32 %v8493_v20, %v8470_v1  ;;  %v7084_v58 = vmul.f32 %v8493_v20, %v5612_v62 }
 0x43c   : > { %v2776_v3 = vpop.permute.xlu1 %2775 }
 0x43d   : > { %v7046_v60 = vmul.f32 %v2776_v3, %v2750_v41  ;;  %v7048_v22 = vmul.f32 %v2776_v3, %v2751_v30  ;;  %v8495_v3 = vld [vmem:[#allocation58_spill] sm:$0xff] }
 0x43f   : > { %8483 = vst [vmem:[#allocation13_spill] sm:$0xff] %v7046_v60  ;;  %8484 = vst [vmem:[#allocation135_spill] sm:$0xff] %v7048_v22  ;;  %v2912_v12 = vpop.permute.xlu0 %2911 }
 0x440   : > { %v2784_v19 = vpop.permute.xlu1 %2783 }
 0x441   : > { %v7054_v49 = vmul.f32 %v2784_v19, %v2754_v63  ;;  %v7056_v45 = vmul.f32 %v2784_v19, %v2755_v35  ;;  %v8496_v63 = vld [vmem:[#allocation57_spill] sm:$0xff] }
 0x442   : > { %v2087_v35 = vsel %vm514_vm0, %v8496_v63, %v8495_v3  ;;  %v2095_v19 = vsel %vm514_vm0, %v8495_v3, %v8496_v63  ;;  %v8499_v63 = vld [vmem:[#allocation56_spill] sm:$0xff] }
 0x443   : > { %8485 = vst [vmem:[#allocation16_spill] sm:$0xff] %v7054_v49  ;;  %8486 = vst [vmem:[#allocation33_spill] sm:$0xff] %v7056_v45  ;;  %v7058_v54 = vpop.permute.xlu0 %2950  ;;  %v8513_v45 = vld [vmem:[#allocation59_spill] sm:$0xff] }
 0x444   : > { %8487 = vst [vmem:[#allocation28_spill] sm:$0xff] %v7058_v54  ;;  %v2823_v44 = vpop.permute.xlu1 %2822  ;;  %v7112_v54 = vmul.f32 %v8499_v63, %v8453_v42 }
 0x447   : > { %v7060_v4 = vpop.permute.xlu0 %2954 }
 0x448   : > { %8488 = vst [vmem:[#allocation37_spill] sm:$0xff] %v7060_v4  ;;  %v2827_v24 = vpop.permute.xlu1 %2826 }
 0x44b   : > { %v7062_v23 = vpop.permute.xlu0 %2958 }
 0x44c   : > { %8489 = vst [vmem:[#allocation36_spill] sm:$0xff] %v7062_v23  ;;  %v2831_v11 = vpop.permute.xlu1 %2830 }
 0x44f   : > { %v7064_v57 = vpop.permute.xlu0 %2962 }
 0x450   : > { %8490 = vst [vmem:[#allocation44_spill] sm:$0xff] %v7064_v57  ;;  %v2835_v7 = vpop.permute.xlu1 %2834  ;;  %v7124_v57 = vmul.f32 %v8502_v56, %v8503_v2 }
 0x453   : > { %v7066_v21 = vpop.permute.xlu0 %2966 }
 0x454   : > { %8491 = vst [vmem:[#allocation102_spill] sm:$0xff] %v7066_v21  ;;  %v2839_v33 = vpop.permute.xlu1 %2838  ;;  %v8500_v21 = vld [vmem:[#allocation51_spill] sm:$0xff] }
 0x455   : > { %v2854_v61 = vsel %vm1365_vm5, %v2823_v44, %v2839_v33  ;;  %v2862_v31 = vsel %vm1365_vm5, %v2839_v33, %v2823_v44  ;;  %v8497_v44 = vld [vmem:[#allocation60_spill] sm:$0xff] }
 0x456   : > { %v2870_v4 = vmul.f32 %v2854_v61, %v8480_v15  ;;  %v8518_v61 = vld [vmem:[#allocation74_spill] sm:$0xff] }
 0x457   : > { %v7072_v6 = vpop.permute.xlu0 %2970 }
 0x458   : > { %8492 = vst [vmem:[#allocation116_spill] sm:$0xff] %v7072_v6  ;;  %v2843_v18 = vpop.permute.xlu1 %2842  ;;  %v2871_v6 = vmul.f32 %v2862_v31, %v8481_v26 }
 0x459   : > { %v2856_v50 = vsel %vm1365_vm5, %v2827_v24, %v2843_v18  ;;  %v2864_v53 = vsel %vm1365_vm5, %v2843_v18, %v2827_v24  ;;  %v8498_v24 = vld [vmem:[#allocation65_spill] sm:$0xff] }
 0x45a   : > { %v2090_v33 = vsel %vm514_vm0, %v8498_v24, %v8497_v44  ;;  %v2098_v18 = vsel %vm514_vm0, %v8497_v44, %v8498_v24  ;;  %v8507_v24 = vld [vmem:[#allocation123_spill] sm:$0xff] }
 0x45b   : > { %v7086_v41 = vpop.permute.xlu0 %2974  ;;  %v7133_v23 = vmul.f32 %v2095_v19, %v8507_v24  ;;  %v7143_v2 = vmul.f32 %v2098_v18, %v8507_v24  ;;  %v8512_v18 = vld [vmem:[#allocation69_spill] sm:$0xff] }
 0x45c   : > { %8494 = vst [vmem:[#allocation108_spill] sm:$0xff] %v7086_v41  ;;  %v2847_v30 = vpop.permute.xlu1 %2846 }
 0x45d   : > { %v2858_v1 = vsel %vm1365_vm5, %v2831_v11, %v2847_v30  ;;  %v2866_v62 = vsel %vm1365_vm5, %v2847_v30, %v2831_v11  ;;  %v7116_v11 = vmul.f32 %v8499_v63, %v8500_v21  ;;  %v8501_v30 = vld [vmem:[#allocation50_spill] sm:$0xff]  ;;  %v8508_v21 = vld [vmem:[#allocation125_spill] sm:$0xff] }
 0x45e   : > { %v2878_v20 = vmul.f32 %v2858_v1, %v8480_v15  ;;  %v2879_v3 = vmul.f32 %v2866_v62, %v8481_v26  ;;  %v7120_v40 = vmul.f32 %v8502_v56, %v8501_v30  ;;  %v7136_v63 = vmul.f32 %v2087_v35, %v8508_v21 }
 0x45f   : > { %v7130_v62 = vpop.permute.xlu0 %2978 }
 0x460   : > { %v7126_v44 = vmul.f32 %v2904_v29, %v2878_v20  ;;  %v7128_v1 = vmul.f32 %v2904_v29, %v2879_v3  ;;  %8506 = vst [vmem:[#allocation45_spill] sm:$0xff] %v7130_v62  ;;  %v2851_v42 = vpop.permute.xlu1 %2850  ;;  %v7146_v29 = vmul.f32 %v2090_v33, %v8508_v21  ;;  %v8509_v20 = vld [vmem:[#allocation68_spill] sm:$0xff]  ;;  %v8510_v3 = vld [vmem:[#allocation73_spill] sm:$0xff] }
 0x461   : > { %v2860_v30 = vsel %vm1365_vm5, %v2835_v7, %v2851_v42  ;;  %v2868_v56 = vsel %vm1365_vm5, %v2851_v42, %v2835_v7  ;;  %v2092_v19 = vsel %vm514_vm0, %v8510_v3, %v8509_v20  ;;  %v2100_v35 = vsel %vm514_vm0, %v8509_v20, %v8510_v3  ;;  %v8511_v42 = vld [vmem:[#allocation62_spill] sm:$0xff]  ;;  %v8514_v20 = vld [vmem:[#allocation61_spill] sm:$0xff] }
 0x462   : > { %8504 = vst [vmem:[#allocation29_spill] sm:$0xff] %v7126_v44  ;;  %8505 = vst [vmem:[#allocation23_spill] sm:$0xff] %v7128_v1  ;;  %v2882_v62 = vmul.f32 %v2860_v30, %v8480_v15  ;;  %v2883_v7 = vmul.f32 %v2868_v56, %v8481_v26  ;;  %v2218_v33 = vsel %vm655_vm1, %v8512_v18, %v8511_v42 }
 0x463   : > { %v2226_v41 = vsel %vm655_vm1, %v8511_v42, %v8512_v18  ;;  %v2220_v30 = vsel %vm655_vm1, %v8514_v20, %v8513_v45  ;;  %v2228_v56 = vsel %vm655_vm1, %v8513_v45, %v8514_v20  ;;  %v7180_v1 = vpop.permute.xlu0 %3015  ;;  %v8519_v18 = vld [vmem:[#allocation71_spill] sm:$0xff]  ;;  %v8520_v45 = vld [vmem:[#allocation126_spill] sm:$0xff] }
 0x464   : > { %v7176_v3 = vmul.f32 %v2912_v12, %v2882_v62  ;;  %v7178_v49 = vmul.f32 %v2912_v12, %v2883_v7  ;;  %8517 = vst [vmem:[#allocation27_spill] sm:$0xff] %v7180_v1  ;;  %v2888_v42 = vpop.permute.xlu1 %2887  ;;  %v2215_v31 = vsel %vm655_vm1, %v8519_v18, %v8518_v61  ;;  %v2223_v44 = vsel %vm655_vm1, %v8518_v61, %v8519_v18  ;;  %v8521_v20 = vld [vmem:[#allocation127_spill] sm:$0xff] }
 0x465   : > { %v2918_v22 = vmul.f32 %v2888_v42, %v2870_v4  ;;  %v2919_v60 = vmul.f32 %v2888_v42, %v2871_v6  ;;  %v2238_v62 = vmul.f32 %v2226_v41, %v8520_v45  ;;  %v2239_v12 = vmul.f32 %v2218_v33, %v8521_v20  ;;  %v8525_v33 = vld [vmem:[#allocation76_spill] sm:$0xff]  ;;  %v8528_v42 = vld [vmem:[#allocation119_spill] sm:$0xff] }
 0x466   : > { %8515 = vst [vmem:[#allocation118_spill] sm:$0xff] %v7176_v3  ;;  %8516 = vst [vmem:[#allocation110_spill] sm:$0xff] %v7178_v49  ;;  %v7193_v7 = vmul.f32 %v2100_v35, %v8507_v24  ;;  %v7196_v1 = vmul.f32 %v2092_v19, %v8508_v21  ;;  %v2874_v49 = vmul.f32 %v2856_v50, %v8480_v15  ;;  %v8524_v50 = vld [vmem:[#allocation83_spill] sm:$0xff] }
 0x467   : > { %v2875_v3 = vmul.f32 %v2864_v53, %v8481_v26  ;;  %v7201_v17 = vadd.f32 %v2918_v22, %v6819_v27  ;;  %v7204_v4 = vadd.f32 %v2919_v60, %v6821_v55  ;;  %v2242_v6 = vmul.f32 %v2228_v56, %v8520_v45  ;;  %v7210_v19 = vpop.permute.xlu0 %3027  ;;  %v8526_v53 = vld [vmem:[#allocation96_spill] sm:$0xff]  ;;  %v8529_v61 = vld [vmem:[#allocation95_spill] sm:$0xff] }
 0x468   : > { %v2243_v41 = vmul.f32 %v2220_v30, %v8521_v20  ;;  %v2232_v24 = vmul.f32 %v2223_v44, %v8520_v45  ;;  %v2233_v35 = vmul.f32 %v2215_v31, %v8521_v20  ;;  %v2896_v21 = vpop.permute.xlu1 %2895  ;;  %v2343_v27 = vsel %vm797_vm2, %v8525_v33, %v8524_v50  ;;  %v8527_v30 = vld [vmem:[#allocation92_spill] sm:$0xff] }
 0x469   : > { %8522 = vst [vmem:[#allocation14_spill] sm:$0xff] %v7201_v17  ;;  %8523 = vst [vmem:[#allocation19_spill] sm:$0xff] %v7204_v4  ;;  %v2351_v55 = vsel %vm797_vm2, %v8524_v50, %v8525_v33  ;;  %v2922_v60 = vmul.f32 %v2896_v21, %v2874_v49  ;;  %v2923_v22 = vmul.f32 %v2896_v21, %v2875_v3  ;;  %v8530_v21 = vld [vmem:[#allocation67_spill] sm:$0xff] }
 0x46a   : > { %v2346_v44 = vsel %vm797_vm2, %v8527_v30, %v8526_v53  ;;  %v2354_v56 = vsel %vm797_vm2, %v8526_v53, %v8527_v30  ;;  %v2348_v18 = vsel %vm797_vm2, %v8529_v61, %v8528_v42  ;;  %v2356_v49 = vsel %vm797_vm2, %v8528_v42, %v8529_v61  ;;  %v8531_v53 = vld [vmem:[#allocation128_spill] sm:$0xff]  ;;  %v8532_v42 = vld [vmem:[#allocation130_spill] sm:$0xff] }
 0x46b   : > { %v2876_v3 = vmul.f32 %v6940_v52, %v8480_v15  ;;  %v2877_v31 = vmul.f32 %v6944_v36, %v8481_v26  ;;  %v7241_v45 = vadd.f32 %v2922_v60, %v7042_v5  ;;  %v7244_v20 = vadd.f32 %v2923_v22, %v7044_v38  ;;  %v7254_v4 = vpop.permute.xlu0 %3035  ;;  %v8533_v36 = vld [vmem:[#allocation80_spill] sm:$0xff] }
 0x46c   : > { %v7247_v50 = vmul.f32 %v8530_v21, %v2232_v24  ;;  %v7250_v33 = vmul.f32 %v8530_v21, %v2233_v35  ;;  %v2360_v30 = vmul.f32 %v2351_v55, %v8531_v53  ;;  %v2361_v61 = vmul.f32 %v2343_v27, %v8532_v42  ;;  %v2900_v52 = vpop.permute.xlu1 %2899 }
 0x46d   : > { %v7257_v17 = vmul.f32 %v8533_v36, %v2238_v62  ;;  %v7260_v5 = vmul.f32 %v8533_v36, %v2239_v12  ;;  %v2924_v38 = vmul.f32 %v2900_v52, %v2876_v3  ;;  %v2925_v60 = vmul.f32 %v2900_v52, %v2877_v31  ;;  %v8534_v3 = vld [vmem:[#allocation97_spill] sm:$0xff]  ;;  %v8538_v52 = vld [vmem:[#allocation82_spill] sm:$0xff] }
 0x46e   : > { %v2366_v24 = vmul.f32 %v2354_v56, %v8531_v53  ;;  %v2367_v35 = vmul.f32 %v2346_v44, %v8532_v42  ;;  %v2370_v22 = vmul.f32 %v2356_v49, %v8531_v53  ;;  %v2371_v55 = vmul.f32 %v2348_v18, %v8532_v42  ;;  %v8535_v49 = vld [vmem:[#allocation90_spill] sm:$0xff]  ;;  %v8537_v42 = vld [vmem:[#allocation91_spill] sm:$0xff] }
 0x46f   : > { %v2880_v27 = vmul.f32 %v6977_v8, %v8480_v15  ;;  %v2881_v62 = vmul.f32 %v6981_v32, %v8481_v26  ;;  %v7271_v21 = vadd.f32 %v2924_v38, %v6966_v59  ;;  %v7274_v12 = vadd.f32 %v2925_v60, %v6969_v46  ;;  %v7284_v53 = vpop.permute.xlu0 %3043  ;;  %v8536_v32 = vld [vmem:[#allocation111_spill] sm:$0xff] }
 0x470   : > { %v7277_v56 = vmul.f32 %v8534_v3, %v2242_v6  ;;  %v7280_v44 = vmul.f32 %v8534_v3, %v2243_v41  ;;  %v2408_v18 = vmul.f32 %v8535_v49, %v2360_v30  ;;  %v2409_v31 = vmul.f32 %v8535_v49, %v2361_v61  ;;  %v2908_v8 = vpop.permute.xlu1 %2907  ;;  %v8539_v61 = vld [vmem:[#allocation84_spill] sm:$0xff] }
 0x471   : > { %v2474_v59 = vsel %vm939_vm3, %v8537_v42, %v8536_v32  ;;  %v2482_v46 = vsel %vm939_vm3, %v8536_v32, %v8537_v42  ;;  %v2928_v6 = vmul.f32 %v2908_v8, %v2880_v27  ;;  %v2929_v41 = vmul.f32 %v2908_v8, %v2881_v62  ;;  %v8541_v62 = vld [vmem:[#allocation98_spill] sm:$0xff] }
 0x472   : > { %v2414_v36 = vmul.f32 %v8538_v52, %v2366_v24  ;;  %v2415_v30 = vmul.f32 %v8538_v52, %v2367_v35  ;;  %v7297_v38 = vmul.f32 %v8539_v61, %v2370_v22  ;;  %v7300_v60 = vmul.f32 %v8539_v61, %v2371_v55  ;;  %v8540_v22 = vld [vmem:[#allocation112_spill] sm:$0xff] }
 0x473   : > { %v2884_v3 = vmul.f32 %v7007_v34, %v8480_v15  ;;  %v2885_v49 = vmul.f32 %v7012_v48, %v8481_v26  ;;  %v7307_v32 = vadd.f32 %v2928_v6, %v6993_v47  ;;  %v7310_v27 = vadd.f32 %v2929_v41, %v6996_v39  ;;  %v8542_v47 = vld [vmem:[#allocation100_spill] sm:$0xff]  ;;  %v8545_v6 = vld [vmem:[#allocation103_spill] sm:$0xff] }
 0x474   : > { %v2494_v24 = vmul.f32 %v2482_v46, %v8447_v13  ;;  %v2495_v35 = vmul.f32 %v2474_v59, %v8448_v37  ;;  %v2476_v55 = vsel %vm939_vm3, %v8541_v62, %v8540_v22  ;;  %v2484_v34 = vsel %vm939_vm3, %v8540_v22, %v8541_v62  ;;  %v2916_v48 = vpop.permute.xlu1 %2915  ;;  %v8543_v15 = vld [vmem:[#allocation104_spill] sm:$0xff]  ;;  %v2124_v59 = vpop.permute.xlu0 %2123  ;;  %v8544_v46 = vld [vmem:[#allocation101_spill] sm:$0xff] }
 0x475   : > { %v2471_v39 = vsel %vm939_vm3, %v8543_v15, %v8542_v47  ;;  %v2479_v26 = vsel %vm939_vm3, %v8542_v47, %v8543_v15  ;;  %v2932_v8 = vmul.f32 %v2916_v48, %v2884_v3  ;;  %v2933_v42 = vmul.f32 %v2916_v48, %v2885_v49 }
 0x476   : > { %v2599_v41 = vsel %vm1081_vm4, %v8545_v6, %v8544_v46  ;;  %v2607_v52 = vsel %vm1081_vm4, %v8544_v46, %v8545_v6  ;;  %v2152_v61 = vmul.f32 %v2124_v59, %v7133_v23  ;;  %v2153_v22 = vmul.f32 %v2124_v59, %v7136_v63 }
 0x477   : > { %v2498_v62 = vmul.f32 %v2484_v34, %v8447_v13  ;;  %v2499_v3 = vmul.f32 %v2476_v55, %v8448_v37  ;;  %v7343_v49 = vadd.f32 %v2932_v8, %v7021_v51  ;;  %v7346_v48 = vadd.f32 %v2933_v42, %v7024_v25  ;;  %v8547_v34 = vld [vmem:[#allocation106_spill] sm:$0xff]  ;;  %v8548_v51 = vld [vmem:[#allocation121_spill] sm:$0xff] }
 0x478   : > { %v2488_v47 = vmul.f32 %v2479_v26, %v8447_v13  ;;  %v2489_v15 = vmul.f32 %v2471_v39, %v8448_v37  ;;  %v2168_v46 = vadd.f32 %v2152_v61, %v7080_v10  ;;  %v2169_v23 = vadd.f32 %v2153_v22, %v7084_v58  ;;  %v7352_v6 = vpop.permute.xlu1 %2952  ;;  %v2136_v37 = vpop.permute.xlu0 %2135  ;;  %v8549_v8 = vld [vmem:[#allocation93_spill] sm:$0xff] }
 0x479   : > { %8546 = vst [vmem:[#allocation10_spill] sm:$0xff] %v7346_v48  ;;  %v2616_v63 = vmul.f32 %v2599_v41, %v8475_v16  ;;  %v2617_v55 = vmul.f32 %v2607_v52, %v8476_v43  ;;  %v2602_v25 = vsel %vm1081_vm4, %v8548_v51, %v8547_v34  ;;  %v2610_v13 = vsel %vm1081_vm4, %v8547_v34, %v8548_v51  ;;  %v8550_v41 = vld [vmem:[#allocation105_spill] sm:$0xff] }
 0x47a   : > { %v2296_v10 = vadd.f32 %v7247_v50, %v2168_v46  ;;  %v2297_v58 = vadd.f32 %v7250_v33, %v2169_v23  ;;  %v2158_v39 = vmul.f32 %v2136_v37, %v7143_v2  ;;  %v2159_v26 = vmul.f32 %v2136_v37, %v7146_v29  ;;  %v8551_v33 = vld [vmem:[#allocation120_spill] sm:$0xff] }
 0x47b   : > { %v2536_v42 = vmul.f32 %v8549_v8, %v2488_v47  ;;  %v2537_v59 = vmul.f32 %v8549_v8, %v2489_v15  ;;  %v2542_v52 = vmul.f32 %v8550_v41, %v2494_v24  ;;  %v2543_v61 = vmul.f32 %v8550_v41, %v2495_v35  ;;  %v8553_v35 = vld [vmem:[#allocation113_spill] sm:$0xff] }
 0x47c   : > { %v2424_v22 = vadd.f32 %v2408_v18, %v2296_v10  ;;  %v2425_v48 = vadd.f32 %v2409_v31, %v2297_v58  ;;  %v2174_v34 = vadd.f32 %v2158_v39, %v7112_v54  ;;  %v2175_v50 = vadd.f32 %v2159_v26, %v7116_v11  ;;  %v7374_v46 = vpop.permute.xlu1 %2956  ;;  %v2144_v23 = vpop.permute.xlu0 %2143  ;;  %v8552_v54 = vld [vmem:[#allocation11_spill] sm:$0xff] }
 0x47d   : > { %v2664_v2 = vmul.f32 %v8551_v33, %v2616_v63  ;;  %v2665_v29 = vmul.f32 %v8551_v33, %v2617_v55  ;;  %v2622_v47 = vmul.f32 %v2602_v25, %v8475_v16  ;;  %v2623_v15 = vmul.f32 %v2610_v13, %v8476_v43  ;;  %v8554_v10 = vld [vmem:[#allocation115_spill] sm:$0xff]  ;;  %v8557_v33 = vld [vmem:[#allocation13_spill] sm:$0xff] }
 0x47e   : > { %v2552_v24 = vadd.f32 %v2536_v42, %v2424_v22  ;;  %v2553_v51 = vadd.f32 %v2537_v59, %v2425_v48  ;;  %v2302_v18 = vadd.f32 %v7257_v17, %v2174_v34  ;;  %v2303_v31 = vadd.f32 %v7260_v5, %v2175_v50  ;;  %v8556_v50 = vld [vmem:[#allocation124_spill] sm:$0xff] }
 0x47f   : > { %v2604_v11 = vsel %vm1081_vm4, %v8553_v35, %v8552_v54  ;;  %v2612_v63 = vsel %vm1081_vm4, %v8552_v54, %v8553_v35  ;;  %v2162_v55 = vmul.f32 %v2144_v23, %v7193_v7  ;;  %v2163_v25 = vmul.f32 %v2144_v23, %v7196_v1  ;;  %v8562_v35 = vld [vmem:[#allocation16_spill] sm:$0xff] }
 0x480   : > { %v2430_v13 = vadd.f32 %v2414_v36, %v2302_v18  ;;  %v2431_v48 = vadd.f32 %v2415_v30, %v2303_v31  ;;  %v7392_v37 = vpop.permute.xlu1 %2960  ;;  %v2680_v17 = vadd.f32 %v2664_v2, %v2552_v24  ;;  %v2681_v5 = vadd.f32 %v2665_v29, %v2553_v51  ;;  %v8558_v2 = vld [vmem:[#allocation135_spill] sm:$0xff]  ;;  %v8560_v18 = vld [vmem:[#allocation29_spill] sm:$0xff] }
 0x481   : > { %v2670_v58 = vmul.f32 %v8554_v10, %v2622_v47  ;;  %v2671_v39 = vmul.f32 %v8554_v10, %v2623_v15  ;;  %v2178_v26 = vadd.f32 %v2162_v55, %v7120_v40  ;;  %v2179_v8 = vadd.f32 %v2163_v25, %v7124_v57  ;;  %v8555_v57 = vld [vmem:[#allocation18_spill] sm:$0xff]  ;;  %v8559_v47 = vld [vmem:[#allocation107_spill] sm:$0xff] }
 0x482   : > { %v2558_v42 = vadd.f32 %v2542_v52, %v2430_v13  ;;  %v2559_v59 = vadd.f32 %v2543_v61, %v2431_v48  ;;  %v2808_v7 = vadd.f32 %v7014_v9, %v2680_v17  ;;  %v2809_v1 = vadd.f32 %v7016_v14, %v2681_v5  ;;  %v8561_v31 = vld [vmem:[#allocation23_spill] sm:$0xff]  ;;  %v8564_v25 = vld [vmem:[#allocation118_spill] sm:$0xff] }
 0x483   : > { %v2626_v36 = vmul.f32 %v2604_v11, %v8475_v16  ;;  %v2627_v30 = vmul.f32 %v2612_v63, %v8476_v43  ;;  %v2306_v41 = vadd.f32 %v7277_v56, %v2178_v26  ;;  %v2307_v22 = vadd.f32 %v7280_v44, %v2179_v8  ;;  %v8563_v11 = vld [vmem:[#allocation33_spill] sm:$0xff]  ;;  %v8565_v48 = vld [vmem:[#allocation110_spill] sm:$0xff] }
 0x484   : > { %v7404_v34 = vpop.permute.xlu1 %2964  ;;  %v7407_v40 = vadd.f32 %v7034_v28, %v2808_v7  ;;  %v7410_v52 = vadd.f32 %v8555_v57, %v2809_v1  ;;  %v2686_v61 = vadd.f32 %v2670_v58, %v2558_v42  ;;  %v2687_v9 = vadd.f32 %v2671_v39, %v2559_v59  ;;  %v8566_v58 = vld [vmem:[#allocation116_spill] sm:$0xff]  ;;  %v8567_v39 = vld [vmem:[#allocation37_spill] sm:$0xff]  ;;  %v8568_v59 = vld [vmem:[#allocation47_spill] sm:$0xff] }
 0x485   : > { %v2546_v14 = vmul.f32 %v8556_v50, %v2498_v62  ;;  %v2547_v16 = vmul.f32 %v8556_v50, %v2499_v3  ;;  %v2434_v43 = vadd.f32 %v7297_v38, %v2306_v41  ;;  %v2435_v56 = vadd.f32 %v7300_v60, %v2307_v22  ;;  %v8569_v1 = vld [vmem:[#allocation39_spill] sm:$0xff]  ;;  %v8571_v41 = vld [vmem:[#allocation36_spill] sm:$0xff] }
 0x486   : > { %v2814_v44 = vadd.f32 %v8557_v33, %v2686_v61  ;;  %v2815_v29 = vadd.f32 %v8558_v2, %v2687_v9  ;;  %v2674_v28 = vmul.f32 %v8559_v47, %v2626_v36  ;;  %v2675_v15 = vmul.f32 %v8559_v47, %v2627_v30  ;;  %v8570_v30 = vld [vmem:[#allocation108_spill] sm:$0xff]  ;;  %v8572_v33 = vld [vmem:[#allocation45_spill] sm:$0xff] }
 0x487   : > { %v2562_v23 = vadd.f32 %v2546_v14, %v2434_v43  ;;  %v2563_v24 = vadd.f32 %v2547_v16, %v2435_v56  ;;  %v2984_v26 = vsel %vm1507_vm7, %v8567_v39, %v8566_v58  ;;  %v2992_v8 = vsel %vm1507_vm7, %v8566_v58, %v8567_v39  ;;  %v1851_v39 = vld [vmem:[%s7717_s10 + $0x18] sm:$0xff] }
 0x488   : > { %v7420_v51 = vpop.permute.xlu1 %2968  ;;  %v2942_v62 = vadd.f32 %v8560_v18, %v2814_v44  ;;  %v2943_v3 = vadd.f32 %v8561_v31, %v2815_v29  ;;  %v3002_v7 = vmul.f32 %v2984_v26, %v8568_v59  ;;  %v3003_v36 = vmul.f32 %v2992_v8, %v8569_v1  ;;  %v8573_v44 = vld [vmem:[#allocation44_spill] sm:$0xff]  ;;  %v1852_v26 = vld [vmem:[%s7717_s10 + $0x20] sm:$0xff] }
 0x489   : > { %v2690_v54 = vadd.f32 %v2674_v28, %v2562_v23  ;;  %v2691_v38 = vadd.f32 %v2675_v15, %v2563_v24  ;;  %v2986_v22 = vsel %vm1507_vm7, %v8571_v41, %v8570_v30  ;;  %v2994_v57 = vsel %vm1507_vm7, %v8570_v30, %v8571_v41 }
 0x48a   : > { %v3006_v14 = vmul.f32 %v2986_v22, %v8568_v59  ;;  %v3007_v16 = vmul.f32 %v2994_v57, %v8569_v1  ;;  %v2988_v2 = vsel %vm1507_vm7, %v8573_v44, %v8572_v33  ;;  %v2996_v29 = vsel %vm1507_vm7, %v8572_v33, %v8573_v44  ;;  %v1854_v22 = vld [vmem:[%s7717_s10 + $0x30] sm:$0xff]  ;;  %v3587_v44 = vld [vmem:[%s7711_s4] sm:$0xff] }
 0x48b   : > { %v2818_v60 = vadd.f32 %v8562_v35, %v2690_v54  ;;  %v2819_v63 = vadd.f32 %v8563_v11, %v2691_v38  ;;  %v3010_v23 = vmul.f32 %v2988_v2, %v8568_v59  ;;  %v1848_v11 = vld [vmem:[%s7717_s10] sm:$0xff]  ;;  %v8574_v33 = vmov 9   ;;  %v8575_v2 = vld [vmem:[#allocation114_spill] sm:$0xff] }
 0x48c   : > { %v7426_v55 = vpop.permute.xlu1 %2972 }
 0x48d   : > { %v2946_v13 = vadd.f32 %v8564_v25, %v2818_v60  ;;  %v2947_v17 = vadd.f32 %v8565_v48, %v2819_v63  ;;  %v1849_v60 = vld [vmem:[%s7717_s10 + $0x8] sm:$0xff] }
 0x490   : > { %v7430_v5 = vpop.permute.xlu1 %2976 }
 0x494   : > { %v7432_v10 = vpop.permute.xlu1 %2980 }
 0x498   : > { %v7442_v42 = vpop.permute.xlu1 %3019 }
 0x49c   : > { %v3024_v61 = vpop.permute.xlu1 %3023 }
 0x49d   : > { %v3050_v9 = vmul.f32 %v3024_v61, %v3002_v7  ;;  %v3051_v50 = vmul.f32 %v3024_v61, %v3003_v36  ;;  %v1853_v7 = vld [vmem:[%s7717_s10 + $0x28] sm:$0xff] }
 0x49f   : > { %v7457_v43 = vadd.f32 %v3050_v9, %v7241_v45  ;;  %v7460_v56 = vadd.f32 %v3051_v50, %v7244_v20  ;;  %v3011_v45 = vmul.f32 %v2996_v29, %v8569_v1  ;;  %v1855_v9 = vld [vmem:[%s7717_s10 + $0x38] sm:$0xff] }
 0x4a0   : > { %v3032_v47 = vpop.permute.xlu1 %3031  ;;  %v3588_v29 = vld [vmem:[%s7711_s4 + $0x18] sm:$0xff] }
 0x4a1   : > { %v3054_v28 = vmul.f32 %v3032_v47, %v3006_v14  ;;  %v3055_v15 = vmul.f32 %v3032_v47, %v3007_v16  ;;  %v3589_v47 = vld [vmem:[%s7711_s4 + $0x10] sm:$0xff] }
 0x4a3   : > { %v7472_v24 = vadd.f32 %v3054_v28, %v2942_v62  ;;  %v7474_v20 = vadd.f32 %v3055_v15, %v2943_v3  ;;  %v3590_v28 = vld [vmem:[%s7711_s4 + $0x28] sm:$0xff] }
 0x4a4   : > { %v3040_v18 = vpop.permute.xlu1 %3039  ;;  %v8576_v15 = vld [vmem:[#allocation122_spill] sm:$0xff] }
 0x4a5   : > { %v3058_v31 = vmul.f32 %v3040_v18, %v3010_v23  ;;  %v3059_v54 = vmul.f32 %v3040_v18, %v3011_v45  ;;  %v3591_v23 = vld [vmem:[%s7711_s4 + $0x38] sm:$0xff]  ;;  %v8578_v18 = vld [vmem:[#allocation102_spill] sm:$0xff] }
 0x4a6   : > { %v8577_v45 = vld [vmem:[#allocation132_spill] sm:$0xff] }
 0x4a7   : > { %v7476_v38 = vadd.f32 %v3058_v31, %v2946_v13  ;;  %v7478_v35 = vadd.f32 %v3059_v54, %v2947_v17  ;;  %v1850_v13 = vld [vmem:[%s7717_s10 + $0x10] sm:$0xff]  ;;  %v8579_v31 = vld [vmem:[#allocation28_spill] sm:$0xff] }
 0x4a8   : > { %v2982_v54 = vsel %vm1507_vm7, %v8579_v31, %v8578_v18 }
 0x4f8   : > { %v3429_v63 = vpop.f32.mrb[0].mxu1 }
 0x4f9   : > { %v1957_v62 = vadd.f32 %v3429_v63, %v1849_v60  ;;  %v1951_v25 = vpop.f32.mrb[1].mxu1  ;;  %v2985_v60 = vsel %vm1507_vm7, %v7374_v46, %v7426_v55  ;;  %v2987_v63 = vsel %vm1507_vm7, %v7392_v37, %v7430_v5 }
 0x4fa   : > { %v1952_v3 = vadd.f32 %v1951_v25, %v1848_v11  ;;  %v2993_v11 = vsel %vm1507_vm7, %v7426_v55, %v7374_v46  ;;  %v3004_v46 = vmul.f32 %v2985_v60, %v8568_v59 }
 0x4fb   : > { %3117 = vperm.xlu0 %3574, %v1957_v62   ;;  %v2995_v62 = vsel %vm1507_vm7, %v7430_v5, %v7392_v37  ;;  %v3005_v55 = vmul.f32 %v2993_v11, %v8569_v1  ;;  %v2991_v37 = vsel %vm1507_vm7, %v7420_v51, %v7352_v6  ;;  %v3008_v5 = vmul.f32 %v2987_v63, %v8568_v59  ;;  %v3100_v63 = vld [vmem:[#allocation2 + $0x30] sm:$0xff] }
 0x4fc   : > { %v3432_v48 = vpop.f32.mrb[2].mxu1  ;;  %3112 = vperm.xlu1 %3575, %v1952_v3   ;;  %v2990_v3 = vsel %vm1507_vm7, %v8578_v18, %v8579_v31  ;;  %v3096_v18 = vld [vmem:[#allocation2 + $0x10] sm:$0xff]  ;;  %v3097_v31 = vld [vmem:[#allocation2 + $0x18] sm:$0xff] }
 0x4fd   : > { %v1961_v17 = vpop.f32.mrb[3].mxu1  ;;  %v1967_v30 = vadd.f32 %v3432_v48, %v1851_v39  ;;  %v2983_v48 = vsel %vm1507_vm7, %v7352_v6, %v7420_v51  ;;  %v2997_v39 = vsel %vm1507_vm7, %v7432_v10, %v7404_v34 }
 0x4fe   : > { %v1962_v58 = vadd.f32 %v1961_v17, %v1850_v13  ;;  %v2998_v13 = vmul.f32 %v2982_v54, %v8568_v59  ;;  %v3009_v17 = vmul.f32 %v2995_v62, %v8569_v1  ;;  %v3000_v51 = vmul.f32 %v2983_v48, %v8568_v59  ;;  %v3101_v62 = vld [vmem:[#allocation2 + $0x38] sm:$0xff] }
 0x500   : > { %v3435_v8 = vpop.f32.mrb[4].mxu1  ;;  %3122 = vperm.xlu1 %3575, %v1962_v58   ;;  %v2989_v58 = vsel %vm1507_vm7, %v7404_v34, %v7432_v10  ;;  %v3013_v34 = vmul.f32 %v2997_v39, %v8569_v1 }
 0x501   : > { %v1971_v36 = vpop.f32.mrb[5].mxu1  ;;  %v1977_v57 = vadd.f32 %v3435_v8, %v1853_v7  ;;  %v8580_v8 = vld [vmem:[#allocation27_spill] sm:$0xff]  ;;  %v3012_v0 = vmul.f32 %v2989_v58, %v8568_v59 }
 0x502   : > { %v1972_v41 = vadd.f32 %v1971_v36, %v1852_v26  ;;  %v2999_v26 = vmul.f32 %v2990_v3, %v8569_v1  ;;  %v3046_v7 = vmul.f32 %v8580_v8, %v2998_v13  ;;  %v3099_v13 = vld [vmem:[#allocation2 + $0x28] sm:$0xff] }
 0x504   : > { %v3438_v61 = vpop.f32.mrb[6].mxu1  ;;  %3127 = vperm.xlu1 %3575, %v1967_v30   ;;  %3132 = vperm.xlu0 %3574, %v1972_v41   ;;  %v3001_v30 = vmul.f32 %v2991_v37, %v8569_v1  ;;  %v3052_v41 = vmul.f32 %v7210_v19, %v3004_v46  ;;  %v3047_v10 = vmul.f32 %v8580_v8, %v2999_v26  ;;  %v3104_v26 = vld [vmem:[#allocation2 + $0x50] sm:$0xff]  ;;  %v3105_v8 = vld [vmem:[#allocation2 + $0x58] sm:$0xff] }
 0x505   : > { %v1981_v50 = vpop.f32.mrb[7].mxu1  ;;  %v1987_v16 = vadd.f32 %v3438_v61, %v1855_v9  ;;  %v3057_v61 = vmul.f32 %v7254_v4, %v3009_v17  ;;  %v3048_v9 = vmul.f32 %v7442_v42, %v3000_v51  ;;  %v3060_v1 = vmul.f32 %v7284_v53, %v3012_v0 }
 0x506   : > { %v1982_v14 = vadd.f32 %v1981_v50, %v1854_v22  ;;  %v3053_v22 = vmul.f32 %v7210_v19, %v3005_v55  ;;  %v3049_v50 = vmul.f32 %v7442_v42, %v3001_v30  ;;  %v8582_v19 = vld [vmem:[#allocation19_spill] sm:$0xff]  ;;  %v8583_v55 = vld [vmem:[#allocation10_spill] sm:$0xff]  ;;  %v3087_v0 = vmul.f32 2.0, %v7474_v20 }
 0x508   : > { %3137 = vperm.xlu1 %3575, %v1977_v57   ;;  %3142 = vperm.xlu0 %3574, %v1982_v14   ;;  %v3056_v57 = vmul.f32 %v7254_v4, %v3008_v5  ;;  %v8581_v14 = vld [vmem:[#allocation14_spill] sm:$0xff]  ;;  %v3068_v4 = vadd.f32 %v3052_v41, %v7271_v21  ;;  %v3069_v59 = vadd.f32 %v3053_v22, %v7274_v12  ;;  %v3083_v41 = vmul.f32 2.0, %v7460_v56  ;;  %v3109_v56 = vld [vmem:[#allocation2 + $0x78] sm:$0xff] }
 0x50a   : > { %v3072_v42 = vadd.f32 %v3056_v57, %v7307_v32  ;;  %v3084_v3 = vmul.f32 2.0, %v3068_v4  ;;  %v3085_v32 = vmul.f32 2.0, %v3069_v59 }
 0x50c   : > { %3147 = vperm.xlu1 %3575, %v1987_v16   ;;  %3576 = vset.pattern.permute.xlu0 %v8574_v33  ;;  %v3062_v16 = vadd.f32 %v3046_v7, %v8581_v14 }
 0x50d   : > { %3183 = vperm.xlu0 %3576, %v3587_v44  }
 0x50e   : > { %v3078_v12 = vmul.f32 2.0, %v3062_v16 }
 0x510   : > { %3577 = vset.pattern.permute.xlu1 %v8574_v33 }
 0x511   : > { %3187 = vperm.xlu1 %3577, %v8575_v2   ;;  %3195 = vperm.xlu0 %3576, %v3588_v29   ;;  %v3063_v2 = vadd.f32 %v3047_v10, %v8582_v19  ;;  %v3094_v29 = vld [vmem:[#allocation2] sm:$0xff]  ;;  %v3103_v10 = vld [vmem:[#allocation2 + $0x48] sm:$0xff]  ;;  %v3108_v19 = vld [vmem:[#allocation2 + $0x70] sm:$0xff] }
 0x515   : > { %3191 = vperm.xlu1 %3577, %v3589_v47   ;;  %3203 = vperm.xlu0 %3576, %v3590_v28   ;;  %v3095_v47 = vld [vmem:[#allocation2 + $0x8] sm:$0xff]  ;;  %v3061_v28 = vmul.f32 %v7284_v53, %v3013_v34  ;;  %v3079_v53 = vmul.f32 2.0, %v3063_v2  ;;  %v3102_v34 = vld [vmem:[#allocation2 + $0x40] sm:$0xff] }
 0x516   : > { %v3592_v2 = vld [vmem:[%s3924_s24] sm:$0xff] }
 0x519   : > { %3199 = vperm.xlu1 %3577, %v8576_v15   ;;  %3211 = vperm.xlu0 %3576, %v3591_v23   ;;  %v3073_v15 = vadd.f32 %v3057_v61, %v7310_v27  ;;  %v3064_v23 = vadd.f32 %v3048_v9, %v7407_v40  ;;  %v3098_v27 = vld [vmem:[#allocation2 + $0x20] sm:$0xff]  ;;  %v3088_v40 = vmul.f32 2.0, %v3072_v42 }
 0x51b   : > { %v3089_v46 = vmul.f32 2.0, %v3073_v15  ;;  %v3080_v48 = vmul.f32 2.0, %v3064_v23 }
 0x51d   : > { %3207 = vperm.xlu1 %3577, %v8577_v45   ;;  %v3065_v45 = vadd.f32 %v3049_v50, %v7410_v52  ;;  %v7598_v52 = vadd.f32 %v3060_v1, %v7343_v49  ;;  %v3082_v49 = vmul.f32 2.0, %v7457_v43 }
 0x51f   : > { %v3081_v37 = vmul.f32 2.0, %v3065_v45 }
 0x57a   : > { %v3118_v36 = vpop.permute.xlu0 %3117 }
 0x57b   : > { %v3113_v25 = vpop.permute.xlu1 %3112  ;;  %v3152_v5 = vmul.f32 %v3118_v36, %v3096_v18  ;;  %v3153_v17 = vmul.f32 %v3118_v36, %v3097_v31  ;;  %v3086_v36 = vmul.f32 2.0, %v7472_v24 }
 0x57c   : > { %v3150_v54 = vmul.f32 %v3113_v25, %v3094_v29  ;;  %v3151_v60 = vmul.f32 %v3113_v25, %v3095_v47  ;;  %v7601_v25 = vadd.f32 %v3061_v28, %v8583_v55  ;;  %v3597_v55 = vld [vmem:[%s3924_s24 + $0x38] sm:$0xff] }
 0x57d   : > { %v3169_v43 = vadd.f32 %v3153_v17, %v3081_v37 }
 0x57e   : > { %v3166_v51 = vadd.f32 %v3150_v54, %v3078_v12  ;;  %v3167_v30 = vadd.f32 %v3151_v60, %v3079_v53  ;;  %v3106_v12 = vld [vmem:[#allocation2 + $0x60] sm:$0xff] }
 0x57f   : > { %v3123_v6 = vpop.permute.xlu1 %3122 }
 0x580   : > { %v3154_v22 = vmul.f32 %v3123_v6, %v3098_v27  ;;  %v3155_v57 = vmul.f32 %v3123_v6, %v3099_v13  ;;  %v3593_v6 = vld [vmem:[%s3924_s24 + $0x8] sm:$0xff]  ;;  %v3596_v27 = vld [vmem:[%s3924_s24 + $0x30] sm:$0xff] }
 0x582   : > { %v3170_v42 = vadd.f32 %v3154_v22, %v3082_v49  ;;  %v3171_v15 = vadd.f32 %v3155_v57, %v3083_v41  ;;  %v3599_v22 = vld [vmem:[%s3924_s24 + $0x28] sm:$0xff] }
 0x583   : > { %v3128_v33 = vpop.permute.xlu1 %3127  ;;  %v7583_v44 = vpop.permute.xlu0 %3132 }
 0x584   : > { %v3156_v58 = vmul.f32 %v3128_v33, %v3100_v63  ;;  %v3157_v39 = vmul.f32 %v3128_v33, %v3101_v62  ;;  %v3168_v33 = vadd.f32 %v3152_v5, %v3080_v48  ;;  %v3158_v24 = vmul.f32 %v7583_v44, %v3102_v34  ;;  %v3107_v63 = vld [vmem:[#allocation2 + $0x68] sm:$0xff]  ;;  %v3594_v62 = vld [vmem:[%s3924_s24 + $0x10] sm:$0xff] }
 0x585   : > { %v3159_v20 = vmul.f32 %v7583_v44, %v3103_v10  ;;  %v3090_v10 = vmul.f32 2.0, %v7476_v38 }
 0x586   : > { %v3172_v4 = vadd.f32 %v3156_v58, %v3084_v3  ;;  %v3173_v59 = vadd.f32 %v3157_v39, %v3085_v32  ;;  %v3595_v3 = vld [vmem:[%s3924_s24 + $0x18] sm:$0xff]  ;;  %v3174_v17 = vadd.f32 %v3158_v24, %v3086_v36  ;;  %v3093_v58 = vmul.f32 2.0, %v7601_v25  ;;  %v3598_v25 = vld [vmem:[%s3924_s24 + $0x20] sm:$0xff] }
 0x587   : > { %v3138_v21 = vpop.permute.xlu1 %3137  ;;  %v7594_v11 = vpop.permute.xlu0 %3142 }
 0x588   : > { %v3160_v14 = vmul.f32 %v3138_v21, %v3104_v26  ;;  %v3161_v16 = vmul.f32 %v3138_v21, %v3105_v8 }
 0x58a   : > { %v3176_v60 = vadd.f32 %v3160_v14, %v3088_v40  ;;  %v3177_v21 = vadd.f32 %v3161_v16, %v3089_v46  ;;  %v3175_v40 = vadd.f32 %v3159_v20, %v3087_v0  ;;  %v3092_v46 = vmul.f32 2.0, %v7598_v52  ;;  %v3601_v0 = vld [vmem:[%s3924_s24 + $0x58] sm:$0xff] }
 0x58b   : > { %v3148_v7 = vpop.permute.xlu1 %3147 }
 0x58c   : > { %v3184_v61 = vpop.permute.xlu0 %3183  ;;  %v3164_v54 = vmul.f32 %v3148_v7, %v3108_v19  ;;  %v3165_v44 = vmul.f32 %v3148_v7, %v3109_v56  ;;  %v3602_v19 = vld [vmem:[%s3924_s24 + $0x40] sm:$0xff] }
 0x58d   : > { %v3214_v9 = vadd.f32 %v3184_v61, %v3166_v51  ;;  %v3215_v50 = vadd.f32 %v3184_v61, %v3167_v30  ;;  %v3162_v51 = vmul.f32 %v7594_v11, %v3106_v12  ;;  %v3163_v30 = vmul.f32 %v7594_v11, %v3107_v63  ;;  %v3600_v61 = vld [vmem:[%s3924_s24 + $0x50] sm:$0xff] }
 0x58e   : > { %v3180_v52 = vadd.f32 %v3164_v54, %v3092_v46  ;;  %v3181_v49 = vadd.f32 %v3165_v44, %v3093_v58 }
 0x58f   : > { %v3230_v29 = vadd.f32 %v3592_v2, %v3214_v9  ;;  %v3231_v47 = vadd.f32 %v3593_v6, %v3215_v50  ;;  %v3091_v9 = vmul.f32 2.0, %v7478_v35  ;;  %v3178_v38 = vadd.f32 %v3162_v51, %v3090_v10  ;;  %v3603_v2 = vld [vmem:[%s3924_s24 + $0x48] sm:$0xff]  ;;  %v3604_v6 = vld [vmem:[%s3924_s24 + $0x70] sm:$0xff] }
 0x590   : > { %v3188_v1 = vpop.permute.xlu1 %3187  ;;  %v3196_v28 = vpop.permute.xlu0 %3195 }
 0x591   : > { %3246 = vst [vmem:[%s7616_s15] sm:$0xff] %v3230_v29  ;;  %3247 = vst [vmem:[%s7616_s15 + $0x8] sm:$0xff] %v3231_v47  ;;  %v3216_v23 = vadd.f32 %v3188_v1, %v3168_v33  ;;  %v3217_v45 = vadd.f32 %v3188_v1, %v3169_v43  ;;  %v3220_v18 = vadd.f32 %v3196_v28, %v3172_v4  ;;  %v3605_v4 = vld [vmem:[%s3924_s24 + $0x78] sm:$0xff] }
 0x592   : > { %v3221_v31 = vadd.f32 %v3196_v28, %v3173_v59  ;;  %v3179_v35 = vadd.f32 %v3163_v30, %v3091_v9  ;;  %v3606_v28 = vld [vmem:[%s3924_s24 + $0x60] sm:$0xff] }
 0x593   : > { %v3232_v53 = vadd.f32 %v3594_v62, %v3216_v23  ;;  %v3233_v32 = vadd.f32 %v3595_v3, %v3217_v45  ;;  %v3236_v13 = vadd.f32 %v3596_v27, %v3220_v18 }
 0x594   : > { %v3237_v48 = vadd.f32 %v3597_v55, %v3221_v31  ;;  %v3192_v37 = vpop.permute.xlu1 %3191  ;;  %v3204_v5 = vpop.permute.xlu0 %3203 }
 0x595   : > { %3248 = vst [vmem:[%s7616_s15 + $0x10] sm:$0xff] %v3232_v53  ;;  %3249 = vst [vmem:[%s7616_s15 + $0x18] sm:$0xff] %v3233_v32  ;;  %v3218_v39 = vadd.f32 %v3192_v37, %v3170_v42  ;;  %v3219_v26 = vadd.f32 %v3192_v37, %v3171_v15  ;;  %v3224_v8 = vadd.f32 %v3204_v5, %v3176_v60  ;;  %v3607_v15 = vld [vmem:[%s3924_s24 + $0x68] sm:$0xff]  ;;  %s3642_s24 = scalar_lea.vmem %s3641_s22, 4096 }
 0x596   : > { %3252 = vst [vmem:[%s7616_s15 + $0x30] sm:$0xff] %v3236_v13  ;;  %3253 = vst [vmem:[%s7616_s15 + $0x38] sm:$0xff] %v3237_v48  ;;  %v3225_v7 = vadd.f32 %v3204_v5, %v3177_v21  ;;  %p3644_p3 = scmp.lt.s32.totalorder %s3642_s24, %s3636_s30 }
 0x597   : > { %v3234_v41 = vadd.f32 %v3598_v25, %v3218_v39  ;;  %v3235_v57 = vadd.f32 %v3599_v22, %v3219_v26  ;;  %v3240_v36 = vadd.f32 %v3600_v61, %v3224_v8 }
 0x598   : > { %v3241_v34 = vadd.f32 %v3601_v0, %v3225_v7  ;;  %v3200_v11 = vpop.permute.xlu1 %3199  ;;  %v3212_v50 = vpop.permute.xlu0 %3211  ;;  %p3645_p4 = por %p3644_p3, %p3643_p2 }
 0x599   : > { %3250 = vst [vmem:[%s7616_s15 + $0x20] sm:$0xff] %v3234_v41  ;;  %3251 = vst [vmem:[%s7616_s15 + $0x28] sm:$0xff] %v3235_v57  ;;  %v3222_v14 = vadd.f32 %v3200_v11, %v3174_v17  ;;  %v3223_v16 = vadd.f32 %v3200_v11, %v3175_v40  ;;  %v3228_v33 = vadd.f32 %v3212_v50, %v3180_v52 }
 0x59a   : > { %3256 = vst [vmem:[%s7616_s15 + $0x50] sm:$0xff] %v3240_v36  ;;  %3257 = vst [vmem:[%s7616_s15 + $0x58] sm:$0xff] %v3241_v34  ;;  %v3229_v43 = vadd.f32 %v3212_v50, %v3181_v49  ;;  %p3646_p7 = pnand %p3645_p4, %p3639_p12 }
 0x59b   : > { %v3238_v56 = vadd.f32 %v3602_v19, %v3222_v14  ;;  %v3239_v29 = vadd.f32 %v3603_v2, %v3223_v16  ;;  %v3244_v47 = vadd.f32 %v3604_v6, %v3228_v33 }
 0x59c   : > { %v3245_v59 = vadd.f32 %v3605_v4, %v3229_v43  ;;  %v3208_v24 = vpop.permute.xlu1 %3207 }
 0x59d   : > { %3254 = vst [vmem:[%s7616_s15 + $0x40] sm:$0xff] %v3238_v56  ;;  %3255 = vst [vmem:[%s7616_s15 + $0x48] sm:$0xff] %v3239_v29  ;;  %v3226_v20 = vadd.f32 %v3208_v24, %v3178_v38  ;;  %v3227_v1 = vadd.f32 %v3208_v24, %v3179_v35 }
 0x59e   : > { %3260 = vst [vmem:[%s7616_s15 + $0x70] sm:$0xff] %v3244_v47  ;;  %3261 = vst [vmem:[%s7616_s15 + $0x78] sm:$0xff] %v3245_v59 }
 0x59f   : > { %v3242_v42 = vadd.f32 %v3606_v28, %v3226_v20  ;;  %v3243_v23 = vadd.f32 %v3607_v15, %v3227_v1 }
 0x5a1   : > { %3258 = vst [vmem:[%s7616_s15 + $0x60] sm:$0xff] %v3242_v42  ;;  %3259 = vst [vmem:[%s7616_s15 + $0x68] sm:$0xff] %v3243_v23 }
 0x5a2   : > { %3649 = shalt.err (!%p3646_p7)
}
 0x5a3   : > { %s3650_s14 = scalar_lea.hbm %s7655_s25, 2048  ;;  %s3654_s16 = scalar_lea.hbm %s7718_s11, 4096 }
 0x5a4   : > { %p3651_p8 = scmp.ne.s32.totalorder %s7655_s25, %s3650_s14  ;;  %p3655_p1 = scmp.lt.u32.totalorder %s7655_s25, %s7718_s11 }
 0x5a5   : > { %p3656_p0 = scmp.lt.u32.totalorder %s3654_s16, %s3650_s14  ;;  %p3658_p6 = scmp.lt.u32.totalorder %s3650_s14, %s7655_s25 }
 0x5a6   : > { %p3652_p11 = pnand %p3651_p8, %p8584_p9 }
 0x5a7   : > { %p3657_p5 = por %p3656_p0, %p3655_p1 }
 0x5a8   : > { %p3653_p13 = pneg %p3652_p11 }
 0x5a9   : > { %p3659_p10 = por %p3658_p6, %p3657_p5 }
 0x5ab   : > { %p3660_p12 = pnand %p3659_p10, %p3653_p13 }
 0x5ad   : > { %3663 = shalt.err (!%p3660_p12)
}
 0x5ae   : > { %s3727_s30 = smov 256  }
 0x5af   : > { %3465 = dma.vmem_to_hbm [thread:$0]  (%p8584_p9), %s7659_s29, 2048, %s7655_s25, %s7665_s21, %s3727_s30, %s3727_s30, %s3710_s26  }
 0x5b0 PF: > { %p3477_p2 = scmp.ge.s32.totalorder %s3702_s20, 2  ;;  %s3291_s24 = sand.u32 1, %s3690_s17  }
 0x5b1   : > { %p8585_p3 = scmp.ne.s32.totalorder %s8027_s28, 0  ;;  %s3292_s14 = scalar_lea.sflag [#allocation4], %s3291_s24 }
 0x5b3   : > { %p3472_p4 = pnand %p3477_p2, %p8585_p3 }
 0x5b5   : > { %3685 = dma.done.wait (!%p3472_p4), %s3292_s14, 2048  }
 0x5b6   : > { %3687 = vsyncadd (!%p3472_p4), %s3292_s14, 4294965248  ;;  %s8586_s27 = sld [smem:[#allocation8_spill]]  ;;  %p22_p7 = scmp.ge.s32.totalorder %s3813_s23, 4  }
 0x5b7   : > { %s8587_s17 = smov %s3694_s18  ;;  %s8588_s18 = smov %s3698_s19 }
 0x5b8   : > { %s8590_s20 = smov %s3813_s23  ;;  %24 = sbr.rel (!%p22_p7) target bundleno = 4 (0x4), region = 111 }
 0x5bc   : > { %s8589_s19 = smov %s8586_s27 }
 0x5bf   :  { %3297 = vsyncpa [#allocation3], 1 }
 0x5c0   :  { %3299 = vsyncpa [#allocation3 + $0x1], 1 }
 0x5c1   :  { %3300 = vsyncpa [#allocation4], 1 }
 0x5c2   :  { %3302 = vsyncpa [#allocation4 + $0x1], 1 }

</bundles_post_ra>
